<compile_context>
chip_gen: v5e
topology: v5e:2x2
jax: 0.10.0
libtpu: 0.0.40
codegen_flags: <defaults>
</compile_context>

<pallas_src>
import math
from functools import partial

import jax
import jax.numpy as jnp
from jax.experimental import pallas as pl
from jax.experimental.pallas import tpu as pltpu

EPS = 1e-5  # PyTorch nn.LayerNorm default


def _layernorm(x, gamma, beta):
    # f32 elementwise math (VPU); rsqrt stays on the fast path.
    mean = jnp.mean(x, axis=-1, keepdims=True)
    var = jnp.mean((x - mean) ** 2, axis=-1, keepdims=True)
    return (x - mean) * jax.lax.rsqrt(var + EPS) * gamma + beta


def encoder_block_kernel(num_heads,
                         x_ref,
                         wqkv_ref, bqkv_ref, wo_ref, bo_ref,
                         g1_ref, be1_ref,
                         w1_ref, b1_ref, w2_ref, b2_ref,
                         g2_ref, be2_ref,
                         out_ref,
                         q_scr, k_scr, v_scr, ctx_scr):
    Bt, S, E = x_ref.shape
    NH = num_heads
    Dh = E // NH

    x = x_ref[...]                                   # (Bt, S, E) f32
    xf = x.reshape(Bt * S, E)                        # free reshape (S % 8 == 0)

    # --- fused QKV in-projection: ONE MXU matmul, M = Bt*S rows, N = 3E ---
    # (attention scale 1/sqrt(Dh) already folded into the Q part of wqkv/bqkv)
    qkv = jnp.dot(xf.astype(jnp.bfloat16), wqkv_ref[...],
                  preferred_element_type=jnp.float32) + bqkv_ref[...]   # (Bt*S, 3E) f32

    # --- head-major re-layout into bf16 scratch (Bt*NH, S, Dh); cast at store time ---
    for h in range(NH):
        qh = qkv[:, h * Dh:(h + 1) * Dh].astype(jnp.bfloat16)
        kh = qkv[:, E + h * Dh:E + (h + 1) * Dh].astype(jnp.bfloat16)
        vh = qkv[:, 2 * E + h * Dh:2 * E + (h + 1) * Dh].astype(jnp.bfloat16)
        for b in range(Bt):
            rows = slice(b * S, (b + 1) * S)
            q_scr[b * NH + h] = qh[rows]
            k_scr[b * NH + h] = kh[rows]
            v_scr[b * NH + h] = vh[rows]

    q3 = q_scr[...]                                  # (Bt*NH, S, Dh) bf16
    k3 = k_scr[...]
    v3 = v_scr[...]

    # --- batched (all (batch, head) pairs at once) scaled dot-product attention ---
    scores = jnp.einsum("hqd,hkd->hqk", q3, k3,
                        preferred_element_type=jnp.float32)             # (Bt*NH, S, S) f32
    scores = scores - jnp.max(scores, axis=-1, keepdims=True)
    probs = jnp.exp(scores)
    probs = probs / jnp.sum(probs, axis=-1, keepdims=True)              # exact softmax
    ctx = jnp.einsum("hqk,hkd->hqd", probs.astype(jnp.bfloat16), v3,
                     preferred_element_type=jnp.float32)                # (Bt*NH, S, Dh) f32

    # --- pack context back to a (Bt*S, E) bf16 slab and do ONE K=E output projection ---
    for h in range(NH):
        for b in range(Bt):
            ctx_scr[b * S:(b + 1) * S, h * Dh:(h + 1) * Dh] = \
                ctx[b * NH + h].astype(jnp.bfloat16)
    attn = jnp.dot(ctx_scr[...], wo_ref[...],
                   preferred_element_type=jnp.float32) + bo_ref[...]    # (Bt*S, E) f32

    # --- residual + LayerNorm 1 (f32) ---
    x1 = _layernorm(xf + attn, g1_ref[...], be1_ref[...])

    # --- position-wise FFN (bf16 MXU inputs, f32 accumulate) + residual + LayerNorm 2 ---
    h1 = jnp.dot(x1.astype(jnp.bfloat16), w1_ref[...],
                 preferred_element_type=jnp.float32) + b1_ref[...]
    h1 = jnp.maximum(h1, 0.0)
    ffn = jnp.dot(h1.astype(jnp.bfloat16), w2_ref[...],
                  preferred_element_type=jnp.float32) + b2_ref[...]
    x2 = _layernorm(x1 + ffn, g2_ref[...], be2_ref[...])

    out_ref[...] = x2.reshape(Bt, S, E).astype(out_ref.dtype)


_KP_ORDER = ["wqkv", "bqkv", "wo", "bo", "g1", "be1",
             "w1", "b1", "w2", "b2", "g2", "be2"]


def prepare_kernel_params(p, num_heads):
    """Fuse QKV, fold the attention scale into Q, cast matmul weights to bf16."""
    E = p["wq"].shape[0]
    Dh = E // num_heads
    scale = 1.0 / math.sqrt(Dh)
    wqkv = jnp.concatenate([p["wq"] * scale, p["wk"], p["wv"]], axis=1).astype(jnp.bfloat16)
    bqkv = jnp.concatenate([p["bq"] * scale, p["bk"], p["bv"]], axis=1).astype(jnp.float32)
    return {
        "wqkv": wqkv, "bqkv": bqkv,
        "wo": p["wo"].astype(jnp.bfloat16), "bo": p["bo"].astype(jnp.float32),
        "g1": p["g1"], "be1": p["be1"],
        "w1": p["w1"].astype(jnp.bfloat16), "b1": p["b1"].astype(jnp.float32),
        "w2": p["w2"].astype(jnp.bfloat16), "b2": p["b2"].astype(jnp.float32),
        "g2": p["g2"], "be2": p["be2"],
    }


def _pick_batch_tile(B, S, target_rows=256):
    """Largest divisor of B such that Bt*S does not (much) exceed the MXU row target."""
    want = max(1, min(B, -(-target_rows // S)))
    for bt in range(want, 0, -1):
        if B % bt == 0:
            return bt
    return 1


def _vmem_limit_bytes(Bt, S, E, FF, NH, weight_args):
    """Resident-footprint-derived VMEM limit with headroom (feedback item: don't hardcode 32 MiB)."""
    lane = 128
    Dh = E // NH
    w = sum(int(a.size) * a.dtype.itemsize for a in weight_args)
    blk = Bt * S * E * 4
    io = 2 * 2 * blk                                   # double-buffered x block + out block
    scratch = 3 * Bt * NH * S * max(Dh, lane) * 2 \
        + Bt * S * E * 2                               # bf16 q/k/v (lane-padded) + packed ctx
    tmp = (Bt * S * 3 * E * 4                          # qkv f32
           + 2 * Bt * NH * S * max(S, lane) * 4        # scores + probs f32 (lane-padded)
           + Bt * S * FF * 4                           # FFN hidden f32
           + 4 * Bt * S * E * 4)                       # attn / x1 / ffn / x2 working set
    total = w + io + scratch + tmp
    # 2x headroom for compiler temporaries/spills; floor 16 MiB; stay under v7x's 64 MiB physical.
    return int(min(max(2 * total, 16 * 1024 * 1024), 60 * 1024 * 1024))


def transformer_encoder_block(x, params, num_heads):
    B, S, E = x.shape
    assert E % num_heads == 0, "embed_dim must be divisible by num_heads"
    Dh = E // num_heads
    FF = params["w1"].shape[1]
    Bt = _pick_batch_tile(B, S)

    kp = prepare_kernel_params(params, num_heads)
    weight_args = [kp[name] for name in _KP_ORDER]

    # Weights/biases: whole array resident in VMEM (single-buffered, not grid-pipelined).
    vmem_whole = pl.BlockSpec(memory_space=pltpu.MemorySpace.VMEM)
    in_specs = [pl.BlockSpec((Bt, S, E), lambda b: (b, 0, 0))] + [vmem_whole] * len(weight_args)

    flops = B * (2 * S * (4 * E * E + 2 * E * FF) + 4 * S * S * E)
    bytes_accessed = 2 * B * S * E * 4 + sum(int(a.size) * a.dtype.itemsize for a in weight_args)
    cost = pl.CostEstimate(flops=int(flops),
                           transcendentals=int(B * num_heads * S * S + 2 * B * S),
                           bytes_accessed=int(bytes_accessed))

    scratch_shapes = [
        pltpu.VMEM((Bt * num_heads, S, Dh), jnp.bfloat16),   # q, head-major
        pltpu.VMEM((Bt * num_heads, S, Dh), jnp.bfloat16),   # k, head-major
        pltpu.VMEM((Bt * num_heads, S, Dh), jnp.bfloat16),   # v, head-major
        pltpu.VMEM((Bt * S, E), jnp.bfloat16),               # packed context for Wo matmul
    ]

    return pl.pallas_call(
        partial(encoder_block_kernel, num_heads),
        out_shape=jax.ShapeDtypeStruct((B, S, E), x.dtype),
        grid=(B // Bt,),
        in_specs=in_specs,
        out_specs=pl.BlockSpec((Bt, S, E), lambda b: (b, 0, 0)),
        scratch_shapes=scratch_shapes,
        compiler_params=pltpu.CompilerParams(
            dimension_semantics=("parallel",),
            vmem_limit_bytes=_vmem_limit_bytes(Bt, S, E, FF, num_heads, weight_args)),
        cost_estimate=cost,
    )(x, *weight_args)


def make_params(key, embed_dim, ff_hidden_dim):
    ks = jax.random.split(key, 16)
    std = 0.02
    E, H = embed_dim, ff_hidden_dim

    def n(k, shape, s=std):
        return jax.random.normal(k, shape, jnp.float32) * s

    return {
        # attention in/out projections, stored as (in, out)
        "wq": n(ks[0], (E, E)), "wk": n(ks[1], (E, E)),
        "wv": n(ks[2], (E, E)), "wo": n(ks[3], (E, E)),
        "bq": n(ks[4], (1, E)), "bk": n(ks[5], (1, E)),
        "bv": n(ks[6], (1, E)), "bo": n(ks[7], (1, E)),
        # layernorm 1 / 2
        "g1": 1.0 + n(ks[8], (1, E), 0.1), "be1": n(ks[9], (1, E), 0.1),
        "g2": 1.0 + n(ks[10], (1, E), 0.1), "be2": n(ks[11], (1, E), 0.1),
        # FFN, stored as (in, out)
        "w1": n(ks[12], (E, H)), "b1": n(ks[13], (1, H)),
        "w2": n(ks[14], (H, E)), "b2": n(ks[15], (1, E)),
    }


def reference_block(x, p, num_heads):
    # pure-JAX float32 reference with identical math (eval mode, mask=None)
    B, S, E = x.shape
    Dh = E // num_heads
    scale = 1.0 / math.sqrt(Dh)
    q = x @ p["wq"] + p["bq"]
    k = x @ p["wk"] + p["bk"]
    v = x @ p["wv"] + p["bv"]
    q = q.reshape(B, S, num_heads, Dh)
    k = k.reshape(B, S, num_heads, Dh)
    v = v.reshape(B, S, num_heads, Dh)
    scores = jnp.einsum("bqhd,bkhd->bhqk", q, k) * scale
    pr = jax.nn.softmax(scores, axis=-1)
    ctx = jnp.einsum("bhqk,bkhd->bqhd", pr, v).reshape(B, S, E)
    attn = ctx @ p["wo"] + p["bo"]

    def ln(y, g, b):
        m = jnp.mean(y, axis=-1, keepdims=True)
        var = jnp.mean((y - m) ** 2, axis=-1, keepdims=True)
        return (y - m) * jax.lax.rsqrt(var + EPS) * g + b

    x1 = ln(x + attn, p["g1"], p["be1"])
    ffn = jnp.maximum(x1 @ p["w1"] + p["b1"], 0.0) @ p["w2"] + p["b2"]
    return ln(x1 + ffn, p["g2"], p["be2"])


if __name__ == "__main__":
    # Module defaults: embed_dim=128, num_heads=8, ff_hidden_dim=256; small batch/seq.
    B, S, E, NH, FF = 2, 16, 128, 8, 256
    key = jax.random.PRNGKey(0)
    kx, kp = jax.random.split(key)
    x = jax.random.normal(kx, (B, S, E), jnp.float32)
    params = make_params(kp, E, FF)

    out = transformer_encoder_block(x, params, NH)
    out = jax.block_until_ready(out)

    ref = reference_block(x, params, NH)
    assert out.shape == (B, S, E)
    max_err = float(jnp.max(jnp.abs(out - ref)))
    # bf16 MXU inputs vs. a pure-f32 reference -> loose-ish tolerance.
    assert jnp.allclose(out, ref, rtol=2e-2, atol=2e-2), \
        f"mismatch vs reference (max abs err {max_err})"

    print("KERNEL_OK")
</pallas_src>

<mosaic_0001>
module attributes {stable_mosaic.version = 11 : i64} {
  func.func @encoder_block_kernel(%arg0: i32, %arg1: memref<2x16x128xf32, #tpu.memory_space<vmem>>, %arg2: memref<128x384xbf16, #tpu.memory_space<vmem>>, %arg3: memref<1x384xf32, #tpu.memory_space<vmem>>, %arg4: memref<128x128xbf16, #tpu.memory_space<vmem>>, %arg5: memref<1x128xf32, #tpu.memory_space<vmem>>, %arg6: memref<1x128xf32, #tpu.memory_space<vmem>>, %arg7: memref<1x128xf32, #tpu.memory_space<vmem>>, %arg8: memref<128x256xbf16, #tpu.memory_space<vmem>>, %arg9: memref<1x256xf32, #tpu.memory_space<vmem>>, %arg10: memref<256x128xbf16, #tpu.memory_space<vmem>>, %arg11: memref<1x128xf32, #tpu.memory_space<vmem>>, %arg12: memref<1x128xf32, #tpu.memory_space<vmem>>, %arg13: memref<1x128xf32, #tpu.memory_space<vmem>>, %arg14: memref<2x16x128xf32, #tpu.memory_space<vmem>>, %arg15: memref<16x16x16xbf16, #tpu.memory_space<vmem>>, %arg16: memref<16x16x16xbf16, #tpu.memory_space<vmem>>, %arg17: memref<16x16x16xbf16, #tpu.memory_space<vmem>>, %arg18: memref<32x128xbf16, #tpu.memory_space<vmem>>) attributes {dimension_semantics = [#tpu.dimension_semantics<parallel>], iteration_bounds = array<i64: 1>, scalar_prefetch = 0 : i64, scratch_operands = 4 : i64, tpu.core_type = #tpu.core_type<tc>, window_params = [{transform_indices = @transform_0, window_bounds = array<i64: 2, 16, 128>}, {pipeline_mode = #tpu.pipeline_mode<synchronous>, transform_indices = @transform_1, window_bounds = array<i64: 128, 384>}, {pipeline_mode = #tpu.pipeline_mode<synchronous>, transform_indices = @transform_2, window_bounds = array<i64: 1, 384>}, {pipeline_mode = #tpu.pipeline_mode<synchronous>, transform_indices = @transform_3, window_bounds = array<i64: 128, 128>}, {pipeline_mode = #tpu.pipeline_mode<synchronous>, transform_indices = @transform_4, window_bounds = array<i64: 1, 128>}, {pipeline_mode = #tpu.pipeline_mode<synchronous>, transform_indices = @transform_5, window_bounds = array<i64: 1, 128>}, {pipeline_mode = #tpu.pipeline_mode<synchronous>, transform_indices = @transform_6, window_bounds = array<i64: 1, 128>}, {pipeline_mode = #tpu.pipeline_mode<synchronous>, transform_indices = @transform_7, window_bounds = array<i64: 128, 256>}, {pipeline_mode = #tpu.pipeline_mode<synchronous>, transform_indices = @transform_8, window_bounds = array<i64: 1, 256>}, {pipeline_mode = #tpu.pipeline_mode<synchronous>, transform_indices = @transform_9, window_bounds = array<i64: 256, 128>}, {pipeline_mode = #tpu.pipeline_mode<synchronous>, transform_indices = @transform_10, window_bounds = array<i64: 1, 128>}, {pipeline_mode = #tpu.pipeline_mode<synchronous>, transform_indices = @transform_11, window_bounds = array<i64: 1, 128>}, {pipeline_mode = #tpu.pipeline_mode<synchronous>, transform_indices = @transform_12, window_bounds = array<i64: 1, 128>}, {transform_indices = @transform_13, window_bounds = array<i64: 2, 16, 128>}]} {
    %c0 = arith.constant 0 : index
    %c0_0 = arith.constant 0 : index
    %c0_1 = arith.constant 0 : index
    %0 = vector.load %arg1[%c0, %c0_0, %c0_1] : memref<2x16x128xf32, #tpu.memory_space<vmem>>, vector<2x16x128xf32>
    %1 = vector.shape_cast %0 : vector<2x16x128xf32> to vector<32x128xf32>
    %2 = arith.truncf %1 : vector<32x128xf32> to vector<32x128xbf16>
    %c0_2 = arith.constant 0 : index
    %c0_3 = arith.constant 0 : index
    %3 = vector.load %arg2[%c0_2, %c0_3] : memref<128x384xbf16, #tpu.memory_space<vmem>>, vector<128x384xbf16>
    %cst = arith.constant dense<0.000000e+00> : vector<32x384xf32>
    %4 = tpu.matmul %2, %3, %cst {dimension_numbers = #tpu.dot_dimension_numbers<[1], [0], [0], [1], [0, 0, 1, 1], [], []>} : vector<32x128xbf16>, vector<128x384xbf16>, vector<32x384xf32> -> vector<32x384xf32>
    %c0_4 = arith.constant 0 : index
    %c0_5 = arith.constant 0 : index
    %5 = vector.load %arg3[%c0_4, %c0_5] : memref<1x384xf32, #tpu.memory_space<vmem>>, vector<1x384xf32>
    %6 = vector.broadcast %5 : vector<1x384xf32> to vector<32x384xf32>
    %7 = arith.addf %4, %6 : vector<32x384xf32>
    %8 = vector.extract_strided_slice %7 {offsets = [0, 0], sizes = [32, 16], strides = [1, 1]} : vector<32x384xf32> to vector<32x16xf32>
    %9 = arith.truncf %8 : vector<32x16xf32> to vector<32x16xbf16>
    %10 = vector.extract_strided_slice %7 {offsets = [0, 128], sizes = [32, 16], strides = [1, 1]} : vector<32x384xf32> to vector<32x16xf32>
    %11 = arith.truncf %10 : vector<32x16xf32> to vector<32x16xbf16>
    %12 = vector.extract_strided_slice %7 {offsets = [0, 256], sizes = [32, 16], strides = [1, 1]} : vector<32x384xf32> to vector<32x16xf32>
    %13 = arith.truncf %12 : vector<32x16xf32> to vector<32x16xbf16>
    %14 = vector.extract_strided_slice %9 {offsets = [0, 0], sizes = [16, 16], strides = [1, 1]} : vector<32x16xbf16> to vector<16x16xbf16>
    %c0_6 = arith.constant 0 : index
    %c0_7 = arith.constant 0 : index
    %c0_8 = arith.constant 0 : index
    %15 = vector.load %arg15[%c0_6, %c0_7, %c0_8] : memref<16x16x16xbf16, #tpu.memory_space<vmem>>, vector<1x16x16xbf16>
    %16 = vector.shape_cast %15 : vector<1x16x16xbf16> to vector<16x16xbf16>
    %17 = vector.shape_cast %14 : vector<16x16xbf16> to vector<1x16x16xbf16>
    tpu.vector_store %arg15[%c0_6, %c0_7, %c0_8], %17 {strides = array<i32>} : memref<16x16x16xbf16, #tpu.memory_space<vmem>>, vector<1x16x16xbf16>,
    %18 = vector.extract_strided_slice %11 {offsets = [0, 0], sizes = [16, 16], strides = [1, 1]} : vector<32x16xbf16> to vector<16x16xbf16>
    %c0_9 = arith.constant 0 : index
    %c0_10 = arith.constant 0 : index
    %c0_11 = arith.constant 0 : index
    %19 = vector.load %arg16[%c0_9, %c0_10, %c0_11] : memref<16x16x16xbf16, #tpu.memory_space<vmem>>, vector<1x16x16xbf16>
    %20 = vector.shape_cast %19 : vector<1x16x16xbf16> to vector<16x16xbf16>
    %21 = vector.shape_cast %18 : vector<16x16xbf16> to vector<1x16x16xbf16>
    tpu.vector_store %arg16[%c0_9, %c0_10, %c0_11], %21 {strides = array<i32>} : memref<16x16x16xbf16, #tpu.memory_space<vmem>>, vector<1x16x16xbf16>,
    %22 = vector.extract_strided_slice %13 {offsets = [0, 0], sizes = [16, 16], strides = [1, 1]} : vector<32x16xbf16> to vector<16x16xbf16>
    %c0_12 = arith.constant 0 : index
    %c0_13 = arith.constant 0 : index
    %c0_14 = arith.constant 0 : index
    %23 = vector.load %arg17[%c0_12, %c0_13, %c0_14] : memref<16x16x16xbf16, #tpu.memory_space<vmem>>, vector<1x16x16xbf16>
    %24 = vector.shape_cast %23 : vector<1x16x16xbf16> to vector<16x16xbf16>
    %25 = vector.shape_cast %22 : vector<16x16xbf16> to vector<1x16x16xbf16>
    tpu.vector_store %arg17[%c0_12, %c0_13, %c0_14], %25 {strides = array<i32>} : memref<16x16x16xbf16, #tpu.memory_space<vmem>>, vector<1x16x16xbf16>,
    %26 = vector.extract_strided_slice %9 {offsets = [16, 0], sizes = [16, 16], strides = [1, 1]} : vector<32x16xbf16> to vector<16x16xbf16>
    %c8 = arith.constant 8 : index
    %c0_15 = arith.constant 0 : index
    %c0_16 = arith.constant 0 : index
    %27 = vector.load %arg15[%c8, %c0_15, %c0_16] : memref<16x16x16xbf16, #tpu.memory_space<vmem>>, vector<1x16x16xbf16>
    %28 = vector.shape_cast %27 : vector<1x16x16xbf16> to vector<16x16xbf16>
    %29 = vector.shape_cast %26 : vector<16x16xbf16> to vector<1x16x16xbf16>
    tpu.vector_store %arg15[%c8, %c0_15, %c0_16], %29 {strides = array<i32>} : memref<16x16x16xbf16, #tpu.memory_space<vmem>>, vector<1x16x16xbf16>,
    %30 = vector.extract_strided_slice %11 {offsets = [16, 0], sizes = [16, 16], strides = [1, 1]} : vector<32x16xbf16> to vector<16x16xbf16>
    %c8_17 = arith.constant 8 : index
    %c0_18 = arith.constant 0 : index
    %c0_19 = arith.constant 0 : index
    %31 = vector.load %arg16[%c8_17, %c0_18, %c0_19] : memref<16x16x16xbf16, #tpu.memory_space<vmem>>, vector<1x16x16xbf16>
    %32 = vector.shape_cast %31 : vector<1x16x16xbf16> to vector<16x16xbf16>
    %33 = vector.shape_cast %30 : vector<16x16xbf16> to vector<1x16x16xbf16>
    tpu.vector_store %arg16[%c8_17, %c0_18, %c0_19], %33 {strides = array<i32>} : memref<16x16x16xbf16, #tpu.memory_space<vmem>>, vector<1x16x16xbf16>,
    %34 = vector.extract_strided_slice %13 {offsets = [16, 0], sizes = [16, 16], strides = [1, 1]} : vector<32x16xbf16> to vector<16x16xbf16>
    %c8_20 = arith.constant 8 : index
    %c0_21 = arith.constant 0 : index
    %c0_22 = arith.constant 0 : index
    %35 = vector.load %arg17[%c8_20, %c0_21, %c0_22] : memref<16x16x16xbf16, #tpu.memory_space<vmem>>, vector<1x16x16xbf16>
    %36 = vector.shape_cast %35 : vector<1x16x16xbf16> to vector<16x16xbf16>
    %37 = vector.shape_cast %34 : vector<16x16xbf16> to vector<1x16x16xbf16>
    tpu.vector_store %arg17[%c8_20, %c0_21, %c0_22], %37 {strides = array<i32>} : memref<16x16x16xbf16, #tpu.memory_space<vmem>>, vector<1x16x16xbf16>,
    %38 = vector.extract_strided_slice %7 {offsets = [0, 16], sizes = [32, 16], strides = [1, 1]} : vector<32x384xf32> to vector<32x16xf32>
    %39 = arith.truncf %38 : vector<32x16xf32> to vector<32x16xbf16>
    %40 = vector.extract_strided_slice %7 {offsets = [0, 144], sizes = [32, 16], strides = [1, 1]} : vector<32x384xf32> to vector<32x16xf32>
    %41 = arith.truncf %40 : vector<32x16xf32> to vector<32x16xbf16>
    %42 = vector.extract_strided_slice %7 {offsets = [0, 272], sizes = [32, 16], strides = [1, 1]} : vector<32x384xf32> to vector<32x16xf32>
    %43 = arith.truncf %42 : vector<32x16xf32> to vector<32x16xbf16>
    %44 = vector.extract_strided_slice %39 {offsets = [0, 0], sizes = [16, 16], strides = [1, 1]} : vector<32x16xbf16> to vector<16x16xbf16>
    %c1 = arith.constant 1 : index
    %c0_23 = arith.constant 0 : index
    %c0_24 = arith.constant 0 : index
    %45 = vector.load %arg15[%c1, %c0_23, %c0_24] : memref<16x16x16xbf16, #tpu.memory_space<vmem>>, vector<1x16x16xbf16>
    %46 = vector.shape_cast %45 : vector<1x16x16xbf16> to vector<16x16xbf16>
    %47 = vector.shape_cast %44 : vector<16x16xbf16> to vector<1x16x16xbf16>
    tpu.vector_store %arg15[%c1, %c0_23, %c0_24], %47 {strides = array<i32>} : memref<16x16x16xbf16, #tpu.memory_space<vmem>>, vector<1x16x16xbf16>,
    %48 = vector.extract_strided_slice %41 {offsets = [0, 0], sizes = [16, 16], strides = [1, 1]} : vector<32x16xbf16> to vector<16x16xbf16>
    %c1_25 = arith.constant 1 : index
    %c0_26 = arith.constant 0 : index
    %c0_27 = arith.constant 0 : index
    %49 = vector.load %arg16[%c1_25, %c0_26, %c0_27] : memref<16x16x16xbf16, #tpu.memory_space<vmem>>, vector<1x16x16xbf16>
    %50 = vector.shape_cast %49 : vector<1x16x16xbf16> to vector<16x16xbf16>
    %51 = vector.shape_cast %48 : vector<16x16xbf16> to vector<1x16x16xbf16>
    tpu.vector_store %arg16[%c1_25, %c0_26, %c0_27], %51 {strides = array<i32>} : memref<16x16x16xbf16, #tpu.memory_space<vmem>>, vector<1x16x16xbf16>,
    %52 = vector.extract_strided_slice %43 {offsets = [0, 0], sizes = [16, 16], strides = [1, 1]} : vector<32x16xbf16> to vector<16x16xbf16>
    %c1_28 = arith.constant 1 : index
    %c0_29 = arith.constant 0 : index
    %c0_30 = arith.constant 0 : index
    %53 = vector.load %arg17[%c1_28, %c0_29, %c0_30] : memref<16x16x16xbf16, #tpu.memory_space<vmem>>, vector<1x16x16xbf16>
    %54 = vector.shape_cast %53 : vector<1x16x16xbf16> to vector<16x16xbf16>
    %55 = vector.shape_cast %52 : vector<16x16xbf16> to vector<1x16x16xbf16>
    tpu.vector_store %arg17[%c1_28, %c0_29, %c0_30], %55 {strides = array<i32>} : memref<16x16x16xbf16, #tpu.memory_space<vmem>>, vector<1x16x16xbf16>,
    %56 = vector.extract_strided_slice %39 {offsets = [16, 0], sizes = [16, 16], strides = [1, 1]} : vector<32x16xbf16> to vector<16x16xbf16>
    %c9 = arith.constant 9 : index
    %c0_31 = arith.constant 0 : index
    %c0_32 = arith.constant 0 : index
    %57 = vector.load %arg15[%c9, %c0_31, %c0_32] : memref<16x16x16xbf16, #tpu.memory_space<vmem>>, vector<1x16x16xbf16>
    %58 = vector.shape_cast %57 : vector<1x16x16xbf16> to vector<16x16xbf16>
    %59 = vector.shape_cast %56 : vector<16x16xbf16> to vector<1x16x16xbf16>
    tpu.vector_store %arg15[%c9, %c0_31, %c0_32], %59 {strides = array<i32>} : memref<16x16x16xbf16, #tpu.memory_space<vmem>>, vector<1x16x16xbf16>,
    %60 = vector.extract_strided_slice %41 {offsets = [16, 0], sizes = [16, 16], strides = [1, 1]} : vector<32x16xbf16> to vector<16x16xbf16>
    %c9_33 = arith.constant 9 : index
    %c0_34 = arith.constant 0 : index
    %c0_35 = arith.constant 0 : index
    %61 = vector.load %arg16[%c9_33, %c0_34, %c0_35] : memref<16x16x16xbf16, #tpu.memory_space<vmem>>, vector<1x16x16xbf16>
    %62 = vector.shape_cast %61 : vector<1x16x16xbf16> to vector<16x16xbf16>
    %63 = vector.shape_cast %60 : vector<16x16xbf16> to vector<1x16x16xbf16>
    tpu.vector_store %arg16[%c9_33, %c0_34, %c0_35], %63 {strides = array<i32>} : memref<16x16x16xbf16, #tpu.memory_space<vmem>>, vector<1x16x16xbf16>,
    %64 = vector.extract_strided_slice %43 {offsets = [16, 0], sizes = [16, 16], strides = [1, 1]} : vector<32x16xbf16> to vector<16x16xbf16>
    %c9_36 = arith.constant 9 : index
    %c0_37 = arith.constant 0 : index
    %c0_38 = arith.constant 0 : index
    %65 = vector.load %arg17[%c9_36, %c0_37, %c0_38] : memref<16x16x16xbf16, #tpu.memory_space<vmem>>, vector<1x16x16xbf16>
    %66 = vector.shape_cast %65 : vector<1x16x16xbf16> to vector<16x16xbf16>
    %67 = vector.shape_cast %64 : vector<16x16xbf16> to vector<1x16x16xbf16>
    tpu.vector_store %arg17[%c9_36, %c0_37, %c0_38], %67 {strides = array<i32>} : memref<16x16x16xbf16, #tpu.memory_space<vmem>>, vector<1x16x16xbf16>,
    %68 = vector.extract_strided_slice %7 {offsets = [0, 32], sizes = [32, 16], strides = [1, 1]} : vector<32x384xf32> to vector<32x16xf32>
    %69 = arith.truncf %68 : vector<32x16xf32> to vector<32x16xbf16>
    %70 = vector.extract_strided_slice %7 {offsets = [0, 160], sizes = [32, 16], strides = [1, 1]} : vector<32x384xf32> to vector<32x16xf32>
    %71 = arith.truncf %70 : vector<32x16xf32> to vector<32x16xbf16>
    %72 = vector.extract_strided_slice %7 {offsets = [0, 288], sizes = [32, 16], strides = [1, 1]} : vector<32x384xf32> to vector<32x16xf32>
    %73 = arith.truncf %72 : vector<32x16xf32> to vector<32x16xbf16>
    %74 = vector.extract_strided_slice %69 {offsets = [0, 0], sizes = [16, 16], strides = [1, 1]} : vector<32x16xbf16> to vector<16x16xbf16>
    %c2 = arith.constant 2 : index
    %c0_39 = arith.constant 0 : index
    %c0_40 = arith.constant 0 : index
    %75 = vector.load %arg15[%c2, %c0_39, %c0_40] : memref<16x16x16xbf16, #tpu.memory_space<vmem>>, vector<1x16x16xbf16>
    %76 = vector.shape_cast %75 : vector<1x16x16xbf16> to vector<16x16xbf16>
    %77 = vector.shape_cast %74 : vector<16x16xbf16> to vector<1x16x16xbf16>
    tpu.vector_store %arg15[%c2, %c0_39, %c0_40], %77 {strides = array<i32>} : memref<16x16x16xbf16, #tpu.memory_space<vmem>>, vector<1x16x16xbf16>,
    %78 = vector.extract_strided_slice %71 {offsets = [0, 0], sizes = [16, 16], strides = [1, 1]} : vector<32x16xbf16> to vector<16x16xbf16>
    %c2_41 = arith.constant 2 : index
    %c0_42 = arith.constant 0 : index
    %c0_43 = arith.constant 0 : index
    %79 = vector.load %arg16[%c2_41, %c0_42, %c0_43] : memref<16x16x16xbf16, #tpu.memory_space<vmem>>, vector<1x16x16xbf16>
    %80 = vector.shape_cast %79 : vector<1x16x16xbf16> to vector<16x16xbf16>
    %81 = vector.shape_cast %78 : vector<16x16xbf16> to vector<1x16x16xbf16>
    tpu.vector_store %arg16[%c2_41, %c0_42, %c0_43], %81 {strides = array<i32>} : memref<16x16x16xbf16, #tpu.memory_space<vmem>>, vector<1x16x16xbf16>,
    %82 = vector.extract_strided_slice %73 {offsets = [0, 0], sizes = [16, 16], strides = [1, 1]} : vector<32x16xbf16> to vector<16x16xbf16>
    %c2_44 = arith.constant 2 : index
    %c0_45 = arith.constant 0 : index
    %c0_46 = arith.constant 0 : index
    %83 = vector.load %arg17[%c2_44, %c0_45, %c0_46] : memref<16x16x16xbf16, #tpu.memory_space<vmem>>, vector<1x16x16xbf16>
    %84 = vector.shape_cast %83 : vector<1x16x16xbf16> to vector<16x16xbf16>
    %85 = vector.shape_cast %82 : vector<16x16xbf16> to vector<1x16x16xbf16>
    tpu.vector_store %arg17[%c2_44, %c0_45, %c0_46], %85 {strides = array<i32>} : memref<16x16x16xbf16, #tpu.memory_space<vmem>>, vector<1x16x16xbf16>,
    %86 = vector.extract_strided_slice %69 {offsets = [16, 0], sizes = [16, 16], strides = [1, 1]} : vector<32x16xbf16> to vector<16x16xbf16>
    %c10 = arith.constant 10 : index
    %c0_47 = arith.constant 0 : index
    %c0_48 = arith.constant 0 : index
    %87 = vector.load %arg15[%c10, %c0_47, %c0_48] : memref<16x16x16xbf16, #tpu.memory_space<vmem>>, vector<1x16x16xbf16>
    %88 = vector.shape_cast %87 : vector<1x16x16xbf16> to vector<16x16xbf16>
    %89 = vector.shape_cast %86 : vector<16x16xbf16> to vector<1x16x16xbf16>
    tpu.vector_store %arg15[%c10, %c0_47, %c0_48], %89 {strides = array<i32>} : memref<16x16x16xbf16, #tpu.memory_space<vmem>>, vector<1x16x16xbf16>,
    %90 = vector.extract_strided_slice %71 {offsets = [16, 0], sizes = [16, 16], strides = [1, 1]} : vector<32x16xbf16> to vector<16x16xbf16>
    %c10_49 = arith.constant 10 : index
    %c0_50 = arith.constant 0 : index
    %c0_51 = arith.constant 0 : index
    %91 = vector.load %arg16[%c10_49, %c0_50, %c0_51] : memref<16x16x16xbf16, #tpu.memory_space<vmem>>, vector<1x16x16xbf16>
    %92 = vector.shape_cast %91 : vector<1x16x16xbf16> to vector<16x16xbf16>
    %93 = vector.shape_cast %90 : vector<16x16xbf16> to vector<1x16x16xbf16>
    tpu.vector_store %arg16[%c10_49, %c0_50, %c0_51], %93 {strides = array<i32>} : memref<16x16x16xbf16, #tpu.memory_space<vmem>>, vector<1x16x16xbf16>,
    %94 = vector.extract_strided_slice %73 {offsets = [16, 0], sizes = [16, 16], strides = [1, 1]} : vector<32x16xbf16> to vector<16x16xbf16>
    %c10_52 = arith.constant 10 : index
    %c0_53 = arith.constant 0 : index
    %c0_54 = arith.constant 0 : index
    %95 = vector.load %arg17[%c10_52, %c0_53, %c0_54] : memref<16x16x16xbf16, #tpu.memory_space<vmem>>, vector<1x16x16xbf16>
    %96 = vector.shape_cast %95 : vector<1x16x16xbf16> to vector<16x16xbf16>
    %97 = vector.shape_cast %94 : vector<16x16xbf16> to vector<1x16x16xbf16>
    tpu.vector_store %arg17[%c10_52, %c0_53, %c0_54], %97 {strides = array<i32>} : memref<16x16x16xbf16, #tpu.memory_space<vmem>>, vector<1x16x16xbf16>,
    %98 = vector.extract_strided_slice %7 {offsets = [0, 48], sizes = [32, 16], strides = [1, 1]} : vector<32x384xf32> to vector<32x16xf32>
    %99 = arith.truncf %98 : vector<32x16xf32> to vector<32x16xbf16>
    %100 = vector.extract_strided_slice %7 {offsets = [0, 176], sizes = [32, 16], strides = [1, 1]} : vector<32x384xf32> to vector<32x16xf32>
    %101 = arith.truncf %100 : vector<32x16xf32> to vector<32x16xbf16>
    %102 = vector.extract_strided_slice %7 {offsets = [0, 304], sizes = [32, 16], strides = [1, 1]} : vector<32x384xf32> to vector<32x16xf32>
    %103 = arith.truncf %102 : vector<32x16xf32> to vector<32x16xbf16>
    %104 = vector.extract_strided_slice %99 {offsets = [0, 0], sizes = [16, 16], strides = [1, 1]} : vector<32x16xbf16> to vector<16x16xbf16>
    %c3 = arith.constant 3 : index
    %c0_55 = arith.constant 0 : index
    %c0_56 = arith.constant 0 : index
    %105 = vector.load %arg15[%c3, %c0_55, %c0_56] : memref<16x16x16xbf16, #tpu.memory_space<vmem>>, vector<1x16x16xbf16>
    %106 = vector.shape_cast %105 : vector<1x16x16xbf16> to vector<16x16xbf16>
    %107 = vector.shape_cast %104 : vector<16x16xbf16> to vector<1x16x16xbf16>
    tpu.vector_store %arg15[%c3, %c0_55, %c0_56], %107 {strides = array<i32>} : memref<16x16x16xbf16, #tpu.memory_space<vmem>>, vector<1x16x16xbf16>,
    %108 = vector.extract_strided_slice %101 {offsets = [0, 0], sizes = [16, 16], strides = [1, 1]} : vector<32x16xbf16> to vector<16x16xbf16>
    %c3_57 = arith.constant 3 : index
    %c0_58 = arith.constant 0 : index
    %c0_59 = arith.constant 0 : index
    %109 = vector.load %arg16[%c3_57, %c0_58, %c0_59] : memref<16x16x16xbf16, #tpu.memory_space<vmem>>, vector<1x16x16xbf16>
    %110 = vector.shape_cast %109 : vector<1x16x16xbf16> to vector<16x16xbf16>
    %111 = vector.shape_cast %108 : vector<16x16xbf16> to vector<1x16x16xbf16>
    tpu.vector_store %arg16[%c3_57, %c0_58, %c0_59], %111 {strides = array<i32>} : memref<16x16x16xbf16, #tpu.memory_space<vmem>>, vector<1x16x16xbf16>,
    %112 = vector.extract_strided_slice %103 {offsets = [0, 0], sizes = [16, 16], strides = [1, 1]} : vector<32x16xbf16> to vector<16x16xbf16>
    %c3_60 = arith.constant 3 : index
    %c0_61 = arith.constant 0 : index
    %c0_62 = arith.constant 0 : index
    %113 = vector.load %arg17[%c3_60, %c0_61, %c0_62] : memref<16x16x16xbf16, #tpu.memory_space<vmem>>, vector<1x16x16xbf16>
    %114 = vector.shape_cast %113 : vector<1x16x16xbf16> to vector<16x16xbf16>
    %115 = vector.shape_cast %112 : vector<16x16xbf16> to vector<1x16x16xbf16>
    tpu.vector_store %arg17[%c3_60, %c0_61, %c0_62], %115 {strides = array<i32>} : memref<16x16x16xbf16, #tpu.memory_space<vmem>>, vector<1x16x16xbf16>,
    %116 = vector.extract_strided_slice %99 {offsets = [16, 0], sizes = [16, 16], strides = [1, 1]} : vector<32x16xbf16> to vector<16x16xbf16>
    %c11 = arith.constant 11 : index
    %c0_63 = arith.constant 0 : index
    %c0_64 = arith.constant 0 : index
    %117 = vector.load %arg15[%c11, %c0_63, %c0_64] : memref<16x16x16xbf16, #tpu.memory_space<vmem>>, vector<1x16x16xbf16>
    %118 = vector.shape_cast %117 : vector<1x16x16xbf16> to vector<16x16xbf16>
    %119 = vector.shape_cast %116 : vector<16x16xbf16> to vector<1x16x16xbf16>
    tpu.vector_store %arg15[%c11, %c0_63, %c0_64], %119 {strides = array<i32>} : memref<16x16x16xbf16, #tpu.memory_space<vmem>>, vector<1x16x16xbf16>,
    %120 = vector.extract_strided_slice %101 {offsets = [16, 0], sizes = [16, 16], strides = [1, 1]} : vector<32x16xbf16> to vector<16x16xbf16>
    %c11_65 = arith.constant 11 : index
    %c0_66 = arith.constant 0 : index
    %c0_67 = arith.constant 0 : index
    %121 = vector.load %arg16[%c11_65, %c0_66, %c0_67] : memref<16x16x16xbf16, #tpu.memory_space<vmem>>, vector<1x16x16xbf16>
    %122 = vector.shape_cast %121 : vector<1x16x16xbf16> to vector<16x16xbf16>
    %123 = vector.shape_cast %120 : vector<16x16xbf16> to vector<1x16x16xbf16>
    tpu.vector_store %arg16[%c11_65, %c0_66, %c0_67], %123 {strides = array<i32>} : memref<16x16x16xbf16, #tpu.memory_space<vmem>>, vector<1x16x16xbf16>,
    %124 = vector.extract_strided_slice %103 {offsets = [16, 0], sizes = [16, 16], strides = [1, 1]} : vector<32x16xbf16> to vector<16x16xbf16>
    %c11_68 = arith.constant 11 : index
    %c0_69 = arith.constant 0 : index
    %c0_70 = arith.constant 0 : index
    %125 = vector.load %arg17[%c11_68, %c0_69, %c0_70] : memref<16x16x16xbf16, #tpu.memory_space<vmem>>, vector<1x16x16xbf16>
    %126 = vector.shape_cast %125 : vector<1x16x16xbf16> to vector<16x16xbf16>
    %127 = vector.shape_cast %124 : vector<16x16xbf16> to vector<1x16x16xbf16>
    tpu.vector_store %arg17[%c11_68, %c0_69, %c0_70], %127 {strides = array<i32>} : memref<16x16x16xbf16, #tpu.memory_space<vmem>>, vector<1x16x16xbf16>,
    %128 = vector.extract_strided_slice %7 {offsets = [0, 64], sizes = [32, 16], strides = [1, 1]} : vector<32x384xf32> to vector<32x16xf32>
    %129 = arith.truncf %128 : vector<32x16xf32> to vector<32x16xbf16>
    %130 = vector.extract_strided_slice %7 {offsets = [0, 192], sizes = [32, 16], strides = [1, 1]} : vector<32x384xf32> to vector<32x16xf32>
    %131 = arith.truncf %130 : vector<32x16xf32> to vector<32x16xbf16>
    %132 = vector.extract_strided_slice %7 {offsets = [0, 320], sizes = [32, 16], strides = [1, 1]} : vector<32x384xf32> to vector<32x16xf32>
    %133 = arith.truncf %132 : vector<32x16xf32> to vector<32x16xbf16>
    %134 = vector.extract_strided_slice %129 {offsets = [0, 0], sizes = [16, 16], strides = [1, 1]} : vector<32x16xbf16> to vector<16x16xbf16>
    %c4 = arith.constant 4 : index
    %c0_71 = arith.constant 0 : index
    %c0_72 = arith.constant 0 : index
    %135 = vector.load %arg15[%c4, %c0_71, %c0_72] : memref<16x16x16xbf16, #tpu.memory_space<vmem>>, vector<1x16x16xbf16>
    %136 = vector.shape_cast %135 : vector<1x16x16xbf16> to vector<16x16xbf16>
    %137 = vector.shape_cast %134 : vector<16x16xbf16> to vector<1x16x16xbf16>
    tpu.vector_store %arg15[%c4, %c0_71, %c0_72], %137 {strides = array<i32>} : memref<16x16x16xbf16, #tpu.memory_space<vmem>>, vector<1x16x16xbf16>,
    %138 = vector.extract_strided_slice %131 {offsets = [0, 0], sizes = [16, 16], strides = [1, 1]} : vector<32x16xbf16> to vector<16x16xbf16>
    %c4_73 = arith.constant 4 : index
    %c0_74 = arith.constant 0 : index
    %c0_75 = arith.constant 0 : index
    %139 = vector.load %arg16[%c4_73, %c0_74, %c0_75] : memref<16x16x16xbf16, #tpu.memory_space<vmem>>, vector<1x16x16xbf16>
    %140 = vector.shape_cast %139 : vector<1x16x16xbf16> to vector<16x16xbf16>
    %141 = vector.shape_cast %138 : vector<16x16xbf16> to vector<1x16x16xbf16>
    tpu.vector_store %arg16[%c4_73, %c0_74, %c0_75], %141 {strides = array<i32>} : memref<16x16x16xbf16, #tpu.memory_space<vmem>>, vector<1x16x16xbf16>,
    %142 = vector.extract_strided_slice %133 {offsets = [0, 0], sizes = [16, 16], strides = [1, 1]} : vector<32x16xbf16> to vector<16x16xbf16>
    %c4_76 = arith.constant 4 : index
    %c0_77 = arith.constant 0 : index
    %c0_78 = arith.constant 0 : index
    %143 = vector.load %arg17[%c4_76, %c0_77, %c0_78] : memref<16x16x16xbf16, #tpu.memory_space<vmem>>, vector<1x16x16xbf16>
    %144 = vector.shape_cast %143 : vector<1x16x16xbf16> to vector<16x16xbf16>
    %145 = vector.shape_cast %142 : vector<16x16xbf16> to vector<1x16x16xbf16>
    tpu.vector_store %arg17[%c4_76, %c0_77, %c0_78], %145 {strides = array<i32>} : memref<16x16x16xbf16, #tpu.memory_space<vmem>>, vector<1x16x16xbf16>,
    %146 = vector.extract_strided_slice %129 {offsets = [16, 0], sizes = [16, 16], strides = [1, 1]} : vector<32x16xbf16> to vector<16x16xbf16>
    %c12 = arith.constant 12 : index
    %c0_79 = arith.constant 0 : index
    %c0_80 = arith.constant 0 : index
    %147 = vector.load %arg15[%c12, %c0_79, %c0_80] : memref<16x16x16xbf16, #tpu.memory_space<vmem>>, vector<1x16x16xbf16>
    %148 = vector.shape_cast %147 : vector<1x16x16xbf16> to vector<16x16xbf16>
    %149 = vector.shape_cast %146 : vector<16x16xbf16> to vector<1x16x16xbf16>
    tpu.vector_store %arg15[%c12, %c0_79, %c0_80], %149 {strides = array<i32>} : memref<16x16x16xbf16, #tpu.memory_space<vmem>>, vector<1x16x16xbf16>,
    %150 = vector.extract_strided_slice %131 {offsets = [16, 0], sizes = [16, 16], strides = [1, 1]} : vector<32x16xbf16> to vector<16x16xbf16>
    %c12_81 = arith.constant 12 : index
    %c0_82 = arith.constant 0 : index
    %c0_83 = arith.constant 0 : index
    %151 = vector.load %arg16[%c12_81, %c0_82, %c0_83] : memref<16x16x16xbf16, #tpu.memory_space<vmem>>, vector<1x16x16xbf16>
    %152 = vector.shape_cast %151 : vector<1x16x16xbf16> to vector<16x16xbf16>
    %153 = vector.shape_cast %150 : vector<16x16xbf16> to vector<1x16x16xbf16>
    tpu.vector_store %arg16[%c12_81, %c0_82, %c0_83], %153 {strides = array<i32>} : memref<16x16x16xbf16, #tpu.memory_space<vmem>>, vector<1x16x16xbf16>,
    %154 = vector.extract_strided_slice %133 {offsets = [16, 0], sizes = [16, 16], strides = [1, 1]} : vector<32x16xbf16> to vector<16x16xbf16>
    %c12_84 = arith.constant 12 : index
    %c0_85 = arith.constant 0 : index
    %c0_86 = arith.constant 0 : index
    %155 = vector.load %arg17[%c12_84, %c0_85, %c0_86] : memref<16x16x16xbf16, #tpu.memory_space<vmem>>, vector<1x16x16xbf16>
    %156 = vector.shape_cast %155 : vector<1x16x16xbf16> to vector<16x16xbf16>
    %157 = vector.shape_cast %154 : vector<16x16xbf16> to vector<1x16x16xbf16>
    tpu.vector_store %arg17[%c12_84, %c0_85, %c0_86], %157 {strides = array<i32>} : memref<16x16x16xbf16, #tpu.memory_space<vmem>>, vector<1x16x16xbf16>,
    %158 = vector.extract_strided_slice %7 {offsets = [0, 80], sizes = [32, 16], strides = [1, 1]} : vector<32x384xf32> to vector<32x16xf32>
    %159 = arith.truncf %158 : vector<32x16xf32> to vector<32x16xbf16>
    %160 = vector.extract_strided_slice %7 {offsets = [0, 208], sizes = [32, 16], strides = [1, 1]} : vector<32x384xf32> to vector<32x16xf32>
    %161 = arith.truncf %160 : vector<32x16xf32> to vector<32x16xbf16>
    %162 = vector.extract_strided_slice %7 {offsets = [0, 336], sizes = [32, 16], strides = [1, 1]} : vector<32x384xf32> to vector<32x16xf32>
    %163 = arith.truncf %162 : vector<32x16xf32> to vector<32x16xbf16>
    %164 = vector.extract_strided_slice %159 {offsets = [0, 0], sizes = [16, 16], strides = [1, 1]} : vector<32x16xbf16> to vector<16x16xbf16>
    %c5 = arith.constant 5 : index
    %c0_87 = arith.constant 0 : index
    %c0_88 = arith.constant 0 : index
    %165 = vector.load %arg15[%c5, %c0_87, %c0_88] : memref<16x16x16xbf16, #tpu.memory_space<vmem>>, vector<1x16x16xbf16>
    %166 = vector.shape_cast %165 : vector<1x16x16xbf16> to vector<16x16xbf16>
    %167 = vector.shape_cast %164 : vector<16x16xbf16> to vector<1x16x16xbf16>
    tpu.vector_store %arg15[%c5, %c0_87, %c0_88], %167 {strides = array<i32>} : memref<16x16x16xbf16, #tpu.memory_space<vmem>>, vector<1x16x16xbf16>,
    %168 = vector.extract_strided_slice %161 {offsets = [0, 0], sizes = [16, 16], strides = [1, 1]} : vector<32x16xbf16> to vector<16x16xbf16>
    %c5_89 = arith.constant 5 : index
    %c0_90 = arith.constant 0 : index
    %c0_91 = arith.constant 0 : index
    %169 = vector.load %arg16[%c5_89, %c0_90, %c0_91] : memref<16x16x16xbf16, #tpu.memory_space<vmem>>, vector<1x16x16xbf16>
    %170 = vector.shape_cast %169 : vector<1x16x16xbf16> to vector<16x16xbf16>
    %171 = vector.shape_cast %168 : vector<16x16xbf16> to vector<1x16x16xbf16>
    tpu.vector_store %arg16[%c5_89, %c0_90, %c0_91], %171 {strides = array<i32>} : memref<16x16x16xbf16, #tpu.memory_space<vmem>>, vector<1x16x16xbf16>,
    %172 = vector.extract_strided_slice %163 {offsets = [0, 0], sizes = [16, 16], strides = [1, 1]} : vector<32x16xbf16> to vector<16x16xbf16>
    %c5_92 = arith.constant 5 : index
    %c0_93 = arith.constant 0 : index
    %c0_94 = arith.constant 0 : index
    %173 = vector.load %arg17[%c5_92, %c0_93, %c0_94] : memref<16x16x16xbf16, #tpu.memory_space<vmem>>, vector<1x16x16xbf16>
    %174 = vector.shape_cast %173 : vector<1x16x16xbf16> to vector<16x16xbf16>
    %175 = vector.shape_cast %172 : vector<16x16xbf16> to vector<1x16x16xbf16>
    tpu.vector_store %arg17[%c5_92, %c0_93, %c0_94], %175 {strides = array<i32>} : memref<16x16x16xbf16, #tpu.memory_space<vmem>>, vector<1x16x16xbf16>,
    %176 = vector.extract_strided_slice %159 {offsets = [16, 0], sizes = [16, 16], strides = [1, 1]} : vector<32x16xbf16> to vector<16x16xbf16>
    %c13 = arith.constant 13 : index
    %c0_95 = arith.constant 0 : index
    %c0_96 = arith.constant 0 : index
    %177 = vector.load %arg15[%c13, %c0_95, %c0_96] : memref<16x16x16xbf16, #tpu.memory_space<vmem>>, vector<1x16x16xbf16>
    %178 = vector.shape_cast %177 : vector<1x16x16xbf16> to vector<16x16xbf16>
    %179 = vector.shape_cast %176 : vector<16x16xbf16> to vector<1x16x16xbf16>
    tpu.vector_store %arg15[%c13, %c0_95, %c0_96], %179 {strides = array<i32>} : memref<16x16x16xbf16, #tpu.memory_space<vmem>>, vector<1x16x16xbf16>,
    %180 = vector.extract_strided_slice %161 {offsets = [16, 0], sizes = [16, 16], strides = [1, 1]} : vector<32x16xbf16> to vector<16x16xbf16>
    %c13_97 = arith.constant 13 : index
    %c0_98 = arith.constant 0 : index
    %c0_99 = arith.constant 0 : index
    %181 = vector.load %arg16[%c13_97, %c0_98, %c0_99] : memref<16x16x16xbf16, #tpu.memory_space<vmem>>, vector<1x16x16xbf16>
    %182 = vector.shape_cast %181 : vector<1x16x16xbf16> to vector<16x16xbf16>
    %183 = vector.shape_cast %180 : vector<16x16xbf16> to vector<1x16x16xbf16>
    tpu.vector_store %arg16[%c13_97, %c0_98, %c0_99], %183 {strides = array<i32>} : memref<16x16x16xbf16, #tpu.memory_space<vmem>>, vector<1x16x16xbf16>,
    %184 = vector.extract_strided_slice %163 {offsets = [16, 0], sizes = [16, 16], strides = [1, 1]} : vector<32x16xbf16> to vector<16x16xbf16>
    %c13_100 = arith.constant 13 : index
    %c0_101 = arith.constant 0 : index
    %c0_102 = arith.constant 0 : index
    %185 = vector.load %arg17[%c13_100, %c0_101, %c0_102] : memref<16x16x16xbf16, #tpu.memory_space<vmem>>, vector<1x16x16xbf16>
    %186 = vector.shape_cast %185 : vector<1x16x16xbf16> to vector<16x16xbf16>
    %187 = vector.shape_cast %184 : vector<16x16xbf16> to vector<1x16x16xbf16>
    tpu.vector_store %arg17[%c13_100, %c0_101, %c0_102], %187 {strides = array<i32>} : memref<16x16x16xbf16, #tpu.memory_space<vmem>>, vector<1x16x16xbf16>,
    %188 = vector.extract_strided_slice %7 {offsets = [0, 96], sizes = [32, 16], strides = [1, 1]} : vector<32x384xf32> to vector<32x16xf32>
    %189 = arith.truncf %188 : vector<32x16xf32> to vector<32x16xbf16>
    %190 = vector.extract_strided_slice %7 {offsets = [0, 224], sizes = [32, 16], strides = [1, 1]} : vector<32x384xf32> to vector<32x16xf32>
    %191 = arith.truncf %190 : vector<32x16xf32> to vector<32x16xbf16>
    %192 = vector.extract_strided_slice %7 {offsets = [0, 352], sizes = [32, 16], strides = [1, 1]} : vector<32x384xf32> to vector<32x16xf32>
    %193 = arith.truncf %192 : vector<32x16xf32> to vector<32x16xbf16>
    %194 = vector.extract_strided_slice %189 {offsets = [0, 0], sizes = [16, 16], strides = [1, 1]} : vector<32x16xbf16> to vector<16x16xbf16>
    %c6 = arith.constant 6 : index
    %c0_103 = arith.constant 0 : index
    %c0_104 = arith.constant 0 : index
    %195 = vector.load %arg15[%c6, %c0_103, %c0_104] : memref<16x16x16xbf16, #tpu.memory_space<vmem>>, vector<1x16x16xbf16>
    %196 = vector.shape_cast %195 : vector<1x16x16xbf16> to vector<16x16xbf16>
    %197 = vector.shape_cast %194 : vector<16x16xbf16> to vector<1x16x16xbf16>
    tpu.vector_store %arg15[%c6, %c0_103, %c0_104], %197 {strides = array<i32>} : memref<16x16x16xbf16, #tpu.memory_space<vmem>>, vector<1x16x16xbf16>,
    %198 = vector.extract_strided_slice %191 {offsets = [0, 0], sizes = [16, 16], strides = [1, 1]} : vector<32x16xbf16> to vector<16x16xbf16>
    %c6_105 = arith.constant 6 : index
    %c0_106 = arith.constant 0 : index
    %c0_107 = arith.constant 0 : index
    %199 = vector.load %arg16[%c6_105, %c0_106, %c0_107] : memref<16x16x16xbf16, #tpu.memory_space<vmem>>, vector<1x16x16xbf16>
    %200 = vector.shape_cast %199 : vector<1x16x16xbf16> to vector<16x16xbf16>
    %201 = vector.shape_cast %198 : vector<16x16xbf16> to vector<1x16x16xbf16>
    tpu.vector_store %arg16[%c6_105, %c0_106, %c0_107], %201 {strides = array<i32>} : memref<16x16x16xbf16, #tpu.memory_space<vmem>>, vector<1x16x16xbf16>,
    %202 = vector.extract_strided_slice %193 {offsets = [0, 0], sizes = [16, 16], strides = [1, 1]} : vector<32x16xbf16> to vector<16x16xbf16>
    %c6_108 = arith.constant 6 : index
    %c0_109 = arith.constant 0 : index
    %c0_110 = arith.constant 0 : index
    %203 = vector.load %arg17[%c6_108, %c0_109, %c0_110] : memref<16x16x16xbf16, #tpu.memory_space<vmem>>, vector<1x16x16xbf16>
    %204 = vector.shape_cast %203 : vector<1x16x16xbf16> to vector<16x16xbf16>
    %205 = vector.shape_cast %202 : vector<16x16xbf16> to vector<1x16x16xbf16>
    tpu.vector_store %arg17[%c6_108, %c0_109, %c0_110], %205 {strides = array<i32>} : memref<16x16x16xbf16, #tpu.memory_space<vmem>>, vector<1x16x16xbf16>,
    %206 = vector.extract_strided_slice %189 {offsets = [16, 0], sizes = [16, 16], strides = [1, 1]} : vector<32x16xbf16> to vector<16x16xbf16>
    %c14 = arith.constant 14 : index
    %c0_111 = arith.constant 0 : index
    %c0_112 = arith.constant 0 : index
    %207 = vector.load %arg15[%c14, %c0_111, %c0_112] : memref<16x16x16xbf16, #tpu.memory_space<vmem>>, vector<1x16x16xbf16>
    %208 = vector.shape_cast %207 : vector<1x16x16xbf16> to vector<16x16xbf16>
    %209 = vector.shape_cast %206 : vector<16x16xbf16> to vector<1x16x16xbf16>
    tpu.vector_store %arg15[%c14, %c0_111, %c0_112], %209 {strides = array<i32>} : memref<16x16x16xbf16, #tpu.memory_space<vmem>>, vector<1x16x16xbf16>,
    %210 = vector.extract_strided_slice %191 {offsets = [16, 0], sizes = [16, 16], strides = [1, 1]} : vector<32x16xbf16> to vector<16x16xbf16>
    %c14_113 = arith.constant 14 : index
    %c0_114 = arith.constant 0 : index
    %c0_115 = arith.constant 0 : index
    %211 = vector.load %arg16[%c14_113, %c0_114, %c0_115] : memref<16x16x16xbf16, #tpu.memory_space<vmem>>, vector<1x16x16xbf16>
    %212 = vector.shape_cast %211 : vector<1x16x16xbf16> to vector<16x16xbf16>
    %213 = vector.shape_cast %210 : vector<16x16xbf16> to vector<1x16x16xbf16>
    tpu.vector_store %arg16[%c14_113, %c0_114, %c0_115], %213 {strides = array<i32>} : memref<16x16x16xbf16, #tpu.memory_space<vmem>>, vector<1x16x16xbf16>,
    %214 = vector.extract_strided_slice %193 {offsets = [16, 0], sizes = [16, 16], strides = [1, 1]} : vector<32x16xbf16> to vector<16x16xbf16>
    %c14_116 = arith.constant 14 : index
    %c0_117 = arith.constant 0 : index
    %c0_118 = arith.constant 0 : index
    %215 = vector.load %arg17[%c14_116, %c0_117, %c0_118] : memref<16x16x16xbf16, #tpu.memory_space<vmem>>, vector<1x16x16xbf16>
    %216 = vector.shape_cast %215 : vector<1x16x16xbf16> to vector<16x16xbf16>
    %217 = vector.shape_cast %214 : vector<16x16xbf16> to vector<1x16x16xbf16>
    tpu.vector_store %arg17[%c14_116, %c0_117, %c0_118], %217 {strides = array<i32>} : memref<16x16x16xbf16, #tpu.memory_space<vmem>>, vector<1x16x16xbf16>,
    %218 = vector.extract_strided_slice %7 {offsets = [0, 112], sizes = [32, 16], strides = [1, 1]} : vector<32x384xf32> to vector<32x16xf32>
    %219 = arith.truncf %218 : vector<32x16xf32> to vector<32x16xbf16>
    %220 = vector.extract_strided_slice %7 {offsets = [0, 240], sizes = [32, 16], strides = [1, 1]} : vector<32x384xf32> to vector<32x16xf32>
    %221 = arith.truncf %220 : vector<32x16xf32> to vector<32x16xbf16>
    %222 = vector.extract_strided_slice %7 {offsets = [0, 368], sizes = [32, 16], strides = [1, 1]} : vector<32x384xf32> to vector<32x16xf32>
    %223 = arith.truncf %222 : vector<32x16xf32> to vector<32x16xbf16>
    %224 = vector.extract_strided_slice %219 {offsets = [0, 0], sizes = [16, 16], strides = [1, 1]} : vector<32x16xbf16> to vector<16x16xbf16>
    %c7 = arith.constant 7 : index
    %c0_119 = arith.constant 0 : index
    %c0_120 = arith.constant 0 : index
    %225 = vector.load %arg15[%c7, %c0_119, %c0_120] : memref<16x16x16xbf16, #tpu.memory_space<vmem>>, vector<1x16x16xbf16>
    %226 = vector.shape_cast %225 : vector<1x16x16xbf16> to vector<16x16xbf16>
    %227 = vector.shape_cast %224 : vector<16x16xbf16> to vector<1x16x16xbf16>
    tpu.vector_store %arg15[%c7, %c0_119, %c0_120], %227 {strides = array<i32>} : memref<16x16x16xbf16, #tpu.memory_space<vmem>>, vector<1x16x16xbf16>,
    %228 = vector.extract_strided_slice %221 {offsets = [0, 0], sizes = [16, 16], strides = [1, 1]} : vector<32x16xbf16> to vector<16x16xbf16>
    %c7_121 = arith.constant 7 : index
    %c0_122 = arith.constant 0 : index
    %c0_123 = arith.constant 0 : index
    %229 = vector.load %arg16[%c7_121, %c0_122, %c0_123] : memref<16x16x16xbf16, #tpu.memory_space<vmem>>, vector<1x16x16xbf16>
    %230 = vector.shape_cast %229 : vector<1x16x16xbf16> to vector<16x16xbf16>
    %231 = vector.shape_cast %228 : vector<16x16xbf16> to vector<1x16x16xbf16>
    tpu.vector_store %arg16[%c7_121, %c0_122, %c0_123], %231 {strides = array<i32>} : memref<16x16x16xbf16, #tpu.memory_space<vmem>>, vector<1x16x16xbf16>,
    %232 = vector.extract_strided_slice %223 {offsets = [0, 0], sizes = [16, 16], strides = [1, 1]} : vector<32x16xbf16> to vector<16x16xbf16>
    %c7_124 = arith.constant 7 : index
    %c0_125 = arith.constant 0 : index
    %c0_126 = arith.constant 0 : index
    %233 = vector.load %arg17[%c7_124, %c0_125, %c0_126] : memref<16x16x16xbf16, #tpu.memory_space<vmem>>, vector<1x16x16xbf16>
    %234 = vector.shape_cast %233 : vector<1x16x16xbf16> to vector<16x16xbf16>
    %235 = vector.shape_cast %232 : vector<16x16xbf16> to vector<1x16x16xbf16>
    tpu.vector_store %arg17[%c7_124, %c0_125, %c0_126], %235 {strides = array<i32>} : memref<16x16x16xbf16, #tpu.memory_space<vmem>>, vector<1x16x16xbf16>,
    %236 = vector.extract_strided_slice %219 {offsets = [16, 0], sizes = [16, 16], strides = [1, 1]} : vector<32x16xbf16> to vector<16x16xbf16>
    %c15 = arith.constant 15 : index
    %c0_127 = arith.constant 0 : index
    %c0_128 = arith.constant 0 : index
    %237 = vector.load %arg15[%c15, %c0_127, %c0_128] : memref<16x16x16xbf16, #tpu.memory_space<vmem>>, vector<1x16x16xbf16>
    %238 = vector.shape_cast %237 : vector<1x16x16xbf16> to vector<16x16xbf16>
    %239 = vector.shape_cast %236 : vector<16x16xbf16> to vector<1x16x16xbf16>
    tpu.vector_store %arg15[%c15, %c0_127, %c0_128], %239 {strides = array<i32>} : memref<16x16x16xbf16, #tpu.memory_space<vmem>>, vector<1x16x16xbf16>,
    %240 = vector.extract_strided_slice %221 {offsets = [16, 0], sizes = [16, 16], strides = [1, 1]} : vector<32x16xbf16> to vector<16x16xbf16>
    %c15_129 = arith.constant 15 : index
    %c0_130 = arith.constant 0 : index
    %c0_131 = arith.constant 0 : index
    %241 = vector.load %arg16[%c15_129, %c0_130, %c0_131] : memref<16x16x16xbf16, #tpu.memory_space<vmem>>, vector<1x16x16xbf16>
    %242 = vector.shape_cast %241 : vector<1x16x16xbf16> to vector<16x16xbf16>
    %243 = vector.shape_cast %240 : vector<16x16xbf16> to vector<1x16x16xbf16>
    tpu.vector_store %arg16[%c15_129, %c0_130, %c0_131], %243 {strides = array<i32>} : memref<16x16x16xbf16, #tpu.memory_space<vmem>>, vector<1x16x16xbf16>,
    %244 = vector.extract_strided_slice %223 {offsets = [16, 0], sizes = [16, 16], strides = [1, 1]} : vector<32x16xbf16> to vector<16x16xbf16>
    %c15_132 = arith.constant 15 : index
    %c0_133 = arith.constant 0 : index
    %c0_134 = arith.constant 0 : index
    %245 = vector.load %arg17[%c15_132, %c0_133, %c0_134] : memref<16x16x16xbf16, #tpu.memory_space<vmem>>, vector<1x16x16xbf16>
    %246 = vector.shape_cast %245 : vector<1x16x16xbf16> to vector<16x16xbf16>
    %247 = vector.shape_cast %244 : vector<16x16xbf16> to vector<1x16x16xbf16>
    tpu.vector_store %arg17[%c15_132, %c0_133, %c0_134], %247 {strides = array<i32>} : memref<16x16x16xbf16, #tpu.memory_space<vmem>>, vector<1x16x16xbf16>,
    %c0_135 = arith.constant 0 : index
    %c0_136 = arith.constant 0 : index
    %c0_137 = arith.constant 0 : index
    %248 = vector.load %arg15[%c0_135, %c0_136, %c0_137] : memref<16x16x16xbf16, #tpu.memory_space<vmem>>, vector<16x16x16xbf16>
    %c0_138 = arith.constant 0 : index
    %c0_139 = arith.constant 0 : index
    %c0_140 = arith.constant 0 : index
    %249 = vector.load %arg16[%c0_138, %c0_139, %c0_140] : memref<16x16x16xbf16, #tpu.memory_space<vmem>>, vector<16x16x16xbf16>
    %c0_141 = arith.constant 0 : index
    %c0_142 = arith.constant 0 : index
    %c0_143 = arith.constant 0 : index
    %250 = vector.load %arg17[%c0_141, %c0_142, %c0_143] : memref<16x16x16xbf16, #tpu.memory_space<vmem>>, vector<16x16x16xbf16>
    "tpu.trace_start"() <{level = 10 : i32, message = "hqd,hkd->hqk"}> : () -> ()
    %cst_144 = arith.constant dense<0.000000e+00> : vector<16x16x16xf32>
    %251 = tpu.matmul %248, %249, %cst_144 {dimension_numbers = #tpu.dot_dimension_numbers<[2], [2], [1], [1], [0, 0, 0, 1, 1, 1], [0], [0]>} : vector<16x16x16xbf16>, vector<16x16x16xbf16>, vector<16x16x16xf32> -> vector<16x16x16xf32>
    "tpu.trace_stop"() : () -> ()
    %cst_145 = arith.constant dense<0xFF800000> : vector<16x16xf32>
    %252 = vector.multi_reduction <maximumf>, %251, %cst_145 [2] : vector<16x16x16xf32> to vector<16x16xf32>
    %253 = vector.shape_cast %252 : vector<16x16xf32> to vector<16x16x1xf32>
    %254 = vector.broadcast %253 : vector<16x16x1xf32> to vector<16x16x16xf32>
    %255 = arith.subf %251, %254 : vector<16x16x16xf32>
    %256 = math.exp %255 : vector<16x16x16xf32>
    %cst_146 = arith.constant dense<0.000000e+00> : vector<16x16xf32>
    %257 = vector.multi_reduction <add>, %256, %cst_146 [2] : vector<16x16x16xf32> to vector<16x16xf32>
    %258 = vector.shape_cast %257 : vector<16x16xf32> to vector<16x16x1xf32>
    %259 = vector.broadcast %258 : vector<16x16x1xf32> to vector<16x16x16xf32>
    %260 = arith.divf %256, %259 : vector<16x16x16xf32>
    %261 = arith.truncf %260 : vector<16x16x16xf32> to vector<16x16x16xbf16>
    "tpu.trace_start"() <{level = 10 : i32, message = "hqk,hkd->hqd"}> : () -> ()
    %cst_147 = arith.constant dense<0.000000e+00> : vector<16x16x16xf32>
    %262 = tpu.matmul %261, %250, %cst_147 {dimension_numbers = #tpu.dot_dimension_numbers<[2], [1], [1], [2], [0, 0, 0, 1, 1, 2], [0], [0]>} : vector<16x16x16xbf16>, vector<16x16x16xbf16>, vector<16x16x16xf32> -> vector<16x16x16xf32>
    "tpu.trace_stop"() : () -> ()
    %263 = vector.extract_strided_slice %262 {offsets = [0, 0, 0], sizes = [1, 16, 16], strides = [1, 1, 1]} : vector<16x16x16xf32> to vector<1x16x16xf32>
    %264 = vector.shape_cast %263 : vector<1x16x16xf32> to vector<16x16xf32>
    %265 = arith.truncf %264 : vector<16x16xf32> to vector<16x16xbf16>
    %c0_148 = arith.constant 0 : index
    %c0_149 = arith.constant 0 : index
    %266 = vector.load %arg18[%c0_148, %c0_149] : memref<32x128xbf16, #tpu.memory_space<vmem>>, vector<16x16xbf16>
    tpu.vector_store %arg18[%c0_148, %c0_149], %265 {strides = array<i32>} : memref<32x128xbf16, #tpu.memory_space<vmem>>, vector<16x16xbf16>,
    %267 = vector.extract_strided_slice %262 {offsets = [8, 0, 0], sizes = [1, 16, 16], strides = [1, 1, 1]} : vector<16x16x16xf32> to vector<1x16x16xf32>
    %268 = vector.shape_cast %267 : vector<1x16x16xf32> to vector<16x16xf32>
    %269 = arith.truncf %268 : vector<16x16xf32> to vector<16x16xbf16>
    %c16 = arith.constant 16 : index
    %c0_150 = arith.constant 0 : index
    %270 = vector.load %arg18[%c16, %c0_150] : memref<32x128xbf16, #tpu.memory_space<vmem>>, vector<16x16xbf16>
    tpu.vector_store %arg18[%c16, %c0_150], %269 {strides = array<i32>} : memref<32x128xbf16, #tpu.memory_space<vmem>>, vector<16x16xbf16>,
    %271 = vector.extract_strided_slice %262 {offsets = [1, 0, 0], sizes = [1, 16, 16], strides = [1, 1, 1]} : vector<16x16x16xf32> to vector<1x16x16xf32>
    %272 = vector.shape_cast %271 : vector<1x16x16xf32> to vector<16x16xf32>
    %273 = arith.truncf %272 : vector<16x16xf32> to vector<16x16xbf16>
    %c0_151 = arith.constant 0 : index
    %c16_152 = arith.constant 16 : index
    %274 = vector.load %arg18[%c0_151, %c16_152] : memref<32x128xbf16, #tpu.memory_space<vmem>>, vector<16x16xbf16>
    tpu.vector_store %arg18[%c0_151, %c16_152], %273 {strides = array<i32>} : memref<32x128xbf16, #tpu.memory_space<vmem>>, vector<16x16xbf16>,
    %275 = vector.extract_strided_slice %262 {offsets = [9, 0, 0], sizes = [1, 16, 16], strides = [1, 1, 1]} : vector<16x16x16xf32> to vector<1x16x16xf32>
    %276 = vector.shape_cast %275 : vector<1x16x16xf32> to vector<16x16xf32>
    %277 = arith.truncf %276 : vector<16x16xf32> to vector<16x16xbf16>
    %c16_153 = arith.constant 16 : index
    %c16_154 = arith.constant 16 : index
    %278 = vector.load %arg18[%c16_153, %c16_154] : memref<32x128xbf16, #tpu.memory_space<vmem>>, vector<16x16xbf16>
    tpu.vector_store %arg18[%c16_153, %c16_154], %277 {strides = array<i32>} : memref<32x128xbf16, #tpu.memory_space<vmem>>, vector<16x16xbf16>,
    %279 = vector.extract_strided_slice %262 {offsets = [2, 0, 0], sizes = [1, 16, 16], strides = [1, 1, 1]} : vector<16x16x16xf32> to vector<1x16x16xf32>
    %280 = vector.shape_cast %279 : vector<1x16x16xf32> to vector<16x16xf32>
    %281 = arith.truncf %280 : vector<16x16xf32> to vector<16x16xbf16>
    %c0_155 = arith.constant 0 : index
    %c32 = arith.constant 32 : index
    %282 = vector.load %arg18[%c0_155, %c32] : memref<32x128xbf16, #tpu.memory_space<vmem>>, vector<16x16xbf16>
    tpu.vector_store %arg18[%c0_155, %c32], %281 {strides = array<i32>} : memref<32x128xbf16, #tpu.memory_space<vmem>>, vector<16x16xbf16>,
    %283 = vector.extract_strided_slice %262 {offsets = [10, 0, 0], sizes = [1, 16, 16], strides = [1, 1, 1]} : vector<16x16x16xf32> to vector<1x16x16xf32>
    %284 = vector.shape_cast %283 : vector<1x16x16xf32> to vector<16x16xf32>
    %285 = arith.truncf %284 : vector<16x16xf32> to vector<16x16xbf16>
    %c16_156 = arith.constant 16 : index
    %c32_157 = arith.constant 32 : index
    %286 = vector.load %arg18[%c16_156, %c32_157] : memref<32x128xbf16, #tpu.memory_space<vmem>>, vector<16x16xbf16>
    tpu.vector_store %arg18[%c16_156, %c32_157], %285 {strides = array<i32>} : memref<32x128xbf16, #tpu.memory_space<vmem>>, vector<16x16xbf16>,
    %287 = vector.extract_strided_slice %262 {offsets = [3, 0, 0], sizes = [1, 16, 16], strides = [1, 1, 1]} : vector<16x16x16xf32> to vector<1x16x16xf32>
    %288 = vector.shape_cast %287 : vector<1x16x16xf32> to vector<16x16xf32>
    %289 = arith.truncf %288 : vector<16x16xf32> to vector<16x16xbf16>
    %c0_158 = arith.constant 0 : index
    %c48 = arith.constant 48 : index
    %290 = vector.load %arg18[%c0_158, %c48] : memref<32x128xbf16, #tpu.memory_space<vmem>>, vector<16x16xbf16>
    tpu.vector_store %arg18[%c0_158, %c48], %289 {strides = array<i32>} : memref<32x128xbf16, #tpu.memory_space<vmem>>, vector<16x16xbf16>,
    %291 = vector.extract_strided_slice %262 {offsets = [11, 0, 0], sizes = [1, 16, 16], strides = [1, 1, 1]} : vector<16x16x16xf32> to vector<1x16x16xf32>
    %292 = vector.shape_cast %291 : vector<1x16x16xf32> to vector<16x16xf32>
    %293 = arith.truncf %292 : vector<16x16xf32> to vector<16x16xbf16>
    %c16_159 = arith.constant 16 : index
    %c48_160 = arith.constant 48 : index
    %294 = vector.load %arg18[%c16_159, %c48_160] : memref<32x128xbf16, #tpu.memory_space<vmem>>, vector<16x16xbf16>
    tpu.vector_store %arg18[%c16_159, %c48_160], %293 {strides = array<i32>} : memref<32x128xbf16, #tpu.memory_space<vmem>>, vector<16x16xbf16>,
    %295 = vector.extract_strided_slice %262 {offsets = [4, 0, 0], sizes = [1, 16, 16], strides = [1, 1, 1]} : vector<16x16x16xf32> to vector<1x16x16xf32>
    %296 = vector.shape_cast %295 : vector<1x16x16xf32> to vector<16x16xf32>
    %297 = arith.truncf %296 : vector<16x16xf32> to vector<16x16xbf16>
    %c0_161 = arith.constant 0 : index
    %c64 = arith.constant 64 : index
    %298 = vector.load %arg18[%c0_161, %c64] : memref<32x128xbf16, #tpu.memory_space<vmem>>, vector<16x16xbf16>
    tpu.vector_store %arg18[%c0_161, %c64], %297 {strides = array<i32>} : memref<32x128xbf16, #tpu.memory_space<vmem>>, vector<16x16xbf16>,
    %299 = vector.extract_strided_slice %262 {offsets = [12, 0, 0], sizes = [1, 16, 16], strides = [1, 1, 1]} : vector<16x16x16xf32> to vector<1x16x16xf32>
    %300 = vector.shape_cast %299 : vector<1x16x16xf32> to vector<16x16xf32>
    %301 = arith.truncf %300 : vector<16x16xf32> to vector<16x16xbf16>
    %c16_162 = arith.constant 16 : index
    %c64_163 = arith.constant 64 : index
    %302 = vector.load %arg18[%c16_162, %c64_163] : memref<32x128xbf16, #tpu.memory_space<vmem>>, vector<16x16xbf16>
    tpu.vector_store %arg18[%c16_162, %c64_163], %301 {strides = array<i32>} : memref<32x128xbf16, #tpu.memory_space<vmem>>, vector<16x16xbf16>,
    %303 = vector.extract_strided_slice %262 {offsets = [5, 0, 0], sizes = [1, 16, 16], strides = [1, 1, 1]} : vector<16x16x16xf32> to vector<1x16x16xf32>
    %304 = vector.shape_cast %303 : vector<1x16x16xf32> to vector<16x16xf32>
    %305 = arith.truncf %304 : vector<16x16xf32> to vector<16x16xbf16>
    %c0_164 = arith.constant 0 : index
    %c80 = arith.constant 80 : index
    %306 = vector.load %arg18[%c0_164, %c80] : memref<32x128xbf16, #tpu.memory_space<vmem>>, vector<16x16xbf16>
    tpu.vector_store %arg18[%c0_164, %c80], %305 {strides = array<i32>} : memref<32x128xbf16, #tpu.memory_space<vmem>>, vector<16x16xbf16>,
    %307 = vector.extract_strided_slice %262 {offsets = [13, 0, 0], sizes = [1, 16, 16], strides = [1, 1, 1]} : vector<16x16x16xf32> to vector<1x16x16xf32>
    %308 = vector.shape_cast %307 : vector<1x16x16xf32> to vector<16x16xf32>
    %309 = arith.truncf %308 : vector<16x16xf32> to vector<16x16xbf16>
    %c16_165 = arith.constant 16 : index
    %c80_166 = arith.constant 80 : index
    %310 = vector.load %arg18[%c16_165, %c80_166] : memref<32x128xbf16, #tpu.memory_space<vmem>>, vector<16x16xbf16>
    tpu.vector_store %arg18[%c16_165, %c80_166], %309 {strides = array<i32>} : memref<32x128xbf16, #tpu.memory_space<vmem>>, vector<16x16xbf16>,
    %311 = vector.extract_strided_slice %262 {offsets = [6, 0, 0], sizes = [1, 16, 16], strides = [1, 1, 1]} : vector<16x16x16xf32> to vector<1x16x16xf32>
    %312 = vector.shape_cast %311 : vector<1x16x16xf32> to vector<16x16xf32>
    %313 = arith.truncf %312 : vector<16x16xf32> to vector<16x16xbf16>
    %c0_167 = arith.constant 0 : index
    %c96 = arith.constant 96 : index
    %314 = vector.load %arg18[%c0_167, %c96] : memref<32x128xbf16, #tpu.memory_space<vmem>>, vector<16x16xbf16>
    tpu.vector_store %arg18[%c0_167, %c96], %313 {strides = array<i32>} : memref<32x128xbf16, #tpu.memory_space<vmem>>, vector<16x16xbf16>,
    %315 = vector.extract_strided_slice %262 {offsets = [14, 0, 0], sizes = [1, 16, 16], strides = [1, 1, 1]} : vector<16x16x16xf32> to vector<1x16x16xf32>
    %316 = vector.shape_cast %315 : vector<1x16x16xf32> to vector<16x16xf32>
    %317 = arith.truncf %316 : vector<16x16xf32> to vector<16x16xbf16>
    %c16_168 = arith.constant 16 : index
    %c96_169 = arith.constant 96 : index
    %318 = vector.load %arg18[%c16_168, %c96_169] : memref<32x128xbf16, #tpu.memory_space<vmem>>, vector<16x16xbf16>
    tpu.vector_store %arg18[%c16_168, %c96_169], %317 {strides = array<i32>} : memref<32x128xbf16, #tpu.memory_space<vmem>>, vector<16x16xbf16>,
    %319 = vector.extract_strided_slice %262 {offsets = [7, 0, 0], sizes = [1, 16, 16], strides = [1, 1, 1]} : vector<16x16x16xf32> to vector<1x16x16xf32>
    %320 = vector.shape_cast %319 : vector<1x16x16xf32> to vector<16x16xf32>
    %321 = arith.truncf %320 : vector<16x16xf32> to vector<16x16xbf16>
    %c0_170 = arith.constant 0 : index
    %c112 = arith.constant 112 : index
    %322 = vector.load %arg18[%c0_170, %c112] : memref<32x128xbf16, #tpu.memory_space<vmem>>, vector<16x16xbf16>
    tpu.vector_store %arg18[%c0_170, %c112], %321 {strides = array<i32>} : memref<32x128xbf16, #tpu.memory_space<vmem>>, vector<16x16xbf16>,
    %323 = vector.extract_strided_slice %262 {offsets = [15, 0, 0], sizes = [1, 16, 16], strides = [1, 1, 1]} : vector<16x16x16xf32> to vector<1x16x16xf32>
    %324 = vector.shape_cast %323 : vector<1x16x16xf32> to vector<16x16xf32>
    %325 = arith.truncf %324 : vector<16x16xf32> to vector<16x16xbf16>
    %c16_171 = arith.constant 16 : index
    %c112_172 = arith.constant 112 : index
    %326 = vector.load %arg18[%c16_171, %c112_172] : memref<32x128xbf16, #tpu.memory_space<vmem>>, vector<16x16xbf16>
    tpu.vector_store %arg18[%c16_171, %c112_172], %325 {strides = array<i32>} : memref<32x128xbf16, #tpu.memory_space<vmem>>, vector<16x16xbf16>,
    %c0_173 = arith.constant 0 : index
    %c0_174 = arith.constant 0 : index
    %327 = vector.load %arg18[%c0_173, %c0_174] : memref<32x128xbf16, #tpu.memory_space<vmem>>, vector<32x128xbf16>
    %c0_175 = arith.constant 0 : index
    %c0_176 = arith.constant 0 : index
    %328 = vector.load %arg4[%c0_175, %c0_176] : memref<128x128xbf16, #tpu.memory_space<vmem>>, vector<128x128xbf16>
    %cst_177 = arith.constant dense<0.000000e+00> : vector<32x128xf32>
    %329 = tpu.matmul %327, %328, %cst_177 {dimension_numbers = #tpu.dot_dimension_numbers<[1], [0], [0], [1], [0, 0, 1, 1], [], []>} : vector<32x128xbf16>, vector<128x128xbf16>, vector<32x128xf32> -> vector<32x128xf32>
    %c0_178 = arith.constant 0 : index
    %c0_179 = arith.constant 0 : index
    %330 = vector.load %arg5[%c0_178, %c0_179] : memref<1x128xf32, #tpu.memory_space<vmem>>, vector<1x128xf32>
    %331 = vector.broadcast %330 : vector<1x128xf32> to vector<32x128xf32>
    %332 = arith.addf %329, %331 : vector<32x128xf32>
    %333 = arith.addf %1, %332 : vector<32x128xf32>
    %c0_180 = arith.constant 0 : index
    %c0_181 = arith.constant 0 : index
    %334 = vector.load %arg6[%c0_180, %c0_181] : memref<1x128xf32, #tpu.memory_space<vmem>>, vector<1x128xf32>
    %c0_182 = arith.constant 0 : index
    %c0_183 = arith.constant 0 : index
    %335 = vector.load %arg7[%c0_182, %c0_183] : memref<1x128xf32, #tpu.memory_space<vmem>>, vector<1x128xf32>
    %cst_184 = arith.constant dense<0.000000e+00> : vector<32xf32>
    %336 = vector.multi_reduction <add>, %333, %cst_184 [1] : vector<32x128xf32> to vector<32xf32>
    %337 = vector.shape_cast %336 : vector<32xf32> to vector<32x1xf32>
    %cst_185 = arith.constant 1.280000e+02 : f32
    %338 = vector.broadcast %cst_185 : f32 to vector<32x1xf32>
    %339 = arith.divf %337, %338 : vector<32x1xf32>
    %340 = vector.broadcast %339 : vector<32x1xf32> to vector<32x128xf32>
    %341 = arith.subf %333, %340 : vector<32x128xf32>
    %342 = arith.mulf %341, %341 : vector<32x128xf32>
    %cst_186 = arith.constant dense<0.000000e+00> : vector<32xf32>
    %343 = vector.multi_reduction <add>, %342, %cst_186 [1] : vector<32x128xf32> to vector<32xf32>
    %344 = vector.shape_cast %343 : vector<32xf32> to vector<32x1xf32>
    %cst_187 = arith.constant 1.280000e+02 : f32
    %345 = vector.broadcast %cst_187 : f32 to vector<32x1xf32>
    %346 = arith.divf %344, %345 : vector<32x1xf32>
    %347 = vector.broadcast %339 : vector<32x1xf32> to vector<32x128xf32>
    %348 = arith.subf %333, %347 : vector<32x128xf32>
    %cst_188 = arith.constant 9.99999974E-6 : f32
    %349 = vector.broadcast %cst_188 : f32 to vector<32x1xf32>
    %350 = arith.addf %346, %349 : vector<32x1xf32>
    %351 = math.rsqrt %350 : vector<32x1xf32>
    %352 = vector.broadcast %351 : vector<32x1xf32> to vector<32x128xf32>
    %353 = arith.mulf %348, %352 : vector<32x128xf32>
    %354 = vector.broadcast %334 : vector<1x128xf32> to vector<32x128xf32>
    %355 = arith.mulf %353, %354 : vector<32x128xf32>
    %356 = vector.broadcast %335 : vector<1x128xf32> to vector<32x128xf32>
    %357 = arith.addf %355, %356 : vector<32x128xf32>
    %358 = arith.truncf %357 : vector<32x128xf32> to vector<32x128xbf16>
    %c0_189 = arith.constant 0 : index
    %c0_190 = arith.constant 0 : index
    %359 = vector.load %arg8[%c0_189, %c0_190] : memref<128x256xbf16, #tpu.memory_space<vmem>>, vector<128x256xbf16>
    %cst_191 = arith.constant dense<0.000000e+00> : vector<32x256xf32>
    %360 = tpu.matmul %358, %359, %cst_191 {dimension_numbers = #tpu.dot_dimension_numbers<[1], [0], [0], [1], [0, 0, 1, 1], [], []>} : vector<32x128xbf16>, vector<128x256xbf16>, vector<32x256xf32> -> vector<32x256xf32>
    %c0_192 = arith.constant 0 : index
    %c0_193 = arith.constant 0 : index
    %361 = vector.load %arg9[%c0_192, %c0_193] : memref<1x256xf32, #tpu.memory_space<vmem>>, vector<1x256xf32>
    %362 = vector.broadcast %361 : vector<1x256xf32> to vector<32x256xf32>
    %363 = arith.addf %360, %362 : vector<32x256xf32>
    %cst_194 = arith.constant 0.000000e+00 : f32
    %364 = vector.broadcast %cst_194 : f32 to vector<32x256xf32>
    %365 = arith.maximumf %363, %364 : vector<32x256xf32>
    %366 = arith.truncf %365 : vector<32x256xf32> to vector<32x256xbf16>
    %c0_195 = arith.constant 0 : index
    %c0_196 = arith.constant 0 : index
    %367 = vector.load %arg10[%c0_195, %c0_196] : memref<256x128xbf16, #tpu.memory_space<vmem>>, vector<256x128xbf16>
    %cst_197 = arith.constant dense<0.000000e+00> : vector<32x128xf32>
    %368 = tpu.matmul %366, %367, %cst_197 {dimension_numbers = #tpu.dot_dimension_numbers<[1], [0], [0], [1], [0, 0, 1, 1], [], []>} : vector<32x256xbf16>, vector<256x128xbf16>, vector<32x128xf32> -> vector<32x128xf32>
    %c0_198 = arith.constant 0 : index
    %c0_199 = arith.constant 0 : index
    %369 = vector.load %arg11[%c0_198, %c0_199] : memref<1x128xf32, #tpu.memory_space<vmem>>, vector<1x128xf32>
    %370 = vector.broadcast %369 : vector<1x128xf32> to vector<32x128xf32>
    %371 = arith.addf %368, %370 : vector<32x128xf32>
    %372 = arith.addf %357, %371 : vector<32x128xf32>
    %c0_200 = arith.constant 0 : index
    %c0_201 = arith.constant 0 : index
    %373 = vector.load %arg12[%c0_200, %c0_201] : memref<1x128xf32, #tpu.memory_space<vmem>>, vector<1x128xf32>
    %c0_202 = arith.constant 0 : index
    %c0_203 = arith.constant 0 : index
    %374 = vector.load %arg13[%c0_202, %c0_203] : memref<1x128xf32, #tpu.memory_space<vmem>>, vector<1x128xf32>
    %cst_204 = arith.constant dense<0.000000e+00> : vector<32xf32>
    %375 = vector.multi_reduction <add>, %372, %cst_204 [1] : vector<32x128xf32> to vector<32xf32>
    %376 = vector.shape_cast %375 : vector<32xf32> to vector<32x1xf32>
    %cst_205 = arith.constant 1.280000e+02 : f32
    %377 = vector.broadcast %cst_205 : f32 to vector<32x1xf32>
    %378 = arith.divf %376, %377 : vector<32x1xf32>
    %379 = vector.broadcast %378 : vector<32x1xf32> to vector<32x128xf32>
    %380 = arith.subf %372, %379 : vector<32x128xf32>
    %381 = arith.mulf %380, %380 : vector<32x128xf32>
    %cst_206 = arith.constant dense<0.000000e+00> : vector<32xf32>
    %382 = vector.multi_reduction <add>, %381, %cst_206 [1] : vector<32x128xf32> to vector<32xf32>
    %383 = vector.shape_cast %382 : vector<32xf32> to vector<32x1xf32>
    %cst_207 = arith.constant 1.280000e+02 : f32
    %384 = vector.broadcast %cst_207 : f32 to vector<32x1xf32>
    %385 = arith.divf %383, %384 : vector<32x1xf32>
    %386 = vector.broadcast %378 : vector<32x1xf32> to vector<32x128xf32>
    %387 = arith.subf %372, %386 : vector<32x128xf32>
    %cst_208 = arith.constant 9.99999974E-6 : f32
    %388 = vector.broadcast %cst_208 : f32 to vector<32x1xf32>
    %389 = arith.addf %385, %388 : vector<32x1xf32>
    %390 = math.rsqrt %389 : vector<32x1xf32>
    %391 = vector.broadcast %390 : vector<32x1xf32> to vector<32x128xf32>
    %392 = arith.mulf %387, %391 : vector<32x128xf32>
    %393 = vector.broadcast %373 : vector<1x128xf32> to vector<32x128xf32>
    %394 = arith.mulf %392, %393 : vector<32x128xf32>
    %395 = vector.broadcast %374 : vector<1x128xf32> to vector<32x128xf32>
    %396 = arith.addf %394, %395 : vector<32x128xf32>
    %397 = vector.shape_cast %396 : vector<32x128xf32> to vector<2x16x128xf32>
    %c0_209 = arith.constant 0 : index
    %c0_210 = arith.constant 0 : index
    %c0_211 = arith.constant 0 : index
    %398 = vector.load %arg14[%c0_209, %c0_210, %c0_211] : memref<2x16x128xf32, #tpu.memory_space<vmem>>, vector<2x16x128xf32>
    tpu.vector_store %arg14[%c0_209, %c0_210, %c0_211], %397 {strides = array<i32>} : memref<2x16x128xf32, #tpu.memory_space<vmem>>, vector<2x16x128xf32>,
    return
  }
  func.func @transform_0(%arg0: i32) -> (i32, i32, i32) {
    %c0_i32 = arith.constant 0 : i32
    %c0_i32_0 = arith.constant 0 : i32
    %c0_i32_1 = arith.constant 0 : i32
    return %arg0, %c0_i32, %c0_i32_0 : i32, i32, i32
  }
  func.func @transform_1(%arg0: i32) -> (i32, i32) {
    %c0_i32 = arith.constant 0 : i32
    %c0_i32_0 = arith.constant 0 : i32
    %c0_i32_1 = arith.constant 0 : i32
    return %c0_i32, %c0_i32_0 : i32, i32
  }
  func.func @transform_2(%arg0: i32) -> (i32, i32) {
    %c0_i32 = arith.constant 0 : i32
    %c0_i32_0 = arith.constant 0 : i32
    %c0_i32_1 = arith.constant 0 : i32
    return %c0_i32, %c0_i32_0 : i32, i32
  }
  func.func @transform_3(%arg0: i32) -> (i32, i32) {
    %c0_i32 = arith.constant 0 : i32
    %c0_i32_0 = arith.constant 0 : i32
    %c0_i32_1 = arith.constant 0 : i32
    return %c0_i32, %c0_i32_0 : i32, i32
  }
  func.func @transform_4(%arg0: i32) -> (i32, i32) {
    %c0_i32 = arith.constant 0 : i32
    %c0_i32_0 = arith.constant 0 : i32
    %c0_i32_1 = arith.constant 0 : i32
    return %c0_i32, %c0_i32_0 : i32, i32
  }
  func.func @transform_5(%arg0: i32) -> (i32, i32) {
    %c0_i32 = arith.constant 0 : i32
    %c0_i32_0 = arith.constant 0 : i32
    %c0_i32_1 = arith.constant 0 : i32
    return %c0_i32, %c0_i32_0 : i32, i32
  }
  func.func @transform_6(%arg0: i32) -> (i32, i32) {
    %c0_i32 = arith.constant 0 : i32
    %c0_i32_0 = arith.constant 0 : i32
    %c0_i32_1 = arith.constant 0 : i32
    return %c0_i32, %c0_i32_0 : i32, i32
  }
  func.func @transform_7(%arg0: i32) -> (i32, i32) {
    %c0_i32 = arith.constant 0 : i32
    %c0_i32_0 = arith.constant 0 : i32
    %c0_i32_1 = arith.constant 0 : i32
    return %c0_i32, %c0_i32_0 : i32, i32
  }
  func.func @transform_8(%arg0: i32) -> (i32, i32) {
    %c0_i32 = arith.constant 0 : i32
    %c0_i32_0 = arith.constant 0 : i32
    %c0_i32_1 = arith.constant 0 : i32
    return %c0_i32, %c0_i32_0 : i32, i32
  }
  func.func @transform_9(%arg0: i32) -> (i32, i32) {
    %c0_i32 = arith.constant 0 : i32
    %c0_i32_0 = arith.constant 0 : i32
    %c0_i32_1 = arith.constant 0 : i32
    return %c0_i32, %c0_i32_0 : i32, i32
  }
  func.func @transform_10(%arg0: i32) -> (i32, i32) {
    %c0_i32 = arith.constant 0 : i32
    %c0_i32_0 = arith.constant 0 : i32
    %c0_i32_1 = arith.constant 0 : i32
    return %c0_i32, %c0_i32_0 : i32, i32
  }
  func.func @transform_11(%arg0: i32) -> (i32, i32) {
    %c0_i32 = arith.constant 0 : i32
    %c0_i32_0 = arith.constant 0 : i32
    %c0_i32_1 = arith.constant 0 : i32
    return %c0_i32, %c0_i32_0 : i32, i32
  }
  func.func @transform_12(%arg0: i32) -> (i32, i32) {
    %c0_i32 = arith.constant 0 : i32
    %c0_i32_0 = arith.constant 0 : i32
    %c0_i32_1 = arith.constant 0 : i32
    return %c0_i32, %c0_i32_0 : i32, i32
  }
  func.func @transform_13(%arg0: i32) -> (i32, i32, i32) {
    %c0_i32 = arith.constant 0 : i32
    %c0_i32_0 = arith.constant 0 : i32
    %c0_i32_1 = arith.constant 0 : i32
    return %arg0, %c0_i32, %c0_i32_0 : i32, i32, i32
  }
}

</mosaic_0001>

<bundles_post_ra>
// kernel: tpu_custom_call.1
= control target key start
LH: loop header
LB: loop body
LE: loop exit
PB: predicated region body
PF: predicated region fallthrough
CT: control target
= control target key end

     0   :  { %18 = vsyncpa [#allocation7], 0  ;;  %s5776_s0 = inlined_call_operand.hbm [shape: f32[2,16,128], index: 0, kind: input, shape index: {}]   ;;  %s5777_s1 = inlined_call_operand.hbm [shape: bf16[128,384], index: 1, kind: input, shape index: {}]   ;;  %s5778_s2 = inlined_call_operand.hbm [shape: f32[1,384], index: 2, kind: input, shape index: {}]   ;;  %s5779_s3 = inlined_call_operand.hbm [shape: bf16[128,128], index: 3, kind: input, shape index: {}]   ;;  %s5780_s4 = inlined_call_operand.vmem [shape: f32[1,128], index: 4, kind: input, shape index: {}]   ;;  %s5781_s5 = inlined_call_operand.vmem [shape: f32[1,128], index: 5, kind: input, shape index: {}]   ;;  %s5782_s6 = inlined_call_operand.vmem [shape: f32[1,128], index: 6, kind: input, shape index: {}]   ;;  %s5783_s7 = inlined_call_operand.hbm [shape: bf16[128,256], index: 7, kind: input, shape index: {}]   ;;  %s5784_s8 = inlined_call_operand.vmem [shape: f32[1,256], index: 8, kind: input, shape index: {}]   ;;  %s5785_s9 = inlined_call_operand.hbm [shape: bf16[256,128], index: 9, kind: input, shape index: {}]   ;;  %s5786_s10 = inlined_call_operand.vmem [shape: f32[1,128], index: 10, kind: input, shape index: {}]   ;;  %s5787_s11 = inlined_call_operand.vmem [shape: f32[1,128], index: 11, kind: input, shape index: {}]   ;;  %s5788_s12 = inlined_call_operand.vmem [shape: f32[1,128], index: 12, kind: input, shape index: {}]   ;;  %s5789_s13 = inlined_call_operand.hbm [shape: f32[2,16,128], index: 13, kind: output, shape index: {}]  }
   0x1   :  { %19 = vsyncpa [#allocation10], 0 }
   0x2   :  { %20 = vsyncpa [#allocation13], 0 }
   0x3   :  { %21 = vsyncpa [#allocation16], 0  ;;  %s40_s27 = sshll.u32 %s5777_s1, 4  ;;  %s41_s27 = int_to_ptr.hbm [resolvable:$true] %s40_s27 }
   0x4   :  { %22 = vsyncpa [#allocation8], 0  ;;  %s4411_s28 = smov [#allocation9]   ;;  %s64_s15 = sshll.u32 %s5779_s3, 4  ;;  %s65_s15 = int_to_ptr.hbm [resolvable:$true] %s64_s15 }
   0x5   :  { %s42_s29 = sshll.u32 %s4411_s28, 4  ;;  %s4412_s16 = smov 192   ;;  %s43_s29 = int_to_ptr.vmem [resolvable:$true] %s42_s29 }
   0x6   :  { %s4413_s17 = smov 12   ;;  %s4414_s18 = smov [#allocation12]  }
   0x7   :  { %48 = dma.hbm_to_vmem [thread:$0]  %s41_s27, 3072, %s43_s29, [#allocation10], %s4412_s16, %s4412_s16, %s4413_s17  }
   0x8   :  { %s66_s19 = sshll.u32 %s4414_s18, 4  ;;  %s4415_s20 = smov 64   ;;  %s67_s19 = int_to_ptr.vmem [resolvable:$true] %s66_s19 }
   0x9   :  { %s4416_s21 = smov 4   ;;  %s27_s23 = sshll.u32 %s5776_s0, 4  ;;  %s28_s23 = int_to_ptr.hbm [resolvable:$true] %s27_s23 }
   0xa   :  { %72 = dma.hbm_to_vmem [thread:$0]  %s65_s15, 1024, %s67_s19, [#allocation13], %s4415_s20, %s4415_s20, %s4416_s21  }
   0xb   :  { %s4417_s24 = smov [#allocation6]   ;;  %s54_s27 = sshll.u32 %s5778_s2, 4  ;;  %s55_s27 = int_to_ptr.hbm [resolvable:$true] %s54_s27 }
   0xc   :  { %s29_s3 = sshll.u32 %s4417_s24, 4  ;;  %s4418_s28 = smov 128   ;;  %s30_s3 = int_to_ptr.vmem [resolvable:$true] %s29_s3 }
   0xd   :  { %s4419_s29 = smov 8   ;;  %s4420_s30 = smov [#allocation11]  }
   0xe   :  { %35 = dma.hbm_to_vmem [thread:$0]  %s28_s23, 512, %s30_s3, [#allocation7], %s4418_s28, %s4418_s28, %s4419_s29  }
   0xf   :  { %s56_s14 = sshll.u32 %s4420_s30, 4  ;;  %s83_s0 = sshll.u32 %s5783_s7, 4  ;;  %s57_s14 = int_to_ptr.vmem [resolvable:$true] %s56_s14  ;;  %s84_s0 = int_to_ptr.hbm [resolvable:$true] %s83_s0 }
  0x10   :  { %59 = dma.hbm_to_vmem [thread:$0]  %s55_s27, 48, %s57_s14, [#allocation10]  }
  0x11   :  { %s98_s2 = sshll.u32 %s5785_s9, 4  ;;  %s4421_s19 = smov [#allocation14]   ;;  %s99_s2 = int_to_ptr.hbm [resolvable:$true] %s98_s2 }
  0x12   :  { %s85_s1 = sshll.u32 %s4421_s19, 4  ;;  %s4422_s22 = smov [#allocation15]   ;;  %s86_s1 = int_to_ptr.vmem [resolvable:$true] %s85_s1 }
  0x13   :  { %91 = dma.hbm_to_vmem [thread:$0]  %s84_s0, 2048, %s86_s1, [#allocation13], %s4418_s28, %s4418_s28, %s4419_s29  }
  0x14   :  { %s100_s23 = sshll.u32 %s4422_s22, 4  ;;  %s101_s23 = int_to_ptr.vmem [resolvable:$true] %s100_s23 }
  0x15   :  { %106 = dma.hbm_to_vmem [thread:$0]  %s99_s2, 2048, %s101_s23, [#allocation16], %s4415_s20, %s4415_s20, %s4416_s21  }
  0x16   :  { %4401 = dma.done.wait [#allocation7], 512  }
  0x17   :  { %4402 = vsyncadd [#allocation7], 4294966784 }
  0x18   :  { %4403 = dma.done.wait [#allocation10], 3120  }
  0x19   :  { %4404 = vsyncadd [#allocation10], 4294964176 }
  0x1a   :  { %4405 = dma.done.wait [#allocation13], 3072  }
  0x1b   :  { %4406 = vsyncadd [#allocation13], 4294964224 }
  0x1c   :  { %4407 = dma.done.wait [#allocation16], 2048  }
  0x1d   :  { %4408 = vsyncadd [#allocation16], 4294965248  ;;  %v3541_v0 = vld [vmem:[#allocation9 + $0xa8] sm:$0xf]  ;;  %v3965_v1 = vld [vmem:[#allocation9 + $0xb0] sm:$0xf0] }
  0x1e   :  { %v3964_v2 = vld [vmem:[#allocation9 + $0xac] sm:$0xf]  ;;  %v3542_v3 = vor.u32 %v3965_v1, %v3541_v0  ;;  %v3543_v4 = vld [vmem:[#allocation9 + $0xb4] sm:$0xf0]  ;;  %v3529_v5 = vld [vmem:[#allocation9 + $0x90] sm:$0xf] }
  0x1f   :  { %v3962_v6 = vld [vmem:[#allocation9 + $0x98] sm:$0xf0]  ;;  %v3546_v7 = vor.u32 %v3964_v2, %v3543_v4  ;;  %v3961_v8 = vld [vmem:[#allocation9 + $0x94] sm:$0xf]  ;;  %v3531_v9 = vld [vmem:[#allocation9 + $0x9c] sm:$0xf0] }
  0x20   :  { %312 = vmatpush.bf16.msra.mxu0 %v3542_v3  ;;  %v3530_v10 = vor.u32 %v3962_v6, %v3529_v5  ;;  %v3534_v11 = vor.u32 %v3961_v8, %v3531_v9  ;;  %v3517_v12 = vld [vmem:[#allocation9 + $0x78] sm:$0xf]  ;;  %v3959_v13 = vld [vmem:[#allocation9 + $0x80] sm:$0xf0]  ;;  %v3958_v14 = vld [vmem:[#allocation9 + $0x7c] sm:$0xf] }
  0x21   :  { %331 = vmatpush.bf16.msra.mxu1 %v3546_v7  ;;  %v3519_v15 = vld [vmem:[#allocation9 + $0x84] sm:$0xf0]  ;;  %v3549_v16 = vld [vmem:[#allocation9 + $0xb0] sm:$0xf]  ;;  %v3518_v17 = vor.u32 %v3959_v13, %v3517_v12  ;;  %v3966_v18 = vld [vmem:[#allocation9 + $0xb8] sm:$0xf0] }
  0x22   :  { %v3522_v19 = vor.u32 %v3958_v14, %v3519_v15  ;;  %v3505_v20 = vld [vmem:[#allocation9 + $0x60] sm:$0xf]  ;;  %v3956_v21 = vld [vmem:[#allocation9 + $0x68] sm:$0xf0]  ;;  %v3550_v22 = vor.u32 %v3966_v18, %v3549_v16  ;;  %v3537_v23 = vld [vmem:[#allocation9 + $0x98] sm:$0xf] }
  0x23   :  { %v3955_v24 = vld [vmem:[#allocation9 + $0x64] sm:$0xf]  ;;  %v3507_v25 = vld [vmem:[#allocation9 + $0x6c] sm:$0xf0]  ;;  %v3506_v28 = vor.u32 %v3956_v21, %v3505_v20  ;;  %v3525_v29 = vld [vmem:[#allocation9 + $0x80] sm:$0xf] }
  0x24   :  { %313 = vmatpush.bf16.msra.mxu0 %v3530_v10  ;;  %v3963_v26 = vld [vmem:[#allocation9 + $0xa0] sm:$0xf0]  ;;  %350 = vmatpush.bf16.msra.mxu2 %v3550_v22  ;;  %v3960_v30 = vld [vmem:[#allocation9 + $0x88] sm:$0xf0]  ;;  %v3510_v31 = vor.u32 %v3955_v24, %v3507_v25  ;;  %v3493_v32 = vld [vmem:[#allocation9 + $0x48] sm:$0xf] }
  0x25   :  { %332 = vmatpush.bf16.msra.mxu1 %v3534_v11  ;;  %v3538_v27 = vor.u32 %v3963_v26, %v3537_v23  ;;  %v3953_v33 = vld [vmem:[#allocation9 + $0x50] sm:$0xf0]  ;;  %v3952_v34 = vld [vmem:[#allocation9 + $0x4c] sm:$0xf]  ;;  %v3495_v35 = vld [vmem:[#allocation9 + $0x54] sm:$0xf0]  ;;  %v3526_v36 = vor.u32 %v3960_v30, %v3525_v29 }
  0x26   :  { %v3494_v37 = vor.u32 %v3953_v33, %v3493_v32  ;;  %v3513_v38 = vld [vmem:[#allocation9 + $0x68] sm:$0xf]  ;;  %v3957_v39 = vld [vmem:[#allocation9 + $0x70] sm:$0xf0]  ;;  %v3498_v40 = vor.u32 %v3952_v34, %v3495_v35  ;;  %v3481_v41 = vld [vmem:[#allocation9 + $0x30] sm:$0xf] }
  0x27   :  { %v3950_v42 = vld [vmem:[#allocation9 + $0x38] sm:$0xf0]  ;;  %v3949_v43 = vld [vmem:[#allocation9 + $0x34] sm:$0xf]  ;;  %v3483_v44 = vld [vmem:[#allocation9 + $0x3c] sm:$0xf0]  ;;  %v3514_v45 = vor.u32 %v3957_v39, %v3513_v38 }
  0x28   :  { %314 = vmatpush.bf16.msra.mxu0 %v3518_v17  ;;  %351 = vmatpush.bf16.msra.mxu2 %v3538_v27  ;;  %v3482_v46 = vor.u32 %v3950_v42, %v3481_v41  ;;  %v3501_v47 = vld [vmem:[#allocation9 + $0x50] sm:$0xf]  ;;  %v3954_v48 = vld [vmem:[#allocation9 + $0x58] sm:$0xf0]  ;;  %v3486_v49 = vor.u32 %v3949_v43, %v3483_v44  ;;  %v3469_v50 = vld [vmem:[#allocation9 + $0x18] sm:$0xf] }
  0x29   :  { %333 = vmatpush.bf16.msra.mxu1 %v3522_v19  ;;  %v3947_v51 = vld [vmem:[#allocation9 + $0x20] sm:$0xf0]  ;;  %v3946_v52 = vld [vmem:[#allocation9 + $0x1c] sm:$0xf]  ;;  %v3471_v53 = vld [vmem:[#allocation9 + $0x24] sm:$0xf0]  ;;  %v3502_v54 = vor.u32 %v3954_v48, %v3501_v47 }
  0x2a   :  { %v3470_v55 = vor.u32 %v3947_v51, %v3469_v50  ;;  %v3489_v56 = vld [vmem:[#allocation9 + $0x38] sm:$0xf]  ;;  %v3951_v57 = vld [vmem:[#allocation9 + $0x40] sm:$0xf0]  ;;  %v3474_v58 = vor.u32 %v3946_v52, %v3471_v53  ;;  %v3457_v59 = vld [vmem:[#allocation9] sm:$0xf] }
  0x2b   :  { %v3944_v60 = vld [vmem:[#allocation9 + $0x8] sm:$0xf0]  ;;  %v3943_v61 = vld [vmem:[#allocation9 + $0x4] sm:$0xf]  ;;  %v3459_v62 = vld [vmem:[#allocation9 + $0xc] sm:$0xf0]  ;;  %v3490_v0 = vor.u32 %v3951_v57, %v3489_v56 }
  0x2c   :  { %315 = vmatpush.bf16.msra.mxu0 %v3506_v28  ;;  %352 = vmatpush.bf16.msra.mxu2 %v3526_v36  ;;  %v138_v63 = vld [vmem:[#allocation6] sm:$0xff]  ;;  %v3458_v1 = vor.u32 %v3944_v60, %v3457_v59  ;;  %v139_v2 = vld [vmem:[#allocation6 + $0x8] sm:$0xff]  ;;  %v3462_v5 = vor.u32 %v3943_v61, %v3459_v62  ;;  %v3945_v9 = vld [vmem:[#allocation9 + $0x10] sm:$0xf0]  ;;  %vm381_vm0 = vcmask 125952   ;;  %s4423_s7 = smov 112  }
  0x2d   :  { %334 = vmatpush.bf16.msra.mxu1 %v3510_v31  ;;  %v3477_v3 = vld [vmem:[#allocation9 + $0x20] sm:$0xf]  ;;  %v3948_v4 = vld [vmem:[#allocation9 + $0x28] sm:$0xf0]  ;;  %v142_v6 = vpack.c.bf16 %v139_v2, %v138_v63  ;;  %v3465_v8 = vld [vmem:[#allocation9 + $0x8] sm:$0xf] }
  0x2e   :  { %v3478_v7 = vor.u32 %v3948_v4, %v3477_v3  ;;  %v3466_v10 = vor.u32 %v3945_v9, %v3465_v8  ;;  %v140_v11 = vld [vmem:[#allocation6 + $0x10] sm:$0xff]  ;;  %v141_v12 = vld [vmem:[#allocation6 + $0x18] sm:$0xff]  ;;  %v176_v14 = vld [vmem:[#allocation11] sm:$0x7]  ;;  %s4424_s9 = smov 96   ;;  %s4425_s21 = smov 80  }
  0x2f   :  { %v143_v13 = vpack.c.bf16 %v141_v12, %v140_v11  ;;  %v4531_v15 = vperm.slane %v176_v14, 0  ;;  %v4533_v16 = vperm.slane %v176_v14, 1  ;;  %v4544_v27 = vperm.slane %v176_v14, 2  ;;  %s4426_s24 = smov 16   ;;  %s4427_s3 = smov 32  }
  0x30   :  { %316 = vmatpush.bf16.msra.mxu0 %v3494_v37  ;;  %353 = vmatpush.bf16.msra.mxu2 %v3514_v45  ;;  %vm893_vm1 = vcmask 130048   ;;  %s4428_s25 = smov 48   ;;  %s3439_s19 = sshll.u32 %s5789_s13, 4  ;;  %s3440_s19 = int_to_ptr.hbm [resolvable:$true] %s3439_s19 }
  0x31   :  { %335 = vmatpush.bf16.msra.mxu1 %v3498_v40 }
  0x34   :  { %317 = vmatpush.bf16.msra.mxu0 %v3482_v46  ;;  %354 = vmatpush.bf16.msra.mxu2 %v3502_v54 }
  0x35   :  { %336 = vmatpush.bf16.msra.mxu1 %v3486_v49 }
  0x38   :  { %318 = vmatpush.bf16.msra.mxu0 %v3470_v55  ;;  %355 = vmatpush.bf16.msra.mxu2 %v3490_v0 }
  0x39   :  { %337 = vmatpush.bf16.msra.mxu1 %v3474_v58 }
  0x3c   :  { %319 = vmatpush.bf16.msra.mxu0 %v3458_v1  ;;  %356 = vmatpush.bf16.msra.mxu2 %v3478_v7 }
  0x3d   :  { %338 = vmatpush.bf16.msra.mxu1 %v3462_v5 }
  0x3f   :  { %320 = vmatmul.bf16.vlgmr.msra.gmra.mxu0 %v142_v6 }
  0x40   :  { %339 = vmatmul.bf16.vlgmr.msra.gmra.mxu1 %v142_v6  ;;  %357 = vmatpush.bf16.msra.mxu2 %v3466_v10 }
  0x43   :  { %358 = vmatmul.bf16.vlgmr.msra.gmra.mxu2 %v142_v6 }
  0x4f   :  { %325 = vmatmul.bf16.gmra.mxu0 %v143_v13 }
  0x50   :  { %344 = vmatmul.bf16.gmra.mxu1 %v143_v13 }
  0x53   :  { %363 = vmatmul.bf16.gmra.mxu2 %v143_v13 }
  0xbc   :  { %v321_v17 = vpop.f32.mrf.mxu0 }
  0xbd   :  { %v322_v18 = vadd.f32 %v321_v17, %v4531_v15  ;;  %v340_v19 = vpop.f32.mrf.mxu1 }
  0xbe   :  { %v341_v20 = vadd.f32 %v340_v19, %v4533_v16 }
  0xbf   :  { %v369_v21 = vpack.c.bf16 %v322_v18, %v322_v18 }
  0xc0   :  { %v373_v22 = vpack.c.bf16 %v341_v20, %v341_v20 }
  0xc1   :  { %382 = vst.msk [vmem:[#allocation2] sm:$0xf] %vm381_vm0, %v369_v21  ;;  %399 = vrot.lane.b32.xlu1 %v369_v21, %s4423_s7 }
  0xc2   :  { %384 = vst.msk [vmem:[#allocation3] sm:$0xf] %vm381_vm0, %v373_v22  ;;  %472 = vrot.lane.b32.xlu2 %v373_v22, %s4424_s9  ;;  %410 = vrot.lane.b32.xlu0 %v373_v22, %s4423_s7 }
  0xc4   :  { %v323_v23 = vpop.f32.mrf.mxu0 }
  0xc5   :  { %v324_v24 = vadd.f32 %v323_v23, %v4531_v15  ;;  %v342_v25 = vpop.f32.mrf.mxu1 }
  0xc6   :  { %v343_v26 = vadd.f32 %v342_v25, %v4533_v16  ;;  %v359_v30 = vpop.f32.mrf.mxu2 }
  0xc7   :  { %v4546_v28 = vpack.c.bf16 %v324_v24, %v324_v24  ;;  %v360_v31 = vadd.f32 %v359_v30, %v4544_v27 }
  0xc8   :  { %v4548_v29 = vpack.c.bf16 %v343_v26, %v343_v26 }
  0xc9   :  { %383 = vst.msk [vmem:[#allocation2 + $0x4] sm:$0xf] %vm381_vm0, %v4546_v28  ;;  %517 = vrot.lane.b32.xlu1 %v369_v21, %s4425_s21  ;;  %v4558_v32 = vpack.c.bf16 %v360_v31, %v360_v31 }
  0xca   :  { %385 = vst.msk [vmem:[#allocation3 + $0x4] sm:$0xf] %vm381_vm0, %v4548_v29  ;;  %526 = vrot.lane.b32.xlu2 %v373_v22, %s4425_s21  ;;  %463 = vrot.lane.b32.xlu0 %v369_v21, %s4424_s9 }
  0xcb   :  { %386 = vst.msk [vmem:[#allocation4] sm:$0xf] %vm381_vm0, %v4558_v32 }
  0xcc   :  { %v326_v42 = vpop.f32.mrf.mxu0 }
  0xcd   :  { %v345_v39 = vpop.f32.mrf.mxu1  ;;  %v327_v43 = vadd.f32 %v326_v42, %v4531_v15 }
  0xce   :  { %v361_v34 = vpop.f32.mrf.mxu2  ;;  %v346_v40 = vadd.f32 %v345_v39, %v4533_v16 }
  0xcf   :  { %v362_v35 = vadd.f32 %v361_v34, %v4544_v27  ;;  %v4588_v44 = vpack.c.bf16 %v327_v43, %v327_v43 }
  0xd0   :  { %v3967_v38 = vld [vmem:[#allocation2] sm:$0xff]  ;;  %v375_v41 = vpack.c.bf16 %v346_v40, %v346_v40 }
  0xd1   :  { %742 = vrot.lane.b32.xlu1 %v373_v22, %s4426_s24  ;;  %v3983_v33 = vld [vmem:[#allocation3] sm:$0xff]  ;;  %v4567_v37 = vpack.c.bf16 %v362_v35, %v362_v35  ;;  %389 = vst.msk [vmem:[#allocation2 + $0x40] sm:$0xf] %vm381_vm0, %v4588_v44 }
  0xd2   :  { %688 = vrot.lane.b32.xlu2 %v373_v22, %s4427_s3  ;;  %580 = vrot.lane.b32.xlu0 %v373_v22, %s4415_s20  ;;  %v898_v36 = vsel %vm893_vm1, %v3983_v33, 0  ;;  %392 = vst.msk [vmem:[#allocation3 + $0x40] sm:$0xf] %vm381_vm0, %v375_v41 }
  0xd3   :  { %907 = vmatpush.bf16.xpose.msra.mxu3 %v898_v36  ;;  %387 = vst.msk [vmem:[#allocation4 + $0x4] sm:$0xf] %vm381_vm0, %v4567_v37 }
  0xd4   :  { %v328_v48 = vpop.f32.mrf.mxu0 }
  0xd5   :  { %v347_v45 = vpop.f32.mrf.mxu1  ;;  %v329_v49 = vadd.f32 %v328_v48, %v4531_v15 }
  0xd6   :  { %v348_v46 = vadd.f32 %v347_v45, %v4533_v16  ;;  %v364_v63 = vpop.f32.mrf.mxu2 }
  0xd7   :  { %v4610_v50 = vpack.c.bf16 %v329_v49, %v329_v49  ;;  %v365_v0 = vadd.f32 %v364_v63, %v4544_v27 }
  0xd8   :  { %v4599_v47 = vpack.c.bf16 %v348_v46, %v348_v46 }
  0xd9   :  { %733 = vrot.lane.b32.xlu1 %v369_v21, %s4426_s24  ;;  %390 = vst.msk [vmem:[#allocation2 + $0x44] sm:$0xf] %vm381_vm0, %v4610_v50  ;;  %v4669_v1 = vpack.c.bf16 %v365_v0, %v365_v0 }
  0xda   :  { %679 = vrot.lane.b32.xlu2 %v369_v21, %s4427_s3  ;;  %571 = vrot.lane.b32.xlu0 %v369_v21, %s4415_s20  ;;  %393 = vst.msk [vmem:[#allocation3 + $0x44] sm:$0xf] %vm381_vm0, %v4599_v47 }
  0xdb   :  { %3559 = vmatmul.msk.bf16.vlgmr.msra.gmra.mxu3 %vm893_vm1, %v3967_v38  ;;  %395 = vst.msk [vmem:[#allocation4 + $0x40] sm:$0xf] %vm381_vm0, %v4669_v1 }
  0xde   :  { %v366_v5 = vpop.f32.mrf.mxu2 }
  0xdf   :  { %v367_v6 = vadd.f32 %v366_v5, %v4544_v27 }
  0xe0   :  { %v3975_v53 = vld [vmem:[#allocation2 + $0x40] sm:$0xff] }
  0xe1   :  { %535 = vrot.lane.b32.xlu1 %v4558_v32, %s4425_s21  ;;  %v3991_v51 = vld [vmem:[#allocation3 + $0x40] sm:$0xff]  ;;  %v4683_v7 = vpack.c.bf16 %v367_v6, %v367_v6 }
  0xe2   :  { %481 = vrot.lane.b32.xlu2 %v4558_v32, %s4424_s9  ;;  %634 = vrot.lane.b32.xlu0 %v373_v22, %s4428_s25  ;;  %v1138_v52 = vsel %vm893_vm1, %v3991_v51, 0 }
  0xe3   :  { %1147 = vmatpush.bf16.xpose.msrb.mxu0 %v1138_v52  ;;  %396 = vst.msk [vmem:[#allocation4 + $0x44] sm:$0xf] %vm381_vm0, %v4683_v7 }
  0xe9   :  { %421 = vrot.lane.b32.xlu1 %v4558_v32, %s4423_s7 }
  0xea   :  { %474 = vrot.lane.b32.xlu2 %v4548_v29, %s4424_s9  ;;  %625 = vrot.lane.b32.xlu0 %v369_v21, %s4428_s25 }
  0xeb   :  { %3631 = vmatmul.msk.bf16.vlgmr.msrb.gmra.mxu0 %vm893_vm1, %v3975_v53 }
  0xf1   :  { %401 = vrot.lane.b32.xlu1 %v4546_v28, %s4423_s7 }
  0xf2   :  { %519 = vrot.lane.b32.xlu2 %v4546_v28, %s4425_s21  ;;  %412 = vrot.lane.b32.xlu0 %v4548_v29, %s4423_s7 }
  0xf9   :  { %465 = vrot.lane.b32.xlu1 %v4546_v28, %s4424_s9 }
  0xfa   :  { %744 = vrot.lane.b32.xlu2 %v4548_v29, %s4426_s24  ;;  %528 = vrot.lane.b32.xlu0 %v4548_v29, %s4425_s21 }
 0x101   :  { %582 = vrot.lane.b32.xlu1 %v4548_v29, %s4415_s20 }
 0x102   :  { %735 = vrot.lane.b32.xlu2 %v4546_v28, %s4426_s24  ;;  %690 = vrot.lane.b32.xlu0 %v4548_v29, %s4427_s3 }
 0x109   :  { %573 = vrot.lane.b32.xlu1 %v4546_v28, %s4415_s20 }
 0x10a   :  { %499 = vrot.lane.b32.xlu2 %v375_v41, %s4424_s9  ;;  %681 = vrot.lane.b32.xlu0 %v4546_v28, %s4427_s3 }
 0x111   :  { %636 = vrot.lane.b32.xlu1 %v4548_v29, %s4428_s25 }
 0x112   :  { %490 = vrot.lane.b32.xlu2 %v4588_v44, %s4424_s9  ;;  %483 = vrot.lane.b32.xlu0 %v4567_v37, %s4424_s9 }
 0x119   :  { %627 = vrot.lane.b32.xlu1 %v4546_v28, %s4428_s25 }
 0x11a   :  { %715 = vrot.lane.b32.xlu2 %v375_v41, %s4427_s3  ;;  %537 = vrot.lane.b32.xlu0 %v4567_v37, %s4425_s21 }
 0x11c   :  { %v473_v54 = vpop.permute.xlu2 %472 }
 0x11d   :  { %479 = vst.msk [vmem:[#allocation3 + $0x10] sm:$0xf] %vm381_vm0, %v473_v54 }
 0x121   :  { %553 = vrot.lane.b32.xlu1 %v375_v41, %s4425_s21 }
 0x122   :  { %706 = vrot.lane.b32.xlu2 %v4588_v44, %s4427_s3  ;;  %423 = vrot.lane.b32.xlu0 %v4567_v37, %s4423_s7 }
 0x124   :  { %v527_v55 = vpop.permute.xlu2 %526 }
 0x125   :  { %533 = vst.msk [vmem:[#allocation3 + $0x18] sm:$0xf] %vm381_vm0, %v527_v55 }
 0x129   :  { %544 = vrot.lane.b32.xlu1 %v4588_v44, %s4425_s21 }
 0x12a   :  { %661 = vrot.lane.b32.xlu2 %v375_v41, %s4428_s25  ;;  %443 = vrot.lane.b32.xlu0 %v375_v41, %s4423_s7 }
 0x12c   :  { %v689_v56 = vpop.permute.xlu2 %688 }
 0x12d   :  { %695 = vst.msk [vmem:[#allocation3 + $0x30] sm:$0xf] %vm381_vm0, %v689_v56 }
 0x131   :  { %769 = vrot.lane.b32.xlu1 %v375_v41, %s4426_s24 }
 0x132   :  { %555 = vrot.lane.b32.xlu2 %v4599_v47, %s4425_s21  ;;  %432 = vrot.lane.b32.xlu0 %v4588_v44, %s4423_s7 }
 0x133   :  { %v400_v57 = vpop.permute.xlu1 %399 }
 0x134   :  { %v411_v58 = vpop.permute.xlu0 %410  ;;  %v680_v59 = vpop.permute.xlu2 %679  ;;  %406 = vst.msk [vmem:[#allocation2 + $0x8] sm:$0xf] %vm381_vm0, %v400_v57 }
 0x135   :  { %417 = vst.msk [vmem:[#allocation3 + $0x8] sm:$0xf] %vm381_vm0, %v411_v58 }
 0x136   :  { %686 = vst.msk [vmem:[#allocation2 + $0x30] sm:$0xf] %vm381_vm0, %v680_v59 }
 0x139   :  { %760 = vrot.lane.b32.xlu1 %v4588_v44, %s4426_s24 }
 0x13a   :  { %546 = vrot.lane.b32.xlu2 %v4610_v50, %s4425_s21  ;;  %607 = vrot.lane.b32.xlu0 %v375_v41, %s4415_s20 }
 0x13b   :  { %v518_v60 = vpop.permute.xlu1 %517 }
 0x13c   :  { %v482_v61 = vpop.permute.xlu2 %481  ;;  %v464_v62 = vpop.permute.xlu0 %463  ;;  %524 = vst.msk [vmem:[#allocation2 + $0x18] sm:$0xf] %vm381_vm0, %v518_v60 }
 0x13d   :  { %488 = vst.msk [vmem:[#allocation4 + $0x10] sm:$0xf] %vm381_vm0, %v482_v61 }
 0x13e   :  { %470 = vst.msk [vmem:[#allocation2 + $0x10] sm:$0xf] %vm381_vm0, %v464_v62 }
 0x141   :  { %598 = vrot.lane.b32.xlu1 %v4588_v44, %s4415_s20 }
 0x142   :  { %771 = vrot.lane.b32.xlu2 %v4599_v47, %s4426_s24  ;;  %652 = vrot.lane.b32.xlu0 %v4588_v44, %s4428_s25 }
 0x143   :  { %v743_v2 = vpop.permute.xlu1 %742 }
 0x144   :  { %v475_v3 = vpop.permute.xlu2 %474  ;;  %v581_v4 = vpop.permute.xlu0 %580  ;;  %749 = vst.msk [vmem:[#allocation3 + $0x38] sm:$0xf] %vm381_vm0, %v743_v2 }
 0x145   :  { %480 = vst.msk [vmem:[#allocation3 + $0x14] sm:$0xf] %vm381_vm0, %v475_v3 }
 0x146   :  { %587 = vst.msk [vmem:[#allocation3 + $0x20] sm:$0xf] %vm381_vm0, %v581_v4 }
 0x149   :  { %445 = vrot.lane.b32.xlu1 %v4599_v47, %s4423_s7 }
 0x14a   :  { %762 = vrot.lane.b32.xlu2 %v4610_v50, %s4426_s24  ;;  %501 = vrot.lane.b32.xlu0 %v4599_v47, %s4424_s9 }
 0x14b   :  { %v734_v8 = vpop.permute.xlu1 %733 }
 0x14c   :  { %v520_v9 = vpop.permute.xlu2 %519  ;;  %v572_v10 = vpop.permute.xlu0 %571  ;;  %740 = vst.msk [vmem:[#allocation2 + $0x38] sm:$0xf] %vm381_vm0, %v734_v8  ;;  %v3985_v23 = vld [vmem:[#allocation3 + $0x10] sm:$0xff] }
 0x14d   :  { %525 = vst.msk [vmem:[#allocation2 + $0x1c] sm:$0xf] %vm381_vm0, %v520_v9  ;;  %v958_v26 = vsel %vm893_vm1, %v3985_v23, 0 }
 0x14e   :  { %578 = vst.msk [vmem:[#allocation2 + $0x20] sm:$0xf] %vm381_vm0, %v572_v10 }
 0x151   :  { %434 = vrot.lane.b32.xlu1 %v4610_v50, %s4423_s7 }
 0x152   :  { %600 = vrot.lane.b32.xlu2 %v4610_v50, %s4415_s20  ;;  %492 = vrot.lane.b32.xlu0 %v4610_v50, %s4424_s9 }
 0x153   :  { %v536_v11 = vpop.permute.xlu1 %535 }
 0x154   :  { %v745_v12 = vpop.permute.xlu2 %744  ;;  %v635_v13 = vpop.permute.xlu0 %634  ;;  %542 = vst.msk [vmem:[#allocation4 + $0x18] sm:$0xf] %vm381_vm0, %v536_v11  ;;  %v3970_v57 = vld [vmem:[#allocation2 + $0x18] sm:$0xff] }
 0x155   :  { %750 = vst.msk [vmem:[#allocation3 + $0x3c] sm:$0xf] %vm381_vm0, %v745_v12 }
 0x156   :  { %641 = vst.msk [vmem:[#allocation3 + $0x28] sm:$0xf] %vm381_vm0, %v635_v13 }
 0x159   :  { %609 = vrot.lane.b32.xlu1 %v4599_v47, %s4415_s20 }
 0x15a   :  { %699 = vrot.lane.b32.xlu2 %v4567_v37, %s4427_s3  ;;  %717 = vrot.lane.b32.xlu0 %v4599_v47, %s4427_s3 }
 0x15b   :  { %v422_v14 = vpop.permute.xlu1 %421 }
 0x15c   :  { %v736_v15 = vpop.permute.xlu2 %735  ;;  %v626_v16 = vpop.permute.xlu0 %625  ;;  %428 = vst.msk [vmem:[#allocation4 + $0x8] sm:$0xf] %vm381_vm0, %v422_v14  ;;  %v3990_v43 = vld [vmem:[#allocation3 + $0x38] sm:$0xff] }
 0x15d   :  { %741 = vst.msk [vmem:[#allocation2 + $0x3c] sm:$0xf] %vm381_vm0, %v736_v15 }
 0x15e   :  { %632 = vst.msk [vmem:[#allocation2 + $0x28] sm:$0xf] %vm381_vm0, %v626_v16  ;;  %v4777_v58 = vpop.f32.mrf.mxu3 }
 0x15f   :  { %v1364_v59 = vsel %vm893_vm1, %v4777_v58, -inf }
 0x161   :  { %654 = vrot.lane.b32.xlu1 %v4610_v50, %s4428_s25 }
 0x162   :  { %643 = vrot.lane.b32.xlu2 %v4558_v32, %s4428_s25  ;;  %708 = vrot.lane.b32.xlu0 %v4610_v50, %s4427_s3 }
 0x163   :  { %v402_v17 = vpop.permute.xlu1 %401 }
 0x164   :  { %v500_v18 = vpop.permute.xlu2 %499  ;;  %v413_v19 = vpop.permute.xlu0 %412  ;;  %407 = vst.msk [vmem:[#allocation2 + $0xc] sm:$0xf] %vm381_vm0, %v402_v17  ;;  %v3974_v5 = vld [vmem:[#allocation2 + $0x38] sm:$0xff] }
 0x165   :  { %506 = vst.msk [vmem:[#allocation3 + $0x50] sm:$0xf] %vm381_vm0, %v500_v18 }
 0x166   :  { %418 = vst.msk [vmem:[#allocation3 + $0xc] sm:$0xf] %vm381_vm0, %v413_v19 }
 0x168   :  { %v4788_v6 = vpop.f32.mrf.mxu0 }
 0x169   :  { %697 = vrot.lane.b32.xlu1 %v4558_v32, %s4427_s3 }
 0x16a   :  { %510 = vrot.lane.b32.xlu2 %v4683_v7, %s4424_s9  ;;  %663 = vrot.lane.b32.xlu0 %v4599_v47, %s4428_s25 }
 0x16b   :  { %v466_v20 = vpop.permute.xlu1 %465  ;;  %v3968_v30 = vld [vmem:[#allocation2 + $0x8] sm:$0xff] }
 0x16c   :  { %v491_v21 = vpop.permute.xlu2 %490  ;;  %v529_v22 = vpop.permute.xlu0 %528  ;;  %471 = vst.msk [vmem:[#allocation2 + $0x14] sm:$0xf] %vm381_vm0, %v466_v20 }
 0x16d   :  { %497 = vst.msk [vmem:[#allocation2 + $0x50] sm:$0xf] %vm381_vm0, %v491_v21  ;;  %v3984_v24 = vld [vmem:[#allocation3 + $0x8] sm:$0xff]  ;;  %v4804_v20 = vpop.f32.mrf.mxu3 }
 0x16e   :  { %534 = vst.msk [vmem:[#allocation3 + $0x1c] sm:$0xf] %vm381_vm0, %v529_v22  ;;  %v928_v25 = vsel %vm893_vm1, %v3984_v24, 0  ;;  %v1367_v22 = vsel %vm893_vm1, %v4804_v20, -inf }
 0x16f   :  { %937 = vmatpush.bf16.xpose.msrb.mxu3 %v928_v25 }
 0x170   :  { %v4796_v13 = vpop.f32.mrf.mxu0 }
 0x171   :  { %751 = vrot.lane.b32.xlu1 %v4558_v32, %s4426_s24  ;;  %v1415_v14 = vsel %vm893_vm1, %v4796_v13, -inf }
 0x172   :  { %454 = vrot.lane.b32.xlu2 %v4669_v1, %s4423_s7  ;;  %589 = vrot.lane.b32.xlu0 %v4558_v32, %s4415_s20 }
 0x173   :  { %v583_v27 = vpop.permute.xlu1 %582  ;;  %v3969_v46 = vld [vmem:[#allocation2 + $0x10] sm:$0xff] }
 0x174   :  { %v716_v28 = vpop.permute.xlu2 %715  ;;  %v691_v29 = vpop.permute.xlu0 %690  ;;  %588 = vst.msk [vmem:[#allocation3 + $0x24] sm:$0xf] %vm381_vm0, %v583_v27 }
 0x175   :  { %722 = vst.msk [vmem:[#allocation3 + $0x70] sm:$0xf] %vm381_vm0, %v716_v28  ;;  %v3986_v31 = vld [vmem:[#allocation3 + $0x18] sm:$0xff] }
 0x176   :  { %696 = vst.msk [vmem:[#allocation3 + $0x34] sm:$0xf] %vm381_vm0, %v691_v29  ;;  %3568 = vmatmul.msk.bf16.vlgmr.msrb.gmra.mxu3 %vm893_vm1, %v3968_v30  ;;  %v988_v33 = vsel %vm893_vm1, %v3986_v31, 0 }
 0x177   :  { %967 = vmatpush.bf16.xpose.msra.mxu3 %v958_v26  ;;  %v1412_v26 = vsel %vm893_vm1, %v4788_v6, -inf }
 0x179   :  { %753 = vrot.lane.b32.xlu1 %v4567_v37, %s4426_s24 }
 0x17a   :  { %591 = vrot.lane.b32.xlu0 %v4567_v37, %s4415_s20 }
 0x17b   :  { %v574_v32 = vpop.permute.xlu1 %573  ;;  %v3987_v34 = vld [vmem:[#allocation3 + $0x20] sm:$0xff] }
 0x17c   :  { %v707_v35 = vpop.permute.xlu2 %706  ;;  %v682_v36 = vpop.permute.xlu0 %681  ;;  %579 = vst.msk [vmem:[#allocation2 + $0x24] sm:$0xf] %vm381_vm0, %v574_v32  ;;  %v1018_v38 = vsel %vm893_vm1, %v3987_v34, 0 }
 0x17d   :  { %713 = vst.msk [vmem:[#allocation2 + $0x70] sm:$0xf] %vm381_vm0, %v707_v35  ;;  %v3989_v39 = vld [vmem:[#allocation3 + $0x30] sm:$0xff]  ;;  %1027 = vmatpush.bf16.xpose.msrb.mxu1 %v1018_v38 }
 0x17e   :  { %687 = vst.msk [vmem:[#allocation2 + $0x34] sm:$0xf] %vm381_vm0, %v682_v36  ;;  %v1078_v40 = vsel %vm893_vm1, %v3989_v39, 0 }
 0x17f   :  { %997 = vmatpush.bf16.xpose.msrb.mxu3 %v988_v33  ;;  %1087 = vmatpush.bf16.xpose.msrb.mxu2 %v1078_v40 }
 0x181   :  { %645 = vrot.lane.b32.xlu1 %v4567_v37, %s4428_s25  ;;  %v1108_v37 = vsel %vm893_vm1, %v3990_v43, 0  ;;  %v3999_v43 = vld [vmem:[#allocation4] sm:$0xff] }
 0x182   :  { %508 = vrot.lane.b32.xlu0 %v4669_v1, %s4424_s9 }
 0x183   :  { %v637_v41 = vpop.permute.xlu1 %636  ;;  %v3971_v42 = vld [vmem:[#allocation2 + $0x20] sm:$0xff] }
 0x184   :  { %v662_v44 = vpop.permute.xlu2 %661  ;;  %v484_v45 = vpop.permute.xlu0 %483  ;;  %642 = vst.msk [vmem:[#allocation3 + $0x2c] sm:$0xf] %vm381_vm0, %v637_v41  ;;  %3595 = vmatmul.msk.bf16.vlgmr.msrb.gmra.mxu1 %vm893_vm1, %v3971_v42 }
 0x185   :  { %668 = vst.msk [vmem:[#allocation3 + $0x68] sm:$0xf] %vm381_vm0, %v662_v44  ;;  %v3973_v47 = vld [vmem:[#allocation2 + $0x30] sm:$0xff] }
 0x186   :  { %489 = vst.msk [vmem:[#allocation4 + $0x14] sm:$0xf] %vm381_vm0, %v484_v45  ;;  %3577 = vmatmul.msk.bf16.vlgmr.msra.gmra.mxu3 %vm893_vm1, %v3969_v46  ;;  %3613 = vmatmul.msk.bf16.vlgmr.msrb.gmra.mxu2 %vm893_vm1, %v3973_v47 }
 0x187   :  { %1117 = vmatpush.bf16.xpose.msra.mxu3 %v1108_v37 }
 0x189   :  { %562 = vrot.lane.b32.xlu1 %v4669_v1, %s4425_s21 }
 0x18a   :  { %564 = vrot.lane.b32.xlu0 %v4683_v7, %s4425_s21 }
 0x18b   :  { %v628_v48 = vpop.permute.xlu1 %627  ;;  %v3988_v49 = vld [vmem:[#allocation3 + $0x28] sm:$0xff] }
 0x18c   :  { %v556_v50 = vpop.permute.xlu2 %555  ;;  %v538_v51 = vpop.permute.xlu0 %537  ;;  %633 = vst.msk [vmem:[#allocation2 + $0x2c] sm:$0xf] %vm381_vm0, %v628_v48  ;;  %v1048_v52 = vsel %vm893_vm1, %v3988_v49, 0 }
 0x18d   :  { %561 = vst.msk [vmem:[#allocation3 + $0x5c] sm:$0xf] %vm381_vm0, %v556_v50  ;;  %1057 = vmatpush.bf16.xpose.msra.mxu1 %v1048_v52  ;;  %v4001_v45 = vld [vmem:[#allocation4 + $0x10] sm:$0xff] }
 0x18e   :  { %543 = vst.msk [vmem:[#allocation4 + $0x1c] sm:$0xf] %vm381_vm0, %v538_v51 }
 0x192   :  { %456 = vrot.lane.b32.xlu0 %v4683_v7, %s4423_s7 }
 0x193   :  { %v554_v53 = vpop.permute.xlu1 %553  ;;  %v3972_v54 = vld [vmem:[#allocation2 + $0x28] sm:$0xff] }
 0x194   :  { %v547_v55 = vpop.permute.xlu2 %546  ;;  %v424_v56 = vpop.permute.xlu0 %423  ;;  %560 = vst.msk [vmem:[#allocation3 + $0x58] sm:$0xf] %vm381_vm0, %v554_v53  ;;  %3604 = vmatmul.msk.bf16.vlgmr.msra.gmra.mxu1 %vm893_vm1, %v3972_v54 }
 0x195   :  { %552 = vst.msk [vmem:[#allocation2 + $0x5c] sm:$0xf] %vm381_vm0, %v547_v55  ;;  %v4002_v19 = vld [vmem:[#allocation4 + $0x18] sm:$0xff] }
 0x196   :  { %429 = vst.msk [vmem:[#allocation4 + $0xc] sm:$0xf] %vm381_vm0, %v424_v56  ;;  %3586 = vmatmul.msk.bf16.vlgmr.msrb.gmra.mxu3 %vm893_vm1, %v3970_v57 }
 0x19b   :  { %1365 = vmax.xlane.f32.xlu2 %v1364_v59  ;;  %v545_v60 = vpop.permute.xlu1 %544  ;;  %v3994_v61 = vld [vmem:[#allocation3 + $0x58] sm:$0xff] }
 0x19c   :  { %v772_v62 = vpop.permute.xlu2 %771  ;;  %v444_v63 = vpop.permute.xlu0 %443  ;;  %551 = vst.msk [vmem:[#allocation2 + $0x58] sm:$0xf] %vm381_vm0, %v545_v60  ;;  %v1228_v0 = vsel %vm893_vm1, %v3994_v61, 0 }
 0x19d   :  { %777 = vst.msk [vmem:[#allocation3 + $0x7c] sm:$0xf] %vm381_vm0, %v772_v62  ;;  %1237 = vmatpush.bf16.xpose.msrb.mxu3 %v1228_v0  ;;  %v4000_v56 = vld [vmem:[#allocation4 + $0x8] sm:$0xff] }
 0x19e   :  { %450 = vst.msk [vmem:[#allocation3 + $0x48] sm:$0xf] %vm381_vm0, %v444_v63 }
 0x1a3   :  { %v770_v2 = vpop.permute.xlu1 %769  ;;  %v3978_v18 = vld [vmem:[#allocation2 + $0x58] sm:$0xff] }
 0x1a4   :  { %v763_v3 = vpop.permute.xlu2 %762  ;;  %v433_v4 = vpop.permute.xlu0 %432  ;;  %776 = vst.msk [vmem:[#allocation3 + $0x78] sm:$0xf] %vm381_vm0, %v770_v2 }
 0x1a5   :  { %768 = vst.msk [vmem:[#allocation2 + $0x7c] sm:$0xf] %vm381_vm0, %v763_v3 }
 0x1a6   :  { %439 = vst.msk [vmem:[#allocation2 + $0x48] sm:$0xf] %vm381_vm0, %v433_v4  ;;  %3622 = vmatmul.msk.bf16.vlgmr.msra.gmra.mxu3 %vm893_vm1, %v3974_v5 }
 0x1ab   :  { %v761_v8 = vpop.permute.xlu1 %760  ;;  %v3998_v9 = vld [vmem:[#allocation3 + $0x78] sm:$0xff] }
 0x1ac   :  { %v601_v10 = vpop.permute.xlu2 %600  ;;  %v608_v11 = vpop.permute.xlu0 %607  ;;  %767 = vst.msk [vmem:[#allocation2 + $0x78] sm:$0xf] %vm381_vm0, %v761_v8  ;;  %v1348_v12 = vsel %vm893_vm1, %v3998_v9, 0 }
 0x1ad   :  { %606 = vst.msk [vmem:[#allocation2 + $0x64] sm:$0xf] %vm381_vm0, %v601_v10  ;;  %1357 = vmatpush.bf16.xpose.msra.mxu3 %v1348_v12 }
 0x1ae   :  { %614 = vst.msk [vmem:[#allocation3 + $0x60] sm:$0xf] %vm381_vm0, %v608_v11 }
 0x1b3   :  { %1416 = vmax.xlane.f32.xlu1 %v1415_v14  ;;  %v599_v15 = vpop.permute.xlu1 %598  ;;  %v3982_v29 = vld [vmem:[#allocation2 + $0x78] sm:$0xff] }
 0x1b4   :  { %v700_v16 = vpop.permute.xlu2 %699  ;;  %v653_v17 = vpop.permute.xlu0 %652  ;;  %605 = vst.msk [vmem:[#allocation2 + $0x60] sm:$0xf] %vm381_vm0, %v599_v15 }
 0x1b5   :  { %705 = vst.msk [vmem:[#allocation4 + $0x34] sm:$0xf] %vm381_vm0, %v700_v16 }
 0x1b6   :  { %659 = vst.msk [vmem:[#allocation2 + $0x68] sm:$0xf] %vm381_vm0, %v653_v17  ;;  %3658 = vmatmul.msk.bf16.vlgmr.msrb.gmra.mxu3 %vm893_vm1, %v3978_v18 }
 0x1b7   :  { %2269 = vmatpush.bf16.msrb.mxu3 %v4002_v19 }
 0x1bb   :  { %v446_v21 = vpop.permute.xlu1 %445  ;;  %v3979_v37 = vld [vmem:[#allocation2 + $0x60] sm:$0xff] }
 0x1bc   :  { %v644_v23 = vpop.permute.xlu2 %643  ;;  %v502_v24 = vpop.permute.xlu0 %501  ;;  %451 = vst.msk [vmem:[#allocation3 + $0x4c] sm:$0xf] %vm381_vm0, %v446_v21  ;;  %1368 = vmax.xlane.f32.xlu0 %v1367_v22 }
 0x1bd   :  { %650 = vst.msk [vmem:[#allocation4 + $0x28] sm:$0xf] %vm381_vm0, %v644_v23 }
 0x1be   :  { %507 = vst.msk [vmem:[#allocation3 + $0x54] sm:$0xf] %vm381_vm0, %v502_v24 }
 0x1c3   :  { %v435_v25 = vpop.permute.xlu1 %434  ;;  %v3992_v27 = vld [vmem:[#allocation3 + $0x48] sm:$0xff] }
 0x1c4   :  { %v493_v28 = vpop.permute.xlu0 %492  ;;  %440 = vst.msk [vmem:[#allocation2 + $0x4c] sm:$0xf] %vm381_vm0, %v435_v25  ;;  %1413 = vmax.xlane.f32.xlu0 %v1412_v26  ;;  %v1168_v30 = vsel %vm893_vm1, %v3992_v27, 0  ;;  %v511_v46 = vpop.permute.xlu2 %510 }
 0x1c5   :  { %498 = vst.msk [vmem:[#allocation2 + $0x54] sm:$0xf] %vm381_vm0, %v493_v28  ;;  %v3993_v31 = vld [vmem:[#allocation3 + $0x50] sm:$0xff]  ;;  %1177 = vmatpush.bf16.xpose.msrb.mxu1 %v1168_v30 }
 0x1c6   :  { %3694 = vmatmul.msk.bf16.vlgmr.msra.gmra.mxu3 %vm893_vm1, %v3982_v29  ;;  %v1198_v33 = vsel %vm893_vm1, %v3993_v31, 0  ;;  %516 = vst.msk [vmem:[#allocation4 + $0x54] sm:$0xf] %vm381_vm0, %v511_v46 }
 0x1c7   :  { %1207 = vmatpush.bf16.xpose.msra.mxu2 %v1198_v33 }
 0x1cb   :  { %v610_v32 = vpop.permute.xlu1 %609  ;;  %v3976_v34 = vld [vmem:[#allocation2 + $0x48] sm:$0xff] }
 0x1cc   :  { %v718_v35 = vpop.permute.xlu0 %717  ;;  %615 = vst.msk [vmem:[#allocation3 + $0x64] sm:$0xf] %vm381_vm0, %v610_v32  ;;  %v3977_v36 = vld [vmem:[#allocation2 + $0x50] sm:$0xff]  ;;  %3640 = vmatmul.msk.bf16.vlgmr.msrb.gmra.mxu1 %vm893_vm1, %v3976_v34  ;;  %v455_v50 = vpop.permute.xlu2 %454 }
 0x1cd   :  { %723 = vst.msk [vmem:[#allocation3 + $0x74] sm:$0xf] %vm381_vm0, %v718_v35 }
 0x1ce   :  { %3649 = vmatmul.msk.bf16.vlgmr.msra.gmra.mxu2 %vm893_vm1, %v3977_v36  ;;  %461 = vst.msk [vmem:[#allocation4 + $0x48] sm:$0xf] %vm381_vm0, %v455_v50 }
 0x1d3   :  { %v655_v38 = vpop.permute.xlu1 %654  ;;  %v3995_v39 = vld [vmem:[#allocation3 + $0x60] sm:$0xff] }
 0x1d4   :  { %v709_v40 = vpop.permute.xlu0 %708  ;;  %660 = vst.msk [vmem:[#allocation2 + $0x6c] sm:$0xf] %vm381_vm0, %v655_v38  ;;  %v3997_v41 = vld [vmem:[#allocation3 + $0x70] sm:$0xff]  ;;  %v1258_v42 = vsel %vm893_vm1, %v3995_v39, 0 }
 0x1d5   :  { %714 = vst.msk [vmem:[#allocation2 + $0x74] sm:$0xf] %vm381_vm0, %v709_v40  ;;  %1267 = vmatpush.bf16.xpose.msra.mxu0 %v1258_v42  ;;  %v1318_v44 = vsel %vm893_vm1, %v3997_v41, 0 }
 0x1d6   :  { %1327 = vmatpush.bf16.xpose.msrb.mxu2 %v1318_v44 }
 0x1db   :  { %v698_v47 = vpop.permute.xlu1 %697  ;;  %v3980_v60 = vld [vmem:[#allocation2 + $0x68] sm:$0xff] }
 0x1dc   :  { %v664_v48 = vpop.permute.xlu0 %663  ;;  %704 = vst.msk [vmem:[#allocation4 + $0x30] sm:$0xf] %vm381_vm0, %v698_v47  ;;  %v3981_v49 = vld [vmem:[#allocation2 + $0x70] sm:$0xff]  ;;  %3667 = vmatmul.msk.bf16.vlgmr.msra.gmra.mxu0 %vm893_vm1, %v3979_v37 }
 0x1dd   :  { %2185 = vmatpush.bf16.msrb.mxu0 %v3999_v43  ;;  %669 = vst.msk [vmem:[#allocation3 + $0x6c] sm:$0xf] %vm381_vm0, %v664_v48 }
 0x1de   :  { %2241 = vmatpush.bf16.msra.mxu2 %v4001_v45 }
 0x1df   :  { %3685 = vmatmul.msk.bf16.vlgmr.msrb.gmra.mxu2 %vm893_vm1, %v3981_v49 }
 0x1e3   :  { %v752_v51 = vpop.permute.xlu1 %751  ;;  %v4005_v52 = vld [vmem:[#allocation4 + $0x30] sm:$0xff] }
 0x1e4   :  { %v590_v53 = vpop.permute.xlu0 %589  ;;  %758 = vst.msk [vmem:[#allocation4 + $0x38] sm:$0xf] %vm381_vm0, %v752_v51  ;;  %v3996_v54 = vld [vmem:[#allocation3 + $0x68] sm:$0xff]  ;;  %2353 = vmatpush.bf16.msrb.mxu2 %v4005_v52 }
 0x1e5   :  { %596 = vst.msk [vmem:[#allocation4 + $0x20] sm:$0xf] %vm381_vm0, %v590_v53  ;;  %v1288_v55 = vsel %vm893_vm1, %v3996_v54, 0 }
 0x1e6   :  { %1297 = vmatpush.bf16.xpose.msra.mxu1 %v1288_v55 }
 0x1eb   :  { %v754_v57 = vpop.permute.xlu1 %753 }
 0x1ec   :  { %v592_v59 = vpop.permute.xlu0 %591  ;;  %759 = vst.msk [vmem:[#allocation4 + $0x3c] sm:$0xf] %vm381_vm0, %v754_v57 }
 0x1ed   :  { %597 = vst.msk [vmem:[#allocation4 + $0x24] sm:$0xf] %vm381_vm0, %v592_v59  ;;  %3676 = vmatmul.msk.bf16.vlgmr.msra.gmra.mxu1 %vm893_vm1, %v3980_v60 }
 0x1ee   :  { %2213 = vmatpush.bf16.msrb.mxu1 %v4000_v56 }
 0x1f3   :  { %v646_v61 = vpop.permute.xlu1 %645  ;;  %v4006_v62 = vld [vmem:[#allocation4 + $0x38] sm:$0xff] }
 0x1f4   :  { %651 = vst.msk [vmem:[#allocation4 + $0x2c] sm:$0xf] %vm381_vm0, %v646_v61  ;;  %v4003_v63 = vld [vmem:[#allocation4 + $0x20] sm:$0xff]  ;;  %v509_v0 = vpop.permute.xlu0 %508  ;;  %2381 = vmatpush.bf16.msra.mxu3 %v4006_v62 }
 0x1f5   :  { %515 = vst.msk [vmem:[#allocation4 + $0x50] sm:$0xf] %vm381_vm0, %v509_v0  ;;  %2297 = vmatpush.bf16.msra.mxu0 %v4003_v63 }
 0x1f9   :  { %v4847_v10 = vpop.f32.mrf.mxu3 }
 0x1fa   :  { %v1370_v15 = vsel %vm893_vm1, %v4847_v10, -inf }
 0x1fb   :  { %v4004_v2 = vld [vmem:[#allocation4 + $0x28] sm:$0xff]  ;;  %v563_v4 = vpop.permute.xlu1 %562 }
 0x1fc   :  { %v565_v3 = vpop.permute.xlu0 %564  ;;  %2325 = vmatpush.bf16.msra.mxu1 %v4004_v2  ;;  %569 = vst.msk [vmem:[#allocation4 + $0x58] sm:$0xf] %vm381_vm0, %v563_v4 }
 0x1fd   :  { %570 = vst.msk [vmem:[#allocation4 + $0x5c] sm:$0xf] %vm381_vm0, %v565_v3 }
 0x201   :  { %v4842_v5 = vpop.f32.mrf.mxu1  ;;  %v4860_v19 = vpop.f32.mrf.mxu3 }
 0x202   :  { %v1388_v8 = vsel %vm893_vm1, %v4842_v5, -inf  ;;  %v1373_v26 = vsel %vm893_vm1, %v4860_v19, -inf }
 0x203   :  { %1389 = vmax.xlane.f32.xlu1 %v1388_v8 }
 0x204   :  { %v457_v9 = vpop.permute.xlu0 %456 }
 0x205   :  { %462 = vst.msk [vmem:[#allocation4 + $0x4c] sm:$0xf] %vm381_vm0, %v457_v9 }
 0x209   :  { %v4849_v11 = vpop.f32.mrf.mxu2  ;;  %v4851_v12 = vpop.f32.mrf.mxu1 }
 0x20a   :  { %v1400_v14 = vsel %vm893_vm1, %v4849_v11, -inf  ;;  %v1391_v16 = vsel %vm893_vm1, %v4851_v12, -inf  ;;  %v4878_v29 = vpop.f32.mrf.mxu3 }
 0x20b   :  { %1401 = vmax.xlane.f32.xlu0 %v1400_v14  ;;  %1371 = vmax.xlane.f32.xlu1 %v1370_v15  ;;  %v1376_v54 = vsel %vm893_vm1, %v4878_v29, -inf }
 0x20c   :  { %1392 = vmax.xlane.f32.xlu2 %v1391_v16 }
 0x20e   :  { %v1366_v17 = vpop.xlane.xlu2 %1365 }
 0x20f   :  { %v1460_v18 = vsub.f32 %v4777_v58, %v1366_v17 }
 0x211   :  { %v1492_v21 = vmul.f32 1.442695, %v1460_v18  ;;  %v4862_v22 = vpop.f32.mrf.mxu2  ;;  %v4864_v23 = vpop.f32.mrf.mxu1 }
 0x212   :  { %v1403_v24 = vsel %vm893_vm1, %v4862_v22, -inf  ;;  %v1394_v25 = vsel %vm893_vm1, %v4864_v23, -inf  ;;  %v4883_v34 = vpop.f32.mrf.mxu3 }
 0x213   :  { %4083 = vpow2.f32 %v1492_v21  ;;  %1404 = vmax.xlane.f32.xlu1 %v1403_v24  ;;  %1395 = vmax.xlane.f32.xlu0 %v1394_v25  ;;  %v1379_v59 = vsel %vm893_vm1, %v4883_v34, -inf }
 0x214   :  { %1374 = vmax.xlane.f32.xlu2 %v1373_v26 }
 0x219   :  { %v4872_v58 = vpop.eup %4083  ;;  %v4876_v28 = vpop.f32.mrf.mxu1 }
 0x21a   :  { %v1556_v27 = vsel %vm893_vm1, %v4872_v58, 0.0  ;;  %v1397_v30 = vsel %vm893_vm1, %v4876_v28, -inf  ;;  %v4889_v38 = vpop.f32.mrf.mxu3 }
 0x21b   :  { %1557 = vadd.xlane.f32.xlu1 %v1556_v27  ;;  %v1382_v39 = vsel %vm893_vm1, %v4889_v38, -inf }
 0x222   :  { %v4893_v40 = vpop.f32.mrf.mxu3 }
 0x223   :  { %1398 = vmax.xlane.f32.xlu1 %v1397_v30 }
 0x226   :  { %v1417_v31 = vpop.xlane.xlu1 %1416 }
 0x227   :  { %v1477_v33 = vsub.f32 %v4796_v13, %v1417_v31 }
 0x229   :  { %v1526_v32 = vmul.f32 1.442695, %v1477_v33 }
 0x22a   :  { %v4895_v41 = vpop.f32.mrf.mxu3 }
 0x22b   :  { %4085 = vpow2.f32 %v1526_v32 }
 0x22f   :  { %v1369_v47 = vpop.xlane.xlu0 %1368 }
 0x230   :  { %v1461_v49 = vsub.f32 %v4804_v20, %v1369_v47 }
 0x231   :  { %v4885_v35 = vpop.eup %4085 }
 0x232   :  { %v1607_v36 = vsel %vm893_vm1, %v4885_v35, 0.0  ;;  %v4899_v42 = vpop.f32.mrf.mxu3  ;;  %v1494_v55 = vmul.f32 1.442695, %v1461_v49 }
 0x233   :  { %1608 = vadd.xlane.f32.xlu1 %v1607_v36  ;;  %v1409_v36 = vsel %vm893_vm1, %v4899_v42, -inf }
 0x234   :  { %4087 = vpow2.f32 %v1494_v55 }
 0x237   :  { %v1414_v56 = vpop.xlane.xlu0 %1413 }
 0x238   :  { %v1476_v20 = vsub.f32 %v4788_v6, %v1414_v56 }
 0x23a   :  { %v4914_v50 = vpop.f32.mrf.mxu3  ;;  %v1524_v62 = vmul.f32 1.442695, %v1476_v20  ;;  %v4933_v63 = vpop.eup %4087 }
 0x23b   :  { %1383 = vmax.xlane.f32.xlu1 %v1382_v39  ;;  %v1559_v2 = vsel %vm893_vm1, %v4933_v63, 0.0  ;;  %v1430_v16 = vsel %vm893_vm1, %v4914_v50, -inf }
 0x23c   :  { %4089 = vpow2.f32 %v1524_v62 }
 0x242   :  { %v4931_v61 = vpop.f32.mrf.mxu3  ;;  %v4945_v9 = vpop.eup %4089 }
 0x243   :  { %v1604_v15 = vsel %vm893_vm1, %v4945_v9, 0.0 }
 0x249   :  { %v4901_v43 = vpop.f32.mrf.mxu1 }
 0x24a   :  { %v4943_v4 = vpop.f32.mrf.mxu3  ;;  %v1418_v25 = vsel %vm893_vm1, %v4901_v43, -inf }
 0x251   :  { %v4897_v13 = vpop.f32.mrf.mxu2  ;;  %v4916_v51 = vpop.f32.mrf.mxu1 }
 0x252   :  { %v1424_v60 = vsel %vm893_vm1, %v4897_v13, -inf  ;;  %v1421_v14 = vsel %vm893_vm1, %v4916_v51, -inf  ;;  %v4953_v21 = vpop.f32.mrf.mxu3 }
 0x253   :  { %v1457_v26 = vsel %vm893_vm1, %v4953_v21, -inf }
 0x259   :  { %v4903_v44 = vpop.f32.mrf.mxu2  ;;  %v4905_v45 = vpop.f32.mrf.mxu0 }
 0x25a   :  { %v1436_v46 = vsel %vm893_vm1, %v4905_v45, -inf  ;;  %v1427_v6 = vsel %vm893_vm1, %v4903_v44, -inf }
 0x25b   :  { %1437 = vmax.xlane.f32.xlu2 %v1436_v46  ;;  %v1385_v46 = vsel %vm893_vm1, %v4893_v40, -inf }
 0x261   :  { %v4911_v48 = vpop.f32.mrf.mxu0 }
 0x262   :  { %v4909_v37 = vpop.f32.mrf.mxu2  ;;  %v1439_v53 = vsel %vm893_vm1, %v4911_v48, -inf }
 0x263   :  { %v1448_v52 = vsel %vm893_vm1, %v4909_v37, -inf  ;;  %1440 = vmax.xlane.f32.xlu0 %v1439_v53  ;;  %1377 = vmax.xlane.f32.xlu2 %v1376_v54 }
 0x264   :  { %1449 = vmax.xlane.f32.xlu1 %v1448_v52 }
 0x26a   :  { %v4925_v57 = vpop.f32.mrf.mxu1  ;;  %v4970_v53 = vpop.f32.mrf.mxu2 }
 0x26b   :  { %1380 = vmax.xlane.f32.xlu0 %v1379_v59  ;;  %1425 = vmax.xlane.f32.xlu2 %v1424_v60  ;;  %v1442_v24 = vsel %vm893_vm1, %v4925_v57, -inf }
 0x272   :  { %v4935_v0 = vpop.f32.mrf.mxu1 }
 0x273   :  { %1428 = vmax.xlane.f32.xlu0 %v1427_v6  ;;  %v1445_v3 = vsel %vm893_vm1, %v4935_v0, -inf  ;;  %1560 = vadd.xlane.f32.xlu2 %v1559_v2  ;;  %v1406_v2 = vsel %vm893_vm1, %v4895_v41, -inf }
 0x274   :  { %1446 = vmax.xlane.f32.xlu1 %v1445_v3 }
 0x276   :  { %v1390_v8 = vpop.xlane.xlu1 %1389 }
 0x277   :  { %v1468_v62 = vsub.f32 %v4842_v5, %v1390_v8 }
 0x27b   :  { %1422 = vmax.xlane.f32.xlu0 %v1421_v14  ;;  %1605 = vadd.xlane.f32.xlu2 %v1604_v15  ;;  %v1508_v14 = vmul.f32 1.442695, %v1468_v62 }
 0x27c   :  { %1431 = vmax.xlane.f32.xlu1 %v1430_v16  ;;  %v1433_v16 = vsel %vm893_vm1, %v4931_v61, -inf }
 0x27e   :  { %v1372_v17 = vpop.xlane.xlu1 %1371 }
 0x27f   :  { %v1393_v18 = vpop.xlane.xlu2 %1392  ;;  %v1462_v33 = vsub.f32 %v4847_v10, %v1372_v17  ;;  %v1454_v10 = vsel %vm893_vm1, %v4943_v4, -inf }
 0x281   :  { %v1496_v47 = vmul.f32 1.442695, %v1462_v33 }
 0x283   :  { %1443 = vmax.xlane.f32.xlu0 %v1442_v24  ;;  %1419 = vmax.xlane.f32.xlu2 %v1418_v25  ;;  %v1469_v25 = vsub.f32 %v4851_v12, %v1393_v18 }
 0x284   :  { %1458 = vmax.xlane.f32.xlu1 %v1457_v26 }
 0x286   :  { %v1405_v27 = vpop.xlane.xlu1 %1404 }
 0x287   :  { %v1375_v30 = vpop.xlane.xlu2 %1374  ;;  %v1473_v39 = vsub.f32 %v4862_v22, %v1405_v27  ;;  %v1451_v22 = vsel %vm893_vm1, %v4970_v53, -inf  ;;  %v1510_v27 = vmul.f32 1.442695, %v1469_v25 }
 0x288   :  { %v1463_v31 = vsub.f32 %v4860_v19, %v1375_v30 }
 0x289   :  { %v1518_v52 = vmul.f32 1.442695, %v1473_v39 }
 0x28a   :  { %v1498_v32 = vmul.f32 1.442695, %v1463_v31 }
 0x28b   :  { %1410 = vmax.xlane.f32.xlu0 %v1409_v36  ;;  %1386 = vmax.xlane.f32.xlu2 %v1385_v46 }
 0x28c   :  { %4091 = vpow2.f32 %v1498_v32 }
 0x28d   :  { %4093 = vpow2.f32 %v1496_v47 }
 0x28e   :  { %v4968_v49 = vpop.xlane.xlu1 %1557  ;;  %4095 = vpow2.f32 %v1518_v52 }
 0x28f   :  { %vm1657_vm3 = vweird.f32 %v4968_v49 }
 0x292   :  { %v4974_v19 = vpop.eup %4091 }
 0x293   :  { %1455 = vmax.xlane.f32.xlu0 %v1454_v10  ;;  %1452 = vmax.xlane.f32.xlu2 %v1451_v22  ;;  %v1565_v54 = vsel %vm893_vm1, %v4974_v19, 0.0  ;;  %v4980_v56 = vpop.eup %4093 }
 0x294   :  { %1566 = vadd.xlane.f32.xlu1 %v1565_v54  ;;  %v4983_v59 = vpop.eup %4095  ;;  %v1562_v6 = vsel %vm893_vm1, %v4980_v56, 0.0 }
 0x295   :  { %v1595_v3 = vsel %vm893_vm1, %v4983_v59, 0.0 }
 0x296   :  { %v1399_v55 = vpop.xlane.xlu1 %1398 }
 0x297   :  { %v1471_v20 = vsub.f32 %v4876_v28, %v1399_v55  ;;  %v1402_v28 = vpop.xlane.xlu0 %1401 }
 0x298   :  { %v1472_v5 = vsub.f32 %v4849_v11, %v1402_v28 }
 0x299   :  { %v1514_v60 = vmul.f32 1.442695, %v1471_v20 }
 0x29a   :  { %v1516_v17 = vmul.f32 1.442695, %v1472_v5 }
 0x29b   :  { %4097 = vpow2.f32 %v1514_v60  ;;  %1563 = vadd.xlane.f32.xlu0 %v1562_v6  ;;  %1407 = vmax.xlane.f32.xlu2 %v1406_v2 }
 0x29c   :  { %1596 = vadd.xlane.f32.xlu1 %v1595_v3  ;;  %4099 = vpow2.f32 %v1508_v14 }
 0x29d   :  { %4101 = vpow2.f32 %v1516_v17 }
 0x29e   :  { %4103 = vpow2.f32 %v1510_v27 }
 0x29f   :  { %v1396_v11 = vpop.xlane.xlu0 %1395 }
 0x2a0   :  { %v1470_v31 = vsub.f32 %v4864_v23, %v1396_v11 }
 0x2a1   :  { %v4992_v15 = vpop.eup %4097 }
 0x2a2   :  { %v1589_v8 = vsel %vm893_vm1, %v4992_v15, 0.0  ;;  %v4999_v24 = vpop.eup %4099  ;;  %v1512_v32 = vmul.f32 1.442695, %v1470_v31 }
 0x2a3   :  { %1590 = vadd.xlane.f32.xlu0 %v1589_v8  ;;  %1434 = vmax.xlane.f32.xlu2 %v1433_v16  ;;  %v1580_v26 = vsel %vm893_vm1, %v4999_v24, 0.0  ;;  %v5004_v30 = vpop.eup %4101 }
 0x2a4   :  { %v1592_v33 = vsel %vm893_vm1, %v5004_v30, 0.0  ;;  %v5009_v36 = vpop.eup %4103  ;;  %4105 = vpow2.f32 %v1512_v32 }
 0x2a5   :  { %v1583_v12 = vsel %vm893_vm1, %v5009_v36, 0.0 }
 0x2a6   :  { %v5018_v52 = vpop.xlane.xlu1 %1608 }
 0x2a7   :  { %vm1912_vm8 = vweird.f32 %v5018_v52 }
 0x2aa   :  { %v5013_v18 = vpop.eup %4105 }
 0x2ab   :  { %1581 = vadd.xlane.f32.xlu2 %v1580_v26  ;;  %v1586_v39 = vsel %vm893_vm1, %v5013_v18, 0.0 }
 0x2b3   :  { %1593 = vadd.xlane.f32.xlu2 %v1592_v33 }
 0x2bb   :  { %1584 = vadd.xlane.f32.xlu2 %v1583_v12 }
 0x2c3   :  { %1587 = vadd.xlane.f32.xlu2 %v1586_v39 }
 0x2ce   :  { %v1438_v46 = vpop.xlane.xlu2 %1437 }
 0x2cf   :  { %v1484_v23 = vsub.f32 %v4905_v45, %v1438_v46  ;;  %v1384_v45 = vpop.xlane.xlu1 %1383 }
 0x2d0   :  { %v1466_v12 = vsub.f32 %v4889_v38, %v1384_v45  ;;  %v1661_v38 = vand.u32 2147483647, %v4968_v49 }
 0x2d1   :  { %v1540_v47 = vmul.f32 1.442695, %v1484_v23 }
 0x2d2   :  { %vm1662_vm5 = vcmp.eq.f32.partialorder %v1661_v38, 8.507059e+37 }
 0x2d3   :  { %4107 = vpow2.f32 %v1540_v47 }
 0x2d4   :  { %4109 = vrcp.f32 %v4968_v49 }
 0x2d5   :  { %4111 = vrcp.f32 %v5018_v52 }
 0x2d6   :  { %v1441_v10 = vpop.xlane.xlu0 %1440  ;;  %v1378_v22 = vpop.xlane.xlu2 %1377 }
 0x2d7   :  { %v1464_v54 = vsub.f32 %v4878_v29, %v1378_v22  ;;  %v1485_v16 = vsub.f32 %v4911_v48, %v1441_v10  ;;  %v5035_v26 = vpop.xlane.xlu1 %1449  ;;  %v1663_v22 = vand.u32 2147483648, %v4968_v49 }
 0x2d9   :  { %v5022_v55 = vpop.eup %4107  ;;  %v1500_v20 = vmul.f32 1.442695, %v1464_v54  ;;  %v1542_v11 = vmul.f32 1.442695, %v1485_v16 }
 0x2da   :  { %v1628_v60 = vsel %vm893_vm1, %v5022_v55, 0.0  ;;  %v4110_v62 = vpop.eup %4109 }
 0x2db   :  { %1629 = vadd.xlane.f32.xlu1 %v1628_v60  ;;  %4113 = vpow2.f32 %v1500_v20  ;;  %v1653_v6 = vmul.f32 %v4110_v62, %v4968_v49  ;;  %v5030_v5 = vpop.eup %4111  ;;  %vm1658_vm2 = vweird.f32 %v4110_v62  ;;  %v1504_v20 = vmul.f32 1.442695, %v1466_v12 }
 0x2dc   :  { %vm1659_vm4 = vmor %vm1657_vm3, %vm1658_vm2  ;;  %vm1913_vm6 = vweird.f32 %v5030_v5 }
 0x2dd   :  { %v1654_v8 = vsub.f32 1.0, %v1653_v6  ;;  %vm5083_vm9 = vmor %vm1912_vm8, %vm1913_vm6 }
 0x2de   :  { %v1381_v2 = vpop.xlane.xlu0 %1380  ;;  %v1426_v3 = vpop.xlane.xlu2 %1425 }
 0x2df   :  { %v1465_v14 = vsub.f32 %v4883_v34, %v1381_v2  ;;  %v1480_v29 = vsub.f32 %v4897_v13, %v1426_v3  ;;  %v1655_v34 = vmul.f32 %v4110_v62, %v1654_v8  ;;  %v1908_v13 = vmul.f32 %v5030_v5, %v5018_v52 }
 0x2e0   :  { %v1664_v3 = vor.u32 1.1754944e-38, %v1663_v22 }
 0x2e1   :  { %v1502_v28 = vmul.f32 1.442695, %v1465_v14  ;;  %v1532_v17 = vmul.f32 1.442695, %v1480_v29  ;;  %v5033_v25 = vpop.eup %4113  ;;  %v1656_v23 = vadd.f32 %v4110_v62, %v1655_v34  ;;  %v1909_v47 = vsub.f32 1.0, %v1908_v13 }
 0x2e2   :  { %v1568_v27 = vsel %vm893_vm1, %v5033_v25, 0.0  ;;  %v1918_v34 = vand.u32 2147483648, %v5018_v52 }
 0x2e3   :  { %4115 = vpow2.f32 %v1502_v28  ;;  %1569 = vadd.xlane.f32.xlu1 %v1568_v27  ;;  %v1660_v45 = vsel %vm1659_vm4, %v4110_v62, %v1656_v23  ;;  %v1910_v6 = vmul.f32 %v5030_v5, %v1909_v47 }
 0x2e4   :  { %4117 = vpow2.f32 %v1532_v17  ;;  %v1665_v8 = vsel %vm1662_vm5, %v1664_v3, %v1660_v45  ;;  %v1919_v38 = vor.u32 1.1754944e-38, %v1918_v34 }
 0x2e5   :  { %v1911_v62 = vadd.f32 %v5030_v5, %v1910_v6 }
 0x2e6   :  { %v1429_v31 = vpop.xlane.xlu0 %1428  ;;  %v5041_v33 = vpop.xlane.xlu2 %1560 }
 0x2e7   :  { %v1481_v48 = vsub.f32 %v4903_v44, %v1429_v31  ;;  %4119 = vrcp.f32 %v5041_v33  ;;  %v5057_v54 = vpop.xlane.xlu1 %1446  ;;  %v1678_v17 = vand.u32 2147483648, %v5041_v33  ;;  %v1666_v31 = vmul.f32 %v4872_v58, %v1665_v8 }
 0x2e8   :  { %4121 = vpow2.f32 %v1542_v11  ;;  %v1676_v11 = vand.u32 2147483647, %v5041_v33  ;;  %vm1672_vm10 = vweird.f32 %v5041_v33  ;;  %v1915_v58 = vsel %vm5083_vm9, %v5030_v5, %v1911_v62 }
 0x2e9   :  { %v5045_v32 = vpop.eup %4115  ;;  %v1534_v39 = vmul.f32 1.442695, %v1481_v48  ;;  %v1916_v48 = vand.u32 2147483647, %v5018_v52  ;;  %v2132_v6 = vpack.c.bf16 %v1666_v31, %v1666_v31  ;;  %v1488_v62 = vsub.f32 %v4909_v37, %v5035_v26 }
 0x2ea   :  { %v5048_v46 = vpop.eup %4117  ;;  %v1571_v10 = vsel %vm893_vm1, %v5045_v32, 0.0  ;;  %vm1677_vm12 = vcmp.eq.f32.partialorder %v1676_v11, 8.507059e+37 }
 0x2eb   :  { %4123 = vpow2.f32 %v1534_v39  ;;  %1572 = vadd.xlane.f32.xlu2 %v1571_v10  ;;  %v1616_v44 = vsel %vm893_vm1, %v5048_v46, 0.0  ;;  %v1679_v10 = vor.u32 1.1754944e-38, %v1678_v17  ;;  %vm1917_vm13 = vcmp.eq.f32.partialorder %v1916_v48, 8.507059e+37 }
 0x2ec   :  { %1617 = vadd.xlane.f32.xlu1 %v1616_v44  ;;  %v1920_v5 = vsel %vm1917_vm13, %v1919_v38, %v1915_v58  ;;  %v1548_v37 = vmul.f32 1.442695, %v1488_v62 }
 0x2ed   :  { %v4120_v60 = vpop.eup %4119 }
 0x2ee   :  { %v5061_v2 = vpop.xlane.xlu0 %1422  ;;  %v1668_v14 = vmul.f32 %v4120_v60, %v5041_v33  ;;  %v5064_v29 = vpop.xlane.xlu2 %1605  ;;  %vm1673_vm7 = vweird.f32 %v4120_v60 }
 0x2ef   :  { %v5066_v28 = vpop.eup %4121  ;;  %4125 = vrcp.f32 %v5064_v29  ;;  %vm1674_vm11 = vmor %vm1672_vm10, %vm1673_vm7  ;;  %v5091_v22 = vpop.xlane.xlu1 %1431  ;;  %v1903_v17 = vand.u32 2147483648, %v5064_v29  ;;  %v1901_v11 = vand.u32 2147483647, %v5064_v29  ;;  %vm1897_vm15 = vweird.f32 %v5064_v29 }
 0x2f0   :  { %4127 = vpow2.f32 %v1504_v20  ;;  %v1669_v16 = vsub.f32 1.0, %v1668_v14  ;;  %v1631_v12 = vsel %vm893_vm1, %v5066_v28, 0.0 }
 0x2f1   :  { %v5069_v49 = vpop.eup %4123  ;;  %v1904_v26 = vor.u32 1.1754944e-38, %v1903_v17  ;;  %vm1902_vm3 = vcmp.eq.f32.partialorder %v1901_v11, 8.507059e+37 }
 0x2f2   :  { %v1619_v27 = vsel %vm893_vm1, %v5069_v49, 0.0  ;;  %v1670_v13 = vmul.f32 %v4120_v60, %v1669_v16 }
 0x2f3   :  { %1620 = vadd.xlane.f32.xlu2 %v1619_v27 }
 0x2f4   :  { %v1671_v23 = vadd.f32 %v4120_v60, %v1670_v13  ;;  %1632 = vadd.xlane.f32.xlu1 %v1631_v12 }
 0x2f5   :  { %v4126_v47 = vpop.eup %4125 }
 0x2f6   :  { %v5093_v52 = vpop.xlane.xlu0 %1443  ;;  %v5095_v44 = vpop.eup %4127  ;;  %v1675_v20 = vsel %vm1674_vm11, %v4120_v60, %v1671_v23  ;;  %v1893_v45 = vmul.f32 %v4126_v47, %v5064_v29  ;;  %vm1898_vm14 = vweird.f32 %v4126_v47  ;;  %v1479_v29 = vsub.f32 %v4916_v51, %v5061_v2 }
 0x2f7   :  { %v1420_v33 = vpop.xlane.xlu2 %1419  ;;  %v1680_v3 = vsel %vm1677_vm12, %v1679_v10, %v1675_v20  ;;  %v1574_v60 = vsel %vm893_vm1, %v5095_v44, 0.0  ;;  %vm1899_vm2 = vmor %vm1897_vm15, %vm1898_vm14  ;;  %v5108_v38 = vpop.xlane.xlu1 %1458  ;;  %v4007_v20 = vld [vmem:[#allocation4 + $0x40] sm:$0xff] }
 0x2f8   :  { %v1478_v14 = vsub.f32 %v4901_v43, %v1420_v33  ;;  %v1681_v8 = vmul.f32 %v4933_v63, %v1680_v3  ;;  %v1894_v16 = vsub.f32 1.0, %v1893_v45  ;;  %v2166_v43 = vunpack.c.l.b16 %v2132_v6 }
 0x2f9   :  { %v1921_v63 = vmul.f32 %v4885_v35, %v1920_v5  ;;  %v1530_v5 = vmul.f32 1.442695, %v1479_v29 }
 0x2fa   :  { %v1528_v27 = vmul.f32 1.442695, %v1478_v14  ;;  %v2133_v34 = vpack.c.bf16 %v1681_v8, %v1681_v8  ;;  %v1895_v13 = vmul.f32 %v4126_v47, %v1894_v16 }
 0x2fb   :  { %1575 = vadd.xlane.f32.xlu2 %v1574_v60  ;;  %v2149_v45 = vpack.c.bf16 %v1921_v63, %v1921_v63 }
 0x2fc   :  { %4129 = vpow2.f32 %v1528_v27  ;;  %v2167_v31 = vunpack.c.l.b16 %v2133_v34  ;;  %v1896_v48 = vadd.f32 %v4126_v47, %v1895_v13 }
 0x2fd   :  { %4131 = vpow2.f32 %v1548_v37  ;;  %v5118_v3 = vunpack.c.l.b16 %v2149_v45 }
 0x2fe   :  { %v1411_v12 = vpop.xlane.xlu0 %1410  ;;  %v1900_v39 = vsel %vm1899_vm2, %v4126_v47, %v1896_v48  ;;  %v2168_v58 = vpack.c.b16 %v2167_v31, %v2166_v43 }
 0x2ff   :  { %v1387_v23 = vpop.xlane.xlu2 %1386  ;;  %v1905_v10 = vsel %vm1902_vm3, %v1904_v26, %v1900_v39  ;;  %v1475_v17 = vsub.f32 %v4899_v42, %v1411_v12 }
 0x300   :  { %v1906_v33 = vmul.f32 %v4945_v9, %v1905_v10  ;;  %3699 = vmatmul.msk.bf16.vlgmr.msrb.gmra.mxu0 %vm893_vm1, %v2168_v58  ;;  %v1467_v27 = vsub.f32 %v4893_v40, %v1387_v23  ;;  %v1486_v40 = vsub.f32 %v4925_v57, %v5093_v52 }
 0x301   :  { %2409 = vmatpush.bf16.msrb.mxu0 %v4007_v20  ;;  %v1522_v13 = vmul.f32 1.442695, %v1475_v17 }
 0x302   :  { %v5112_v35 = vpop.eup %4129  ;;  %v2148_v47 = vpack.c.bf16 %v1906_v33, %v1906_v33  ;;  %v1506_v11 = vmul.f32 1.442695, %v1467_v27  ;;  %v1544_v52 = vmul.f32 1.442695, %v1486_v40 }
 0x303   :  { %v1610_v6 = vsel %vm893_vm1, %v5112_v35, 0.0  ;;  %v5126_v62 = vpop.eup %4131 }
 0x304   :  { %1611 = vadd.xlane.f32.xlu0 %v1610_v6  ;;  %v5120_v14 = vunpack.c.l.b16 %v2148_v47  ;;  %v1640_v34 = vsel %vm893_vm1, %v5126_v62, 0.0 }
 0x306   :  { %v5122_v9 = vpop.xlane.xlu0 %1455  ;;  %v2392_v16 = vpack.c.b16 %v5118_v3, %v5120_v14 }
 0x307   :  { %v1453_v8 = vpop.xlane.xlu2 %1452  ;;  %v1567_v2 = vpop.xlane.xlu1 %1566 }
 0x308   :  { %v1489_v51 = vsub.f32 %v4970_v53, %v1453_v8  ;;  %4133 = vrcp.f32 %v1567_v2  ;;  %v1708_v12 = vand.u32 2147483648, %v1567_v2  ;;  %v1706_v10 = vand.u32 2147483647, %v1567_v2 }
 0x309   :  { %4135 = vpow2.f32 %v1530_v5  ;;  %vm1702_vm5 = vweird.f32 %v1567_v2 }
 0x30a   :  { %v1550_v60 = vmul.f32 1.442695, %v1489_v51  ;;  %v1709_v29 = vor.u32 1.1754944e-38, %v1708_v12  ;;  %vm1707_vm7 = vcmp.eq.f32.partialorder %v1706_v10, 8.507059e+37  ;;  %v1487_v51 = vsub.f32 %v4935_v0, %v5057_v54 }
 0x30c   :  { %4137 = vpow2.f32 %v1550_v60  ;;  %1641 = vadd.xlane.f32.xlu0 %v1640_v34  ;;  %v1546_v54 = vmul.f32 1.442695, %v1487_v51 }
 0x30d   :  { %724 = vrot.lane.b32.xlu1 %v4669_v1, %s4427_s3 }
 0x30e   :  { %v1564_v43 = vpop.xlane.xlu0 %1563  ;;  %v4134_v53 = vpop.eup %4133 }
 0x30f   :  { %v1408_v63 = vpop.xlane.xlu2 %1407  ;;  %4139 = vrcp.f32 %v1564_v43  ;;  %v5135_v42 = vpop.eup %4135  ;;  %v1698_v31 = vmul.f32 %v4134_v53, %v1567_v2  ;;  %vm1703_vm4 = vweird.f32 %v4134_v53  ;;  %v1693_v17 = vand.u32 2147483648, %v1564_v43 }
 0x310   :  { %4141 = vpow2.f32 %v1522_v13  ;;  %v1474_v26 = vsub.f32 %v4895_v41, %v1408_v63  ;;  %v1613_v23 = vsel %vm893_vm1, %v5135_v42, 0.0  ;;  %vm1704_vm6 = vmor %vm1702_vm5, %vm1703_vm4  ;;  %v1691_v60 = vand.u32 2147483647, %v1564_v43 }
 0x311   :  { %4143 = vpow2.f32 %v1506_v11  ;;  %v1699_v37 = vsub.f32 1.0, %v1698_v31  ;;  %vm1687_vm9 = vweird.f32 %v1564_v43  ;;  %v1694_v0 = vor.u32 1.1754944e-38, %v1693_v17 }
 0x312   :  { %v5139_v48 = vpop.eup %4137  ;;  %v1520_v45 = vmul.f32 1.442695, %v1474_v26  ;;  %4145 = vpow2.f32 %v1544_v52  ;;  %vm1692_vm11 = vcmp.eq.f32.partialorder %v1691_v60, 8.507059e+37 }
 0x313   :  { %v1643_v39 = vsel %vm893_vm1, %v5139_v48, 0.0  ;;  %v1700_v58 = vmul.f32 %v4134_v53, %v1699_v37 }
 0x314   :  { %1644 = vadd.xlane.f32.xlu2 %v1643_v39  ;;  %1614 = vadd.xlane.f32.xlu0 %v1613_v23  ;;  %4147 = vpow2.f32 %v1520_v45 }
 0x315   :  { %v4140_v57 = vpop.eup %4139  ;;  %v1701_v20 = vadd.f32 %v4134_v53, %v1700_v58  ;;  %726 = vrot.lane.b32.xlu1 %v4683_v7, %s4427_s3 }
 0x316   :  { %v1683_v33 = vmul.f32 %v4140_v57, %v1564_v43  ;;  %v5148_v41 = vpop.eup %4141  ;;  %vm1688_vm8 = vweird.f32 %v4140_v57  ;;  %v5167_v23 = vpop.xlane.xlu0 %1590 }
 0x317   :  { %v1435_v47 = vpop.xlane.xlu2 %1434  ;;  %v5150_v6 = vpop.eup %4143  ;;  %v1705_v5 = vsel %vm1704_vm6, %v4134_v53, %v1701_v20  ;;  %v1601_v34 = vsel %vm893_vm1, %v5148_v41, 0.0  ;;  %vm1689_vm10 = vmor %vm1687_vm9, %vm1688_vm8  ;;  %vm1822_vm4 = vweird.f32 %v5167_v23 }
 0x318   :  { %v1684_v8 = vsub.f32 1.0, %v1683_v33  ;;  %v1710_v2 = vsel %vm1707_vm7, %v1709_v29, %v1705_v5  ;;  %v1577_v13 = vsel %vm893_vm1, %v5150_v6, 0.0  ;;  %v5161_v31 = vpop.eup %4145  ;;  %v1483_v39 = vsub.f32 %v4931_v61, %v1435_v47  ;;  %v4008_v29 = vld [vmem:[#allocation4 + $0x48] sm:$0xff] }
 0x319   :  { %v1711_v11 = vmul.f32 %v4974_v19, %v1710_v2  ;;  %v1634_v58 = vsel %vm893_vm1, %v5161_v31, 0.0  ;;  %v1491_v5 = vsub.f32 %v4953_v21, %v5108_v38 }
 0x31a   :  { %v1685_v27 = vmul.f32 %v4140_v57, %v1684_v8  ;;  %v5163_v26 = vpop.eup %4147  ;;  %v1538_v45 = vmul.f32 1.442695, %v1483_v39 }
 0x31b   :  { %v2135_v12 = vpack.c.bf16 %v1711_v11, %v1711_v11  ;;  %v1598_v10 = vsel %vm893_vm1, %v5163_v26, 0.0  ;;  %v1554_v17 = vmul.f32 1.442695, %v1491_v5 }
 0x31c   :  { %v1686_v53 = vadd.f32 %v4140_v57, %v1685_v27  ;;  %1602 = vadd.xlane.f32.xlu2 %v1601_v34  ;;  %1578 = vadd.xlane.f32.xlu0 %v1577_v13 }
 0x31d   :  { %778 = vrot.lane.b32.xlu1 %v4669_v1, %s4426_s24 }
 0x31e   :  { %v1690_v63 = vsel %vm1689_vm10, %v4140_v57, %v1686_v53  ;;  %v2195_v57 = vunpack.c.l.b16 %v2135_v12 }
 0x31f   :  { %v1695_v40 = vsel %vm1692_vm11, %v1694_v0, %v1690_v63  ;;  %v1582_v37 = vpop.xlane.xlu2 %1581 }
 0x320   :  { %v1696_v19 = vmul.f32 %v4980_v56, %v1695_v40  ;;  %4149 = vrcp.f32 %v1582_v37  ;;  %v1783_v38 = vand.u32 2147483648, %v1582_v37  ;;  %vm1777_vm13 = vweird.f32 %v1582_v37 }
 0x321   :  { %4151 = vpow2.f32 %v1546_v54  ;;  %v1781_v0 = vand.u32 2147483647, %v1582_v37 }
 0x322   :  { %v2134_v43 = vpack.c.bf16 %v1696_v19, %v1696_v19  ;;  %4153 = vrcp.f32 %v5167_v23  ;;  %v1784_v39 = vor.u32 1.1754944e-38, %v1783_v38 }
 0x323   :  { %4155 = vpow2.f32 %v1538_v45  ;;  %vm1782_vm15 = vcmp.eq.f32.partialorder %v1781_v0, 8.507059e+37 }
 0x324   :  { %v2194_v52 = vunpack.c.l.b16 %v2134_v43  ;;  %1635 = vadd.xlane.f32.xlu2 %v1634_v58  ;;  %1599 = vadd.xlane.f32.xlu0 %v1598_v10 }
 0x325   :  { %616 = vrot.lane.b32.xlu1 %v4669_v1, %s4415_s20 }
 0x326   :  { %v4150_v20 = vpop.eup %4149  ;;  %v2196_v61 = vpack.c.b16 %v2195_v57, %v2194_v52 }
 0x327   :  { %v1773_v56 = vmul.f32 %v4150_v20, %v1582_v37  ;;  %v5176_v33 = vpop.xlane.xlu2 %1593  ;;  %v5178_v47 = vpop.eup %4151  ;;  %vm1778_vm12 = vweird.f32 %v4150_v20 }
 0x328   :  { %3704 = vmatmul.msk.bf16.vlgmr.msrb.gmra.mxu1 %vm893_vm1, %v2196_v61  ;;  %v1637_v51 = vsel %vm893_vm1, %v5178_v47, 0.0  ;;  %v4154_v2 = vpop.eup %4153  ;;  %vm1779_vm14 = vmor %vm1777_vm13, %vm1778_vm12 }
 0x329   :  { %2437 = vmatpush.bf16.msrb.mxu1 %v4008_v29  ;;  %v1774_v8 = vsub.f32 1.0, %v1773_v56  ;;  %v1818_v27 = vmul.f32 %v4154_v2, %v5167_v23  ;;  %v5186_v13 = vpop.eup %4155  ;;  %vm1823_vm2 = vweird.f32 %v4154_v2  ;;  %v1826_v29 = vand.u32 2147483647, %v5167_v23 }
 0x32a   :  { %v1625_v21 = vsel %vm893_vm1, %v5186_v13, 0.0  ;;  %vm5198_vm5 = vmor %vm1822_vm4, %vm1823_vm2 }
 0x32b   :  { %v1775_v60 = vmul.f32 %v4150_v20, %v1774_v8  ;;  %v1819_v11 = vsub.f32 1.0, %v1818_v27  ;;  %vm1827_vm9 = vcmp.eq.f32.partialorder %v1826_v29, 8.507059e+37 }
 0x32c   :  { %1638 = vadd.xlane.f32.xlu0 %v1637_v51 }
 0x32d   :  { %v1776_v53 = vadd.f32 %v4150_v20, %v1775_v60  ;;  %v1820_v40 = vmul.f32 %v4154_v2, %v1819_v11 }
 0x32f   :  { %v1585_v34 = vpop.xlane.xlu2 %1584  ;;  %v1780_v12 = vsel %vm1779_vm14, %v4150_v20, %v1776_v53  ;;  %v1821_v45 = vadd.f32 %v4154_v2, %v1820_v40  ;;  %v1828_v20 = vand.u32 2147483648, %v5167_v23 }
 0x330   :  { %4157 = vrcp.f32 %v1585_v34  ;;  %v1785_v10 = vsel %vm1782_vm15, %v1784_v39, %v1780_v12  ;;  %v1798_v57 = vand.u32 2147483648, %v1585_v34  ;;  %v1796_v61 = vand.u32 2147483647, %v1585_v34 }
 0x331   :  { %4159 = vpow2.f32 %v1554_v17  ;;  %v1786_v5 = vmul.f32 %v4999_v24, %v1785_v10  ;;  %vm1792_vm6 = vweird.f32 %v1585_v34  ;;  %v1482_v17 = vsub.f32 %v4914_v50, %v5091_v22  ;;  %v5211_v10 = vpop.xlane.xlu1 %1596 }
 0x332   :  { %v1799_v27 = vor.u32 1.1754944e-38, %v1798_v57  ;;  %v1825_v60 = vsel %vm5198_vm5, %v4154_v2, %v1821_v45  ;;  %vm1797_vm8 = vcmp.eq.f32.partialorder %v1796_v61, 8.507059e+37  ;;  %vm1852_vm15 = vweird.f32 %v5211_v10 }
 0x333   :  { %v2140_v23 = vpack.c.bf16 %v1786_v5, %v1786_v5 }
 0x334   :  { %1626 = vadd.xlane.f32.xlu0 %v1625_v21  ;;  %v1829_v21 = vor.u32 1.1754944e-38, %v1828_v20 }
 0x335   :  { %v2278_v39 = vunpack.c.l.b16 %v2140_v23 }
 0x336   :  { %v4158_v54 = vpop.eup %4157  ;;  %v1830_v40 = vsel %vm1827_vm9, %v1829_v21, %v1825_v60 }
 0x337   :  { %v5190_v63 = vpop.eup %4159  ;;  %v1788_v19 = vmul.f32 %v4158_v54, %v1585_v34  ;;  %v1588_v43 = vpop.xlane.xlu2 %1587  ;;  %vm1793_vm3 = vweird.f32 %v4158_v54  ;;  %v1536_v34 = vmul.f32 1.442695, %v1482_v17 }
 0x338   :  { %4161 = vrcp.f32 %v1588_v43  ;;  %v1649_v52 = vsel %vm893_vm1, %v5190_v63, 0.0  ;;  %vm1794_vm7 = vmor %vm1792_vm6, %vm1793_vm3  ;;  %v1813_v12 = vand.u32 2147483648, %v1588_v43  ;;  %v1811_v22 = vand.u32 2147483647, %v1588_v43 }
 0x339   :  { %v1789_v58 = vsub.f32 1.0, %v1788_v19  ;;  %vm1807_vm11 = vweird.f32 %v1588_v43  ;;  %4163 = vpow2.f32 %v1536_v34 }
 0x33a   :  { %v1814_v57 = vor.u32 1.1754944e-38, %v1813_v12  ;;  %vm1812_vm13 = vcmp.eq.f32.partialorder %v1811_v22, 8.507059e+37 }
 0x33b   :  { %v1790_v37 = vmul.f32 %v4158_v54, %v1789_v58 }
 0x33c   :  { %780 = vrot.lane.b32.xlu2 %v4683_v7, %s4426_s24  ;;  %1650 = vadd.xlane.f32.xlu0 %v1649_v52 }
 0x33d   :  { %v1791_v8 = vadd.f32 %v4158_v54, %v1790_v37 }
 0x33e   :  { %v4162_v51 = vpop.eup %4161 }
 0x33f   :  { %v1795_v11 = vsel %vm1794_vm7, %v4158_v54, %v1791_v8  ;;  %v1803_v53 = vmul.f32 %v4162_v51, %v1588_v43  ;;  %vm1808_vm10 = vweird.f32 %v4162_v51  ;;  %v1490_v54 = vsub.f32 %v4943_v4, %v5122_v9  ;;  %v5216_v29 = vpop.eup %4163 }
 0x340   :  { %v1800_v38 = vsel %vm1797_vm8, %v1799_v27, %v1795_v11  ;;  %vm1809_vm12 = vmor %vm1807_vm11, %vm1808_vm10  ;;  %vm1837_vm7 = vweird.f32 %v5176_v33 }
 0x341   :  { %v1801_v24 = vmul.f32 %v5009_v36, %v1800_v38  ;;  %v1804_v0 = vsub.f32 1.0, %v1803_v53  ;;  %v1831_v36 = vmul.f32 %v4992_v15, %v1830_v40  ;;  %v1552_v20 = vmul.f32 1.442695, %v1490_v54 }
 0x342   :  { %v1622_v15 = vsel %vm893_vm1, %v5216_v29, 0.0 }
 0x343   :  { %v2141_v19 = vpack.c.bf16 %v1801_v24, %v1801_v24  ;;  %v1805_v50 = vmul.f32 %v4162_v51, %v1804_v0  ;;  %v2143_v43 = vpack.c.bf16 %v1831_v36, %v1831_v36  ;;  %4165 = vpow2.f32 %v1552_v20 }
 0x344   :  { %4167 = vrcp.f32 %v5211_v10 }
 0x345   :  { %v2279_v58 = vunpack.c.l.b16 %v2141_v19  ;;  %v1806_v2 = vadd.f32 %v4162_v51, %v1805_v50  ;;  %v2307_v9 = vunpack.c.l.b16 %v2143_v43  ;;  %4169 = vrcp.f32 %v5176_v33 }
 0x347   :  { %v1810_v52 = vsel %vm1809_vm12, %v4162_v51, %v1806_v2  ;;  %v2280_v45 = vpack.c.b16 %v2279_v58, %v2278_v39  ;;  %v1856_v39 = vand.u32 2147483647, %v5211_v10 }
 0x348   :  { %v1815_v37 = vsel %vm1812_vm13, %v1814_v57, %v1810_v52  ;;  %v1858_v57 = vand.u32 2147483648, %v5211_v10 }
 0x349   :  { %v1816_v61 = vmul.f32 %v5013_v18, %v1815_v37  ;;  %3719 = vmatmul.msk.bf16.vlgmr.msra.gmra.mxu0 %vm893_vm1, %v2280_v45  ;;  %v5225_v8 = vpop.eup %4165 }
 0x34a   :  { %v1646_v51 = vsel %vm893_vm1, %v5225_v8, 0.0  ;;  %v5236_v27 = vpop.eup %4167 }
 0x34b   :  { %v2142_v56 = vpack.c.bf16 %v1816_v61, %v1816_v61  ;;  %v5238_v60 = vpop.eup %4169  ;;  %v1848_v53 = vmul.f32 %v5236_v27, %v5211_v10  ;;  %vm1853_vm3 = vweird.f32 %v5236_v27  ;;  %v4009_v10 = vld [vmem:[#allocation4 + $0x50] sm:$0xff] }
 0x34c   :  { %v1833_v23 = vmul.f32 %v5238_v60, %v5176_v33  ;;  %vm1838_vm8 = vweird.f32 %v5238_v60  ;;  %vm5284_vm9 = vmor %vm1852_vm15, %vm1853_vm3 }
 0x34d   :  { %v2306_v4 = vunpack.c.l.b16 %v2142_v56  ;;  %v1849_v24 = vsub.f32 1.0, %v1848_v53  ;;  %vm5299_vm13 = vmor %vm1837_vm7, %vm1838_vm8 }
 0x34e   :  { %v5218_v5 = vpop.xlane.xlu1 %1629  ;;  %v1834_v34 = vsub.f32 1.0, %v1833_v23 }
 0x34f   :  { %1623 = vadd.xlane.f32.xlu1 %v1622_v15  ;;  %v2308_v18 = vpack.c.b16 %v2307_v9, %v2306_v4  ;;  %4171 = vrcp.f32 %v5218_v5  ;;  %v1850_v22 = vmul.f32 %v5236_v27, %v1849_v24  ;;  %v2023_v24 = vand.u32 2147483648, %v5218_v5 }
 0x350   :  { %618 = vrot.lane.b32.xlu0 %v4683_v7, %s4415_s20  ;;  %v1835_v52 = vmul.f32 %v5238_v60, %v1834_v34 }
 0x351   :  { %3724 = vmatmul.msk.bf16.vlgmr.msra.gmra.mxu1 %vm893_vm1, %v2308_v18  ;;  %v5269_v56 = vadd.f32 %v5236_v27, %v1850_v22 }
 0x355   :  { %v5240_v11 = vpop.eup %4171 }
 0x356   :  { %v1570_v17 = vpop.xlane.xlu1 %1569  ;;  %v2013_v3 = vmul.f32 %v5240_v11, %v5218_v5  ;;  %vm2018_vm10 = vweird.f32 %v5240_v11 }
 0x357   :  { %1647 = vadd.xlane.f32.xlu1 %v1646_v51  ;;  %4173 = vrcp.f32 %v1570_v17  ;;  %v1723_v19 = vand.u32 2147483648, %v1570_v17  ;;  %v1721_v58 = vand.u32 2147483647, %v1570_v17  ;;  %vm1717_vm2 = vweird.f32 %v1570_v17 }
 0x358   :  { %v2014_v40 = vsub.f32 1.0, %v2013_v3  ;;  %v1836_v51 = vadd.f32 %v5238_v60, %v1835_v52 }
 0x359   :  { %3739 = vmatmul.msk.bf16.vlgmr.msrb.gmra.mxu0 %vm893_vm1, %v2392_v16  ;;  %v1724_v61 = vor.u32 1.1754944e-38, %v1723_v19  ;;  %vm1722_vm5 = vcmp.eq.f32.partialorder %v1721_v58, 8.507059e+37 }
 0x35a   :  { %v2015_v45 = vmul.f32 %v5240_v11, %v2014_v40 }
 0x35c   :  { %v2016_v23 = vadd.f32 %v5240_v11, %v2015_v45 }
 0x35d   :  { %v4174_v38 = vpop.eup %4173 }
 0x35e   :  { %v5244_v21 = vpop.xlane.xlu2 %1572  ;;  %v1713_v14 = vmul.f32 %v4174_v38, %v1570_v17  ;;  %vm1718_vm14 = vweird.f32 %v4174_v38  ;;  %v1843_v17 = vand.u32 2147483648, %v5176_v33 }
 0x35f   :  { %4175 = vrcp.f32 %v5244_v21  ;;  %v5251_v16 = vpop.xlane.xlu1 %1617  ;;  %vm1719_vm4 = vmor %vm1717_vm2, %vm1718_vm14  ;;  %v1738_v4 = vand.u32 2147483648, %v5244_v21  ;;  %v1736_v18 = vand.u32 2147483647, %v5244_v21  ;;  %vm1732_vm11 = vweird.f32 %v5244_v21 }
 0x360   :  { %v1714_v0 = vsub.f32 1.0, %v1713_v14  ;;  %4177 = vrcp.f32 %v5251_v16  ;;  %v1841_v14 = vand.u32 2147483647, %v5176_v33  ;;  %vm2017_vm14 = vweird.f32 %v5218_v5 }
 0x361   :  { %v1739_v34 = vor.u32 1.1754944e-38, %v1738_v4  ;;  %vm1737_vm15 = vcmp.eq.f32.partialorder %v1736_v18, 8.507059e+37  ;;  %v1840_v33 = vsel %vm5299_vm13, %v5238_v60, %v1836_v51  ;;  %vm5314_vm2 = vmor %vm2017_vm14, %vm2018_vm10  ;;  %v2024_v60 = vor.u32 1.1754944e-38, %v2023_v24 }
 0x362   :  { %v1715_v12 = vmul.f32 %v4174_v38, %v1714_v0  ;;  %vm1842_vm3 = vcmp.eq.f32.partialorder %v1841_v14, 8.507059e+37  ;;  %vm1957_vm10 = vweird.f32 %v5251_v16 }
 0x364   :  { %v1716_v2 = vadd.f32 %v4174_v38, %v1715_v12 }
 0x365   :  { %v4176_v50 = vpop.eup %4175 }
 0x366   :  { %v1728_v54 = vmul.f32 %v4176_v50, %v5244_v21  ;;  %v5258_v36 = vpop.xlane.xlu2 %1620  ;;  %v1720_v37 = vsel %vm1719_vm4, %v4174_v38, %v1716_v2  ;;  %vm1733_vm6 = vweird.f32 %v4176_v50  ;;  %v5278_v53 = vpop.eup %4177  ;;  %v2021_v21 = vand.u32 2147483647, %v5218_v5 }
 0x367   :  { %4179 = vrcp.f32 %v5258_v36  ;;  %v5266_v43 = vpop.xlane.xlu1 %1632  ;;  %v1725_v9 = vsel %vm1722_vm5, %v1724_v61, %v1720_v37  ;;  %vm1734_vm12 = vmor %vm1732_vm11, %vm1733_vm6  ;;  %v1953_v5 = vmul.f32 %v5278_v53, %v5251_v16  ;;  %vm1857_vm6 = vcmp.eq.f32.partialorder %v1856_v39, 8.507059e+37 }
 0x368   :  { %v1729_v20 = vsub.f32 1.0, %v1728_v54  ;;  %4181 = vrcp.f32 %v5266_v43  ;;  %v1726_v0 = vmul.f32 %v5033_v25, %v1725_v9  ;;  %v1855_v25 = vsel %vm5284_vm9, %v5236_v27, %v5269_v56 }
 0x369   :  { %v2020_v54 = vsel %vm5314_vm2, %v5240_v11, %v2016_v23  ;;  %vm2022_vm4 = vcmp.eq.f32.partialorder %v2021_v21, 8.507059e+37  ;;  %v1954_v9 = vsub.f32 1.0, %v1953_v5  ;;  %vm2032_vm7 = vweird.f32 %v5266_v43 }
 0x36a   :  { %v1730_v15 = vmul.f32 %v4176_v50, %v1729_v20  ;;  %v2136_v45 = vpack.c.bf16 %v1726_v0, %v1726_v0  ;;  %v2025_v11 = vsel %vm2022_vm4, %v2024_v60, %v2020_v54  ;;  %vm1958_vm11 = vweird.f32 %v5278_v53 }
 0x36b   :  { %v2026_v23 = vmul.f32 %v5022_v55, %v2025_v11  ;;  %v1978_v54 = vand.u32 2147483648, %v5258_v36  ;;  %vm5369_vm13 = vmor %vm1957_vm10, %vm1958_vm11  ;;  %vm1972_vm14 = vweird.f32 %v5258_v36 }
 0x36c   :  { %v1731_v3 = vadd.f32 %v4176_v50, %v1730_v15  ;;  %v2038_v15 = vand.u32 2147483648, %v5266_v43  ;;  %v2222_v38 = vunpack.c.l.b16 %v2136_v45  ;;  %v1976_v45 = vand.u32 2147483647, %v5258_v36 }
 0x36d   :  { %v5295_v40 = vpop.eup %4179 }
 0x36e   :  { %v1735_v19 = vsel %vm1734_vm12, %v4176_v50, %v1731_v3  ;;  %v4182_v22 = vpop.eup %4181  ;;  %v1844_v50 = vor.u32 1.1754944e-38, %v1843_v17  ;;  %v1968_v37 = vmul.f32 %v5295_v40, %v5258_v36  ;;  %v5327_v61 = vpop.xlane.xlu2 %1575  ;;  %v1859_v17 = vor.u32 1.1754944e-38, %v1858_v57 }
 0x36f   :  { %v1740_v2 = vsel %vm1737_vm15, %v1739_v34, %v1735_v19  ;;  %v2028_v52 = vmul.f32 %v4182_v22, %v5266_v43  ;;  %vm2033_vm5 = vweird.f32 %v4182_v22  ;;  %4183 = vrcp.f32 %v5327_v61 }
 0x370   :  { %v1741_v27 = vmul.f32 %v5045_v32, %v1740_v2  ;;  %670 = vrot.lane.b32.xlu1 %v4669_v1, %s4428_s25  ;;  %v1845_v20 = vsel %vm1842_vm3, %v1844_v50, %v1840_v33  ;;  %v2036_v32 = vand.u32 2147483647, %v5266_v43  ;;  %v1969_v1 = vsub.f32 1.0, %v1968_v37  ;;  %vm2034_vm8 = vmor %vm2032_vm7, %vm2033_vm5 }
 0x371   :  { %v2029_v4 = vsub.f32 1.0, %v2028_v52  ;;  %v1860_v14 = vsel %vm1857_vm6, %v1859_v17, %v1855_v25  ;;  %v1846_v24 = vmul.f32 %v5004_v30, %v1845_v20  ;;  %v2039_v0 = vor.u32 1.1754944e-38, %v2038_v15 }
 0x372   :  { %v2137_v56 = vpack.c.bf16 %v1741_v27, %v1741_v27  ;;  %v1955_v57 = vmul.f32 %v5278_v53, %v1954_v9  ;;  %vm2037_vm9 = vcmp.eq.f32.partialorder %v2036_v32, 8.507059e+37  ;;  %v1970_v55 = vmul.f32 %v5295_v40, %v1969_v1 }
 0x373   :  { %v2030_v51 = vmul.f32 %v4182_v22, %v2029_v4  ;;  %v2156_v43 = vpack.c.bf16 %v2026_v23, %v2026_v23  ;;  %v2144_v25 = vpack.c.bf16 %v1846_v24, %v1846_v24  ;;  %vm1973_vm12 = vweird.f32 %v5295_v40 }
 0x374   :  { %v2223_v18 = vunpack.c.l.b16 %v2137_v56  ;;  %v1956_v33 = vadd.f32 %v5278_v53, %v1955_v57  ;;  %v1971_v2 = vadd.f32 %v5295_v40, %v1970_v55  ;;  %v1961_v50 = vand.u32 2147483647, %v5251_v16  ;;  %vm5384_vm15 = vmor %vm1972_vm14, %vm1973_vm12 }
 0x375   :  { %v2031_v3 = vadd.f32 %v4182_v22, %v2030_v51  ;;  %v5349_v30 = vpop.eup %4183  ;;  %v2334_v17 = vunpack.c.l.b16 %v2144_v25  ;;  %vm1977_vm3 = vcmp.eq.f32.partialorder %v1976_v45, 8.507059e+37  ;;  %vm1747_vm6 = vweird.f32 %v5327_v61 }
 0x376   :  { %v2224_v12 = vpack.c.b16 %v2223_v18, %v2222_v38  ;;  %v1960_v4 = vsel %vm5369_vm13, %v5278_v53, %v1956_v33  ;;  %v1975_v32 = vsel %vm5384_vm15, %v5295_v40, %v1971_v2  ;;  %vm1962_vm2 = vcmp.eq.f32.partialorder %v1961_v50, 8.507059e+37 }
 0x377   :  { %v5341_v34 = vpop.xlane.xlu0 %1611  ;;  %v2035_v21 = vsel %vm2034_vm8, %v4182_v22, %v2031_v3  ;;  %v1861_v22 = vmul.f32 %v4983_v59, %v1860_v14  ;;  %v5363_v59 = vunpack.c.l.b16 %v2156_v43  ;;  %v1979_v18 = vor.u32 1.1754944e-38, %v1978_v54 }
 0x378   :  { %4185 = vrcp.f32 %v5341_v34  ;;  %v2040_v39 = vsel %vm2037_vm9, %v2039_v0, %v2035_v21  ;;  %672 = vrot.lane.b32.xlu1 %v4683_v7, %s4428_s25  ;;  %3709 = vmatmul.msk.bf16.vlgmr.msra.gmra.mxu2 %vm893_vm1, %v2224_v12  ;;  %v1963_v7 = vand.u32 2147483648, %v5251_v16  ;;  %v1751_v43 = vand.u32 2147483647, %v5327_v61 }
 0x379   :  { %v2041_v19 = vmul.f32 %v5066_v28, %v2040_v39  ;;  %2465 = vmatpush.bf16.msra.mxu2 %v4009_v10  ;;  %v1743_v28 = vmul.f32 %v5349_v30, %v5327_v61  ;;  %v2145_v16 = vpack.c.bf16 %v1861_v22, %v1861_v22  ;;  %v1980_v1 = vsel %vm1977_vm3, %v1979_v18, %v1975_v32 }
 0x37a   :  { %v1964_v9 = vor.u32 1.1754944e-38, %v1963_v7  ;;  %v1981_v12 = vmul.f32 %v5069_v49, %v1980_v1  ;;  %vm1748_vm4 = vweird.f32 %v5349_v30  ;;  %v1933_v2 = vand.u32 2147483648, %v5341_v34 }
 0x37b   :  { %v2157_v58 = vpack.c.bf16 %v2041_v19, %v2041_v19  ;;  %v1744_v15 = vsub.f32 1.0, %v1743_v28  ;;  %v2335_v23 = vunpack.c.l.b16 %v2145_v16  ;;  %v1753_v19 = vand.u32 2147483648, %v5327_v61  ;;  %vm5423_vm7 = vmor %vm1747_vm6, %vm1748_vm4 }
 0x37c   :  { %v1965_v38 = vsel %vm1962_vm2, %v1964_v9, %v1960_v4  ;;  %v2153_v7 = vpack.c.bf16 %v1981_v12, %v1981_v12  ;;  %vm5427_vm8 = vcmp.eq.f32.partialorder %v1751_v43, 8.507059e+37  ;;  %vm1927_vm9 = vweird.f32 %v5341_v34 }
 0x37d   :  { %v5367_v27 = vunpack.c.l.b16 %v2157_v58  ;;  %v2187_v52 = vpop.f32.mrf.mxu0  ;;  %v1745_v3 = vmul.f32 %v5349_v30, %v1744_v15  ;;  %v1966_v40 = vmul.f32 %v5048_v46, %v1965_v38  ;;  %v2336_v39 = vpack.c.b16 %v2335_v23, %v2334_v17 }
 0x37e   :  { %v5361_v5 = vpop.eup %4185  ;;  %v2612_v20 = vpack.c.bf16 %v2187_v52, %v2187_v52  ;;  %v1931_v58 = vand.u32 2147483647, %v5341_v34  ;;  %v2447_v11 = vunpack.c.l.b16 %v2153_v7 }
 0x37f   :  { %v1923_v37 = vmul.f32 %v5361_v5, %v5341_v34  ;;  %v5377_v56 = vpop.xlane.xlu0 %1641  ;;  %v725_v36 = vpop.permute.xlu1 %724  ;;  %v2504_v53 = vpack.c.b16 %v5367_v27, %v5363_v59  ;;  %v1746_v22 = vadd.f32 %v5349_v30, %v1745_v3  ;;  %v2152_v25 = vpack.c.bf16 %v1966_v40, %v1966_v40 }
 0x380   :  { %4187 = vrcp.f32 %v5377_v56  ;;  %2614 = vst.msk [vmem:[#allocation5] sm:$0xf] %vm381_vm0, %v2612_v20  ;;  %vm1928_vm5 = vweird.f32 %v5361_v5  ;;  %v2081_v52 = vand.u32 2147483647, %v5377_v56  ;;  %v1754_v34 = vor.u32 1.1754944e-38, %v1753_v19 }
 0x381   :  { %v1924_v51 = vsub.f32 1.0, %v1923_v37  ;;  %731 = vst.msk [vmem:[#allocation4 + $0x70] sm:$0xf] %vm381_vm0, %v725_v36  ;;  %v1750_v61 = vsel %vm5423_vm7, %v5349_v30, %v1746_v22  ;;  %vm5436_vm10 = vmor %vm1927_vm9, %vm1928_vm5  ;;  %v2083_v37 = vand.u32 2147483648, %v5377_v56  ;;  %v5443_v16 = vunpack.c.l.b16 %v2152_v25 }
 0x382   :  { %vm1932_vm12 = vcmp.eq.f32.partialorder %v1931_v58, 8.507059e+37  ;;  %v1934_v36 = vor.u32 1.1754944e-38, %v1933_v2  ;;  %vm2077_vm13 = vweird.f32 %v5377_v56  ;;  %v1755_v18 = vsel %vm5427_vm8, %v1754_v34, %v1750_v61 }
 0x383   :  { %v1925_v24 = vmul.f32 %v5361_v5, %v1924_v51  ;;  %vm5462_vm15 = vcmp.eq.f32.partialorder %v2081_v52, 8.507059e+37  ;;  %v2084_v23 = vor.u32 1.1754944e-38, %v2083_v37  ;;  %v2448_v19 = vpack.c.b16 %v2447_v11, %v5443_v16 }
 0x385   :  { %v2189_v0 = vpop.f32.mrf.mxu0  ;;  %v1926_v33 = vadd.f32 %v5361_v5, %v1925_v24 }
 0x386   :  { %v5397_v14 = vpop.eup %4187  ;;  %v2613_v21 = vpack.c.bf16 %v2189_v0, %v2189_v0 }
 0x387   :  { %v2073_v57 = vmul.f32 %v5397_v14, %v5377_v56  ;;  %v5404_v10 = vpop.xlane.xlu2 %1644  ;;  %v5406_v55 = vpop.xlane.xlu0 %1614  ;;  %vm2078_vm11 = vweird.f32 %v5397_v14  ;;  %v1930_v4 = vsel %vm5436_vm10, %v5361_v5, %v1926_v33 }
 0x388   :  { %4189 = vrcp.f32 %v5404_v10  ;;  %v727_v46 = vpop.permute.xlu1 %726  ;;  %2615 = vst.msk [vmem:[#allocation5 + $0x4] sm:$0xf] %vm381_vm0, %v2613_v21  ;;  %3729 = vmatmul.msk.bf16.vlgmr.msrb.gmra.mxu2 %vm893_vm1, %v2336_v39  ;;  %vm5458_vm14 = vmor %vm2077_vm13, %vm2078_vm11  ;;  %v1935_v38 = vsel %vm1932_vm12, %v1934_v36, %v1930_v4  ;;  %v2096_v24 = vand.u32 2147483647, %v5404_v10  ;;  %v2098_v0 = vand.u32 2147483648, %v5404_v10 }
 0x389   :  { %v2074_v49 = vsub.f32 1.0, %v2073_v57  ;;  %4191 = vrcp.f32 %v5406_v55  ;;  %732 = vst.msk [vmem:[#allocation4 + $0x74] sm:$0xf] %vm381_vm0, %v727_v46  ;;  %v1946_v21 = vand.u32 2147483647, %v5406_v55  ;;  %v1948_v39 = vand.u32 2147483648, %v5406_v55 }
 0x38a   :  { %v1756_v46 = vmul.f32 %v5095_v44, %v1755_v18  ;;  %v1936_v22 = vmul.f32 %v5112_v35, %v1935_v38  ;;  %vm2092_vm4 = vweird.f32 %v5404_v10  ;;  %vm2097_vm6 = vcmp.eq.f32.partialorder %v2096_v24, 8.507059e+37 }
 0x38b   :  { %v2075_v28 = vmul.f32 %v5397_v14, %v2074_v49  ;;  %v2099_v33 = vor.u32 1.1754944e-38, %v2098_v0  ;;  %vm1942_vm7 = vweird.f32 %v5406_v55  ;;  %vm1947_vm9 = vcmp.eq.f32.partialorder %v1946_v21, 8.507059e+37 }
 0x38c   :  { %v2138_v60 = vpack.c.bf16 %v1756_v46, %v1756_v46 }
 0x38d   :  { %v2076_v45 = vadd.f32 %v5397_v14, %v2075_v28  ;;  %v1949_v28 = vor.u32 1.1754944e-38, %v1948_v39 }
 0x38e   :  { %v4190_v20 = vpop.eup %4189  ;;  %v5504_v51 = vunpack.c.l.b16 %v2138_v60 }
 0x38f   :  { %v4192_v30 = vpop.eup %4191  ;;  %v2088_v9 = vmul.f32 %v4190_v20, %v5404_v10  ;;  %v5450_v32 = vpop.xlane.xlu2 %1602  ;;  %v2080_v1 = vsel %vm5458_vm14, %v5397_v14, %v2076_v45  ;;  %vm2093_vm2 = vweird.f32 %v4190_v20  ;;  %v2150_v45 = vpack.c.bf16 %v1936_v22, %v1936_v22 }
 0x390   :  { %v5452_v15 = vpop.xlane.xlu0 %1578  ;;  %v1938_v56 = vmul.f32 %v4192_v30, %v5406_v55  ;;  %4193 = vrcp.f32 %v5450_v32  ;;  %v779_v17 = vpop.permute.xlu1 %778  ;;  %v4013_v40 = vld [vmem:[#allocation4 + $0x70] sm:$0xff]  ;;  %v2085_v14 = vsel %vm5462_vm15, %v2084_v23, %v2080_v1  ;;  %vm1943_vm3 = vweird.f32 %v4192_v30  ;;  %vm2094_vm5 = vmor %vm2092_vm4, %vm2093_vm2 }
 0x391   :  { %v2089_v3 = vsub.f32 1.0, %v2088_v9  ;;  %785 = vst.msk [vmem:[#allocation4 + $0x78] sm:$0xf] %vm381_vm0, %v779_v17  ;;  %4195 = vrcp.f32 %v5452_v15  ;;  %2577 = vmatpush.bf16.msrb.mxu2 %v4013_v40  ;;  %v2086_v7 = vmul.f32 %v5126_v62, %v2085_v14  ;;  %vm1944_vm8 = vmor %vm1942_vm7, %vm1943_vm3  ;;  %v1768_v11 = vand.u32 2147483648, %v5452_v15 }
 0x392   :  { %v1939_v12 = vsub.f32 1.0, %v1938_v56  ;;  %v1766_v9 = vand.u32 2147483647, %v5452_v15  ;;  %v2418_v5 = vunpack.c.l.b16 %v2150_v45  ;;  %vm1762_vm11 = vweird.f32 %v5452_v15 }
 0x393   :  { %v2090_v57 = vmul.f32 %v4190_v20, %v2089_v3  ;;  %vm1882_vm12 = vweird.f32 %v5450_v32  ;;  %v1769_v24 = vor.u32 1.1754944e-38, %v1768_v11 }
 0x394   :  { %v1940_v43 = vmul.f32 %v4192_v30, %v1939_v12  ;;  %vm1767_vm15 = vcmp.eq.f32.partialorder %v1766_v9, 8.507059e+37 }
 0x395   :  { %v2091_v49 = vadd.f32 %v4190_v20, %v2090_v57 }
 0x396   :  { %v5483_v25 = vpop.eup %4193  ;;  %v1941_v58 = vadd.f32 %v4192_v30, %v1940_v43 }
 0x397   :  { %v2095_v2 = vsel %vm2094_vm5, %v4190_v20, %v2091_v49  ;;  %v5487_v44 = vpop.xlane.xlu2 %1635  ;;  %v4196_v50 = vpop.eup %4195  ;;  %v1878_v52 = vmul.f32 %v5483_v25, %v5450_v32  ;;  %v2160_v20 = vpack.c.bf16 %v2086_v7, %v2086_v7  ;;  %vm1883_vm14 = vweird.f32 %v5483_v25 }
 0x398   :  { %v5489_v35 = vpop.xlane.xlu0 %1599  ;;  %v2100_v10 = vsel %vm2097_vm6, %v2099_v33, %v2095_v2  ;;  %v1945_v54 = vsel %vm1944_vm8, %v4192_v30, %v1941_v58  ;;  %4197 = vrcp.f32 %v5487_v44  ;;  %v617_v61 = vpop.permute.xlu1 %616  ;;  %v1758_v62 = vmul.f32 %v4196_v50, %v5452_v15  ;;  %3749 = vmatmul.msk.bf16.vlgmr.msra.gmra.mxu2 %vm893_vm1, %v2448_v19  ;;  %vm5545_vm6 = vmor %vm1882_vm12, %vm1883_vm14 }
 0x399   :  { %v1950_v55 = vsel %vm1947_vm9, %v1949_v28, %v1945_v54  ;;  %623 = vst.msk [vmem:[#allocation4 + $0x60] sm:$0xf] %vm381_vm0, %v617_v61  ;;  %v2101_v16 = vmul.f32 %v5139_v48, %v2100_v10  ;;  %4199 = vrcp.f32 %v5489_v35  ;;  %v1879_v30 = vsub.f32 1.0, %v1878_v52 }
 0x39a   :  { %v1951_v37 = vmul.f32 %v5135_v42, %v1950_v55  ;;  %v1759_v34 = vsub.f32 1.0, %v1758_v62  ;;  %vm1763_vm10 = vweird.f32 %v4196_v50  ;;  %v1888_v42 = vand.u32 2147483648, %v5450_v32 }
 0x39b   :  { %v2558_v48 = vunpack.c.l.b16 %v2160_v20  ;;  %v2161_v56 = vpack.c.bf16 %v2101_v16, %v2101_v16  ;;  %v1880_v40 = vmul.f32 %v5483_v25, %v1879_v30  ;;  %vm1764_vm13 = vmor %vm1762_vm11, %vm1763_vm10  ;;  %vm2047_vm2 = vweird.f32 %v5487_v44 }
 0x39c   :  { %v2151_v4 = vpack.c.bf16 %v1951_v37, %v1951_v37  ;;  %v1760_v36 = vmul.f32 %v4196_v50, %v1759_v34  ;;  %v2051_v21 = vand.u32 2147483647, %v5487_v44  ;;  %v2053_v22 = vand.u32 2147483648, %v5487_v44 }
 0x39d   :  { %v2559_v14 = vunpack.c.l.b16 %v2161_v56  ;;  %v1881_v46 = vadd.f32 %v5483_v25, %v1880_v40  ;;  %v1871_v2 = vand.u32 2147483647, %v5489_v35  ;;  %v1873_v28 = vand.u32 2147483648, %v5489_v35 }
 0x39e   :  { %v5502_v18 = vpop.eup %4197  ;;  %v1761_v17 = vadd.f32 %v4196_v50, %v1760_v36  ;;  %v2419_v3 = vunpack.c.l.b16 %v2151_v4  ;;  %v1889_v10 = vor.u32 1.1754944e-38, %v1888_v42  ;;  %vm2052_vm7 = vcmp.eq.f32.partialorder %v2051_v21, 8.507059e+37 }
 0x39f   :  { %v2043_v38 = vmul.f32 %v5502_v18, %v5487_v44  ;;  %v781_v1 = vpop.permute.xlu2 %780  ;;  %v4200_v15 = vpop.eup %4199  ;;  %vm2048_vm3 = vweird.f32 %v5502_v18  ;;  %v2560_v60 = vpack.c.b16 %v2559_v14, %v2558_v48  ;;  %v2054_v45 = vor.u32 1.1754944e-38, %v2053_v22 }
 0x3a0   :  { %v5511_v23 = vpop.xlane.xlu0 %1638  ;;  %786 = vst.msk [vmem:[#allocation4 + $0x7c] sm:$0xf] %vm381_vm0, %v781_v1  ;;  %v1765_v0 = vsel %vm1764_vm13, %v4196_v50, %v1761_v17  ;;  %v1863_v39 = vmul.f32 %v4200_v15, %v5489_v35  ;;  %v2420_v33 = vpack.c.b16 %v2419_v3, %v2418_v5  ;;  %vm5532_vm4 = vmor %vm2047_vm2, %vm2048_vm3  ;;  %vm1868_vm5 = vweird.f32 %v4200_v15 }
 0x3a1   :  { %4201 = vrcp.f32 %v5511_v23  ;;  %v2044_v12 = vsub.f32 1.0, %v2043_v38  ;;  %v1770_v57 = vsel %vm1767_vm15, %v1769_v24, %v1765_v0  ;;  %vm1867_vm8 = vweird.f32 %v5489_v35 }
 0x3a2   :  { %v1771_v43 = vmul.f32 %v5150_v6, %v1770_v57  ;;  %v1864_v49 = vsub.f32 1.0, %v1863_v39  ;;  %v1886_v6 = vand.u32 2147483647, %v5450_v32  ;;  %3744 = vmatmul.msk.bf16.vlgmr.msrb.gmra.mxu1 %vm893_vm1, %v2420_v33  ;;  %v1885_v20 = vsel %vm5545_vm6, %v5483_v25, %v1881_v46  ;;  %vm1869_vm9 = vmor %vm1867_vm8, %vm1868_vm5 }
 0x3a3   :  { %v2045_v19 = vmul.f32 %v5502_v18, %v2044_v12  ;;  %vm1872_vm10 = vcmp.eq.f32.partialorder %v1871_v2, 8.507059e+37  ;;  %v1874_v16 = vor.u32 1.1754944e-38, %v1873_v28  ;;  %v2068_v30 = vand.u32 2147483648, %v5511_v23 }
 0x3a4   :  { %v2139_v58 = vpack.c.bf16 %v1771_v43, %v1771_v43  ;;  %v1865_v52 = vmul.f32 %v4200_v15, %v1864_v49  ;;  %v2066_v35 = vand.u32 2147483647, %v5511_v23  ;;  %vm1887_vm12 = vcmp.eq.f32.partialorder %v1886_v6, 8.507059e+37 }
 0x3a5   :  { %v2046_v7 = vadd.f32 %v5502_v18, %v2045_v19  ;;  %v1890_v25 = vsel %vm1887_vm12, %v1889_v10, %v1885_v20  ;;  %vm2062_vm13 = vweird.f32 %v5511_v23 }
 0x3a6   :  { %v2251_v61 = vunpack.c.l.b16 %v2139_v58  ;;  %v1866_v37 = vadd.f32 %v4200_v15, %v1865_v52  ;;  %vm2067_vm15 = vcmp.eq.f32.partialorder %v2066_v35, 8.507059e+37  ;;  %v1891_v38 = vmul.f32 %v5148_v41, %v1890_v25 }
 0x3a7   :  { %v4202_v50 = vpop.eup %4201  ;;  %v2050_v55 = vsel %vm5532_vm4, %v5502_v18, %v2046_v7  ;;  %v4010_v18 = vld [vmem:[#allocation4 + $0x58] sm:$0xff] }
 0x3a8   :  { %v2058_v62 = vmul.f32 %v4202_v50, %v5511_v23  ;;  %3769 = vmatmul.msk.bf16.vlgmr.msrb.gmra.mxu2 %vm893_vm1, %v2560_v60  ;;  %v2055_v32 = vsel %vm2052_vm7, %v2054_v45, %v2050_v55  ;;  %v1870_v4 = vsel %vm1869_vm9, %v4200_v15, %v1866_v37  ;;  %v2252_v11 = vpack.c.b16 %v2251_v61, %v5504_v51  ;;  %v1627_v17 = vpop.xlane.xlu0 %1626  ;;  %v4014_v43 = vld [vmem:[#allocation4 + $0x78] sm:$0xff] }
 0x3a9   :  { %v1875_v36 = vsel %vm1872_vm10, %v1874_v16, %v1870_v4  ;;  %vm2063_vm11 = vweird.f32 %v4202_v50  ;;  %v2056_v5 = vmul.f32 %v5161_v31, %v2055_v32  ;;  %v2069_v51 = vor.u32 1.1754944e-38, %v2068_v30 }
 0x3aa   :  { %v2059_v34 = vsub.f32 1.0, %v2058_v62  ;;  %3714 = vmatmul.msk.bf16.vlgmr.msrb.gmra.mxu3 %vm893_vm1, %v2252_v11  ;;  %v1876_v48 = vmul.f32 %v5163_v26, %v1875_v36  ;;  %vm2064_vm14 = vmor %vm2062_vm13, %vm2063_vm11  ;;  %4203 = vrcp.f32 %v1627_v17  ;;  %v2147_v15 = vpack.c.bf16 %v1891_v38, %v1891_v38 }
 0x3ab   :  { %2493 = vmatpush.bf16.msrb.mxu3 %v4010_v18  ;;  %v2158_v3 = vpack.c.bf16 %v2056_v5, %v2056_v5  ;;  %vm2002_vm3 = vweird.f32 %v1627_v17  ;;  %v2006_v6 = vand.u32 2147483647, %v1627_v17 }
 0x3ac   :  { %v2060_v9 = vmul.f32 %v4202_v50, %v2059_v34  ;;  %v2146_v24 = vpack.c.bf16 %v1876_v48, %v1876_v48  ;;  %v2363_v21 = vunpack.c.l.b16 %v2147_v15 }
 0x3ad   :  { %v5563_v0 = vunpack.c.l.b16 %v2158_v3  ;;  %vm2007_vm5 = vcmp.eq.f32.partialorder %v2006_v6, 8.507059e+37 }
 0x3ae   :  { %v2061_v42 = vadd.f32 %v4202_v50, %v2060_v9  ;;  %v2362_v26 = vunpack.c.l.b16 %v2146_v24 }
 0x3b0   :  { %v2065_v56 = vsel %vm2064_vm14, %v4202_v50, %v2061_v42  ;;  %v4204_v57 = vpop.eup %4203  ;;  %v5569_v39 = vpop.xlane.xlu0 %1650  ;;  %v2364_v41 = vpack.c.b16 %v2363_v21, %v2362_v26  ;;  %v2008_v50 = vand.u32 2147483648, %v1627_v17 }
 0x3b1   :  { %v2070_v1 = vsel %vm2067_vm15, %v2069_v51, %v2065_v56  ;;  %v1998_v14 = vmul.f32 %v4204_v57, %v1627_v17  ;;  %4205 = vrcp.f32 %v5569_v39  ;;  %vm2003_vm2 = vweird.f32 %v4204_v57 }
 0x3b2   :  { %v2071_v40 = vmul.f32 %v5178_v47, %v2070_v1  ;;  %v2215_v47 = vpop.f32.mrf.mxu1  ;;  %vm2004_vm4 = vmor %vm2002_vm3, %vm2003_vm2  ;;  %v2009_v60 = vor.u32 1.1754944e-38, %v2008_v50  ;;  %vm2122_vm12 = vweird.f32 %v5569_v39  ;;  %v2126_v15 = vand.u32 2147483647, %v5569_v39 }
 0x3b3   :  { %v1999_v19 = vsub.f32 1.0, %v1998_v14  ;;  %v2620_v45 = vpack.c.bf16 %v2215_v47, %v2215_v47 }
 0x3b4   :  { %v2159_v31 = vpack.c.bf16 %v2071_v40, %v2071_v40  ;;  %vm2127_vm3 = vcmp.eq.f32.partialorder %v2126_v15, 8.507059e+37 }
 0x3b5   :  { %v2000_v22 = vmul.f32 %v4204_v57, %v1999_v19 }
 0x3b6   :  { %v5565_v23 = vunpack.c.l.b16 %v2159_v31 }
 0x3b7   :  { %v5574_v58 = vpop.eup %4205  ;;  %v2001_v7 = vadd.f32 %v4204_v57, %v2000_v22 }
 0x3b8   :  { %v2532_v12 = vpack.c.b16 %v5565_v23, %v5563_v0  ;;  %v2118_v54 = vmul.f32 %v5574_v58, %v5569_v39  ;;  %vm2123_vm10 = vweird.f32 %v5574_v58 }
 0x3b9   :  { %v2005_v61 = vsel %vm2004_vm4, %v4204_v57, %v2001_v7  ;;  %vm5604_vm13 = vmor %vm2122_vm12, %vm2123_vm10  ;;  %vm2680_vm4 = vcmask 519552  }
 0x3ba   :  { %3734 = vmatmul.msk.bf16.vlgmr.msra.gmra.mxu3 %vm893_vm1, %v2364_v41  ;;  %v5576_v2 = vpop.f32.mrf.mxu1  ;;  %v2010_v37 = vsel %vm2007_vm5, %v2009_v60, %v2005_v61  ;;  %v2119_v20 = vsub.f32 1.0, %v2118_v54  ;;  %vm2705_vm5 = vcmask 650752  }
 0x3bb   :  { %2605 = vmatpush.bf16.msra.mxu3 %v4014_v43  ;;  %v2011_v9 = vmul.f32 %v5186_v13, %v2010_v37  ;;  %v2621_v13 = vpack.c.bf16 %v5576_v2, %v5576_v2 }
 0x3bc   :  { %v2120_v25 = vmul.f32 %v5574_v58, %v2119_v20 }
 0x3be   :  { %v2121_v56 = vadd.f32 %v5574_v58, %v2120_v25 }
 0x3c2   :  { %v619_v46 = vpop.permute.xlu0 %618  ;;  %v1624_v49 = vpop.xlane.xlu1 %1623 }
 0x3c3   :  { %624 = vst.msk [vmem:[#allocation4 + $0x64] sm:$0xf] %vm381_vm0, %v619_v46  ;;  %4207 = vrcp.f32 %v1624_v49  ;;  %v1993_v16 = vand.u32 2147483648, %v1624_v49  ;;  %v1991_v4 = vand.u32 2147483647, %v1624_v49  ;;  %vm1987_vm7 = vweird.f32 %v1624_v49 }
 0x3c5   :  { %v1994_v5 = vor.u32 1.1754944e-38, %v1993_v16  ;;  %vm1992_vm9 = vcmp.eq.f32.partialorder %v1991_v4, 8.507059e+37 }
 0x3c6   :  { %v2299_v33 = vpop.f32.mrf.mxu0 }
 0x3c7   :  { %v2695_v28 = vpack.c.bf16 %v2299_v33, %v2299_v33 }
 0x3c9   :  { %2699 = vrot.lane.b32.xlu0 %v2695_v28, %s4415_s20  ;;  %v4208_v10 = vpop.eup %4207 }
 0x3ca   :  { %v4011_v52 = vld [vmem:[#allocation4 + $0x60] sm:$0xff]  ;;  %v1983_v55 = vmul.f32 %v4208_v10, %v1624_v49  ;;  %v5581_v62 = vpop.xlane.xlu1 %1647  ;;  %vm1988_vm6 = vweird.f32 %v4208_v10 }
 0x3cb   :  { %4209 = vrcp.f32 %v5581_v62  ;;  %2521 = vmatpush.bf16.msra.mxu0 %v4011_v52  ;;  %vm1989_vm8 = vmor %vm1987_vm7, %vm1988_vm6  ;;  %v2111_v17 = vand.u32 2147483647, %v5581_v62  ;;  %v2113_v38 = vand.u32 2147483648, %v5581_v62  ;;  %vm2107_vm14 = vweird.f32 %v5581_v62 }
 0x3cc   :  { %v1984_v44 = vsub.f32 1.0, %v1983_v55  ;;  %vm2730_vm6 = vcmask 781952   ;;  %vm2755_vm7 = vcmask 913152  }
 0x3cd   :  { %v2114_v43 = vor.u32 1.1754944e-38, %v2113_v38  ;;  %vm2112_vm2 = vcmp.eq.f32.partialorder %v2111_v17, 8.507059e+37 }
 0x3ce   :  { %v2301_v34 = vpop.f32.mrf.mxu0  ;;  %v1985_v32 = vmul.f32 %v4208_v10, %v1984_v44  ;;  %v2327_v11 = vpop.f32.mrf.mxu1  ;;  %3759 = vmatmul.msk.bf16.vlgmr.msra.gmra.mxu0 %vm893_vm1, %v2504_v53  ;;  %v2155_v53 = vpack.c.bf16 %v2011_v9, %v2011_v9 }
 0x3cf   :  { %v2696_v30 = vpack.c.bf16 %v2301_v34, %v2301_v34  ;;  %v2720_v36 = vpack.c.bf16 %v2327_v11, %v2327_v11 }
 0x3d0   :  { %v1986_v35 = vadd.f32 %v4208_v10, %v1985_v32  ;;  %v2475_v57 = vunpack.c.l.b16 %v2155_v53 }
 0x3d1   :  { %2701 = vrot.lane.b32.xlu2 %v2696_v30, %s4415_s20  ;;  %2624 = vrot.lane.b32.xlu0 %v2620_v45, %s4426_s24  ;;  %v4210_v18 = vpop.eup %4209 }
 0x3d2   :  { %2724 = vrot.lane.b32.xlu1 %v2720_v36, %s4425_s21  ;;  %v1990_v42 = vsel %vm1989_vm8, %v4208_v10, %v1986_v35  ;;  %v2103_v59 = vmul.f32 %v4210_v18, %v5581_v62  ;;  %vm2108_vm11 = vweird.f32 %v4210_v18  ;;  %vm2780_vm8 = vcmask 1044352  }
 0x3d3   :  { %v1995_v27 = vsel %vm1992_vm9, %v1994_v5, %v1990_v42  ;;  %vm2109_vm15 = vmor %vm2107_vm14, %vm2108_vm11 }
 0x3d4   :  { %v1996_v48 = vmul.f32 %v5216_v29, %v1995_v27  ;;  %v2104_v51 = vsub.f32 1.0, %v2103_v59  ;;  %v2128_v29 = vand.u32 2147483648, %v5569_v39  ;;  %v2125_v39 = vsel %vm5604_vm13, %v5574_v58, %v2121_v56 }
 0x3d6   :  { %v2411_v1 = vpop.f32.mrf.mxu0  ;;  %v2154_v3 = vpack.c.bf16 %v1996_v48, %v1996_v48  ;;  %v2105_v40 = vmul.f32 %v4210_v18, %v2104_v51  ;;  %v2329_v24 = vpop.f32.mrf.mxu1  ;;  %v2129_v46 = vor.u32 1.1754944e-38, %v2128_v29 }
 0x3d7   :  { %v2616_v31 = vpack.c.bf16 %v2411_v1, %v2411_v1  ;;  %v2721_v26 = vpack.c.bf16 %v2329_v24, %v2329_v24 }
 0x3d8   :  { %v2474_v41 = vunpack.c.l.b16 %v2154_v3  ;;  %v2106_v14 = vadd.f32 %v4210_v18, %v2105_v40  ;;  %v2130_v49 = vsel %vm2127_vm3, %v2129_v46, %v2125_v39 }
 0x3d9   :  { %2618 = vst.msk [vmem:[#allocation5 + $0x8] sm:$0xf] %vm381_vm0, %v2616_v31  ;;  %2626 = vrot.lane.b32.xlu2 %v2621_v13, %s4426_s24  ;;  %2726 = vrot.lane.b32.xlu0 %v2721_v26, %s4425_s21  ;;  %v2131_v28 = vmul.f32 %v5190_v63, %v2130_v49 }
 0x3da   :  { %v2110_v47 = vsel %vm2109_vm15, %v4210_v18, %v2106_v14  ;;  %v2476_v19 = vpack.c.b16 %v2475_v57, %v2474_v41 }
 0x3db   :  { %v2115_v22 = vsel %vm2112_vm2, %v2114_v43, %v2110_v47  ;;  %v2163_v58 = vpack.c.bf16 %v2131_v28, %v2131_v28  ;;  %v4023_v28 = vld [vmem:[#allocation12 + $0x30] sm:$0xff] }
 0x3dc   :  { %3754 = vmatmul.msk.bf16.vlgmr.msrb.gmra.mxu3 %vm893_vm1, %v2476_v19  ;;  %v2116_v7 = vmul.f32 %v5225_v8, %v2115_v22 }
 0x3dd   :  { %v2587_v54 = vunpack.c.l.b16 %v2163_v58  ;;  %v4020_v58 = vld [vmem:[#allocation12 + $0x18] sm:$0xff] }
 0x3de   :  { %v2413_v33 = vpop.f32.mrf.mxu0  ;;  %v2162_v50 = vpack.c.bf16 %v2116_v7, %v2116_v7 }
 0x3df   :  { %v2617_v2 = vpack.c.bf16 %v2413_v33, %v2413_v33 }
 0x3e0   :  { %v2586_v10 = vunpack.c.l.b16 %v2162_v50  ;;  %v4022_v50 = vld [vmem:[#allocation12 + $0x28] sm:$0xff] }
 0x3e1   :  { %2619 = vst.msk [vmem:[#allocation5 + $0xc] sm:$0xf] %vm381_vm0, %v2617_v2  ;;  %v4024_v2 = vld [vmem:[#allocation12 + $0x38] sm:$0xff] }
 0x3e2   :  { %v671_v6 = vpop.permute.xlu1 %670  ;;  %v2588_v61 = vpack.c.b16 %v2587_v54, %v2586_v10  ;;  %2879 = vmatpush.bf16.msrb.mxu0 %v4024_v2  ;;  %v4019_v10 = vld [vmem:[#allocation12 + $0x10] sm:$0xff] }
 0x3e3   :  { %677 = vst.msk [vmem:[#allocation4 + $0x68] sm:$0xf] %vm381_vm0, %v671_v6  ;;  %v4021_v6 = vld [vmem:[#allocation12 + $0x20] sm:$0xff] }
 0x3e6   :  { %2880 = vmatpush.bf16.msrb.mxu0 %v4023_v28 }
 0x3ea   :  { %v673_v52 = vpop.permute.xlu1 %672  ;;  %2881 = vmatpush.bf16.msrb.mxu0 %v4022_v50 }
 0x3eb   :  { %678 = vst.msk [vmem:[#allocation4 + $0x6c] sm:$0xf] %vm381_vm0, %v673_v52  ;;  %vm2630_vm0 = vcmask 257152   ;;  %v4018_v52 = vld [vmem:[#allocation12 + $0x8] sm:$0xff] }
 0x3ec   :  { %3774 = vmatmul.msk.bf16.vlgmr.msra.gmra.mxu3 %vm893_vm1, %v2588_v61  ;;  %v4017_v61 = vld [vmem:[#allocation12] sm:$0xff] }
 0x3ee   :  { %2882 = vmatpush.bf16.msrb.mxu0 %v4021_v6 }
 0x3f2   :  { %v4012_v55 = vld [vmem:[#allocation4 + $0x68] sm:$0xff]  ;;  %2883 = vmatpush.bf16.msrb.mxu0 %v4020_v58  ;;  %v3873_v58 = vld [vmem:[#allocation14 + $0x70] sm:$0xf] }
 0x3f3   :  { %2549 = vmatpush.bf16.msra.mxu1 %v4012_v55 }
 0x3f6   :  { %3764 = vmatmul.msk.bf16.vlgmr.msra.gmra.mxu1 %vm893_vm1, %v2532_v12  ;;  %vm2655_vm1 = vcmask 388352   ;;  %2884 = vmatpush.bf16.msrb.mxu0 %v4019_v10  ;;  %v4040_v10 = vld [vmem:[#allocation14 + $0x74] sm:$0xf0] }
 0x3fa   :  { %2885 = vmatpush.bf16.msrb.mxu0 %v4018_v52  ;;  %v3874_v52 = vor.u32 %v4040_v10, %v3873_v58 }
 0x3fb   :  { %v2243_v63 = vpop.f32.mrf.mxu2 }
 0x3fc   :  { %v2645_v8 = vpack.c.bf16 %v2243_v63, %v2243_v63  ;;  %3109 = vmatpush.bf16.msrb.mxu1 %v3874_v52 }
 0x3fe   :  { %2649 = vrot.lane.b32.xlu1 %v2645_v8, %s4427_s3  ;;  %2886 = vmatpush.bf16.msrb.mxu0 %v4017_v61  ;;  %v3875_v61 = vld [vmem:[#allocation14 + $0x78] sm:$0xf0] }
 0x403   :  { %v2245_v62 = vpop.f32.mrf.mxu2 }
 0x404   :  { %v2646_v60 = vpack.c.bf16 %v2245_v62, %v2245_v62 }
 0x406   :  { %2651 = vrot.lane.b32.xlu0 %v2646_v60, %s4427_s3 }
 0x40b   :  { %v2355_v0 = vpop.f32.mrf.mxu2 }
 0x40c   :  { %v2745_v23 = vpack.c.bf16 %v2355_v0, %v2355_v0 }
 0x413   :  { %v2357_v36 = vpop.f32.mrf.mxu2 }
 0x414   :  { %v2746_v13 = vpack.c.bf16 %v2357_v36, %v2357_v36 }
 0x41b   :  { %v2467_v27 = vpop.f32.mrf.mxu2 }
 0x41c   :  { %v2658_v14 = vpack.c.bf16 %v2467_v27, %v2467_v27  ;;  %v4230_v27 = vld [vmem:[#allocation6 + $0x8] sm:$0xff] }
 0x41f   :  { %v2439_v11 = vpop.f32.mrf.mxu1 }
 0x420   :  { %v2633_v35 = vpack.c.bf16 %v2439_v11, %v2439_v11 }
 0x423   :  { %v2469_v51 = vpop.f32.mrf.mxu2 }
 0x424   :  { %v2659_v39 = vpack.c.bf16 %v2469_v51, %v2469_v51  ;;  %v4231_v51 = vld [vmem:[#allocation6 + $0x10] sm:$0xff] }
 0x427   :  { %v2441_v5 = vpop.f32.mrf.mxu1 }
 0x428   :  { %v2634_v42 = vpack.c.bf16 %v2441_v5, %v2441_v5 }
 0x42b   :  { %v5628_v44 = vpop.permute.xlu2 %2701  ;;  %v2579_v24 = vpop.f32.mrf.mxu2 }
 0x42c   :  { %v2758_v31 = vpack.c.bf16 %v2579_v24, %v2579_v24 }
 0x42d   :  { %v2271_v45 = vpop.f32.mrf.mxu3 }
 0x42e   :  { %v2670_v37 = vpack.c.bf16 %v2271_v45, %v2271_v45 }
 0x430   :  { %2674 = vrot.lane.b32.xlu2 %v2670_v37, %s4428_s25 }
 0x433   :  { %v2627_v20 = vpop.permute.xlu2 %2626  ;;  %v2581_v49 = vpop.f32.mrf.mxu2 }
 0x434   :  { %2632 = vst.msk [vmem:[#allocation5 + $0x4] sm:$0xf] %vm2630_vm0, %v2627_v20  ;;  %v2759_v7 = vpack.c.bf16 %v2581_v49, %v2581_v49 }
 0x435   :  { %v2273_v34 = vpop.f32.mrf.mxu3 }
 0x436   :  { %v2671_v59 = vpack.c.bf16 %v2273_v34, %v2273_v34 }
 0x438   :  { %2749 = vrot.lane.b32.xlu2 %v2745_v23, %s4424_s9 }
 0x43b   :  { %v5633_v12 = vpop.permute.xlu0 %2699 }
 0x43d   :  { %v2383_v30 = vpop.f32.mrf.mxu3 }
 0x43e   :  { %v2770_v48 = vpack.c.bf16 %v2383_v30, %v2383_v30 }
 0x443   :  { %v2625_v16 = vpop.permute.xlu0 %2624 }
 0x444   :  { %2631 = vst.msk [vmem:[#allocation5] sm:$0xf] %vm2630_vm0, %v2625_v16  ;;  %v2725_v17 = vpop.permute.xlu1 %2724 }
 0x445   :  { %v2385_v25 = vpop.f32.mrf.mxu3 }
 0x446   :  { %v2771_v47 = vpack.c.bf16 %v2385_v25, %v2385_v25  ;;  %v4229_v25 = vld [vmem:[#allocation6] sm:$0xff] }
 0x44b   :  { %v2523_v32 = vpop.f32.mrf.mxu0  ;;  %v5644_v3 = vpop.permute.xlu0 %2726 }
 0x44c   :  { %v2708_v4 = vpack.c.bf16 %v2523_v32, %v2523_v32 }
 0x44e   :  { %2712 = vrot.lane.b32.xlu1 %v2708_v4, %s4415_s20 }
 0x453   :  { %v2525_v9 = vpop.f32.mrf.mxu0 }
 0x454   :  { %v2709_v18 = vpack.c.bf16 %v2525_v9, %v2525_v9  ;;  %v4077_v9 = vld [vmem:[%s5780_s4] ss:$0 sm:$0xff] }
 0x456   :  { %2637 = vrot.lane.b32.xlu1 %v2633_v35, %s4426_s24  ;;  %2714 = vrot.lane.b32.xlu0 %v2709_v18, %s4415_s20 }
 0x45e   :  { %2676 = vrot.lane.b32.xlu1 %v2671_v59, %s4428_s25  ;;  %2639 = vrot.lane.b32.xlu0 %v2634_v42, %s4426_s24 }
 0x45f   :  { %v2495_v53 = vpop.f32.mrf.mxu3 }
 0x460   :  { %v2683_v38 = vpack.c.bf16 %v2495_v53, %v2495_v53 }
 0x466   :  { %2751 = vrot.lane.b32.xlu1 %v2746_v13, %s4424_s9  ;;  %2774 = vrot.lane.b32.xlu0 %v2770_v48, %s4423_s7 }
 0x467   :  { %v2497_v56 = vpop.f32.mrf.mxu3 }
 0x468   :  { %v2684_v46 = vpack.c.bf16 %v2497_v56, %v2497_v56 }
 0x46e   :  { %2687 = vrot.lane.b32.xlu0 %v2683_v38, %s4428_s25 }
 0x46f   :  { %v2607_v1 = vpop.f32.mrf.mxu3 }
 0x470   :  { %v2650_v40 = vpop.permute.xlu1 %2649  ;;  %v2783_v22 = vpack.c.bf16 %v2607_v1, %v2607_v1  ;;  %v4232_v1 = vld [vmem:[#allocation6 + $0x18] sm:$0xff] }
 0x471   :  { %2656 = vst.msk [vmem:[#allocation5] sm:$0xf] %vm2655_vm1, %v2650_v40  ;;  %v4429_v40 = vmov 128.0  }
 0x472   :  { %4211 = vrcp.f32 %v4429_v40  ;;  %v3827_v40 = vld [vmem:[#allocation14 + $0x18] sm:$0xf0] }
 0x473   :  { %v2551_v15 = vpop.f32.mrf.mxu1 }
 0x474   :  { %v2733_v29 = vpack.c.bf16 %v2551_v15, %v2551_v15 }
 0x476   :  { %2762 = vrot.lane.b32.xlu0 %v2758_v31, %s4424_s9  ;;  %2737 = vrot.lane.b32.xlu2 %v2733_v29, %s4425_s21 }
 0x477   :  { %v2609_v57 = vpop.f32.mrf.mxu3 }
 0x478   :  { %v2652_v26 = vpop.permute.xlu0 %2651  ;;  %v2784_v21 = vpack.c.bf16 %v2609_v57, %v2609_v57  ;;  %v4212_v24 = vpop.eup %4211 }
 0x479   :  { %2657 = vst.msk [vmem:[#allocation5 + $0x4] sm:$0xf] %vm2655_vm1, %v2652_v26  ;;  %v2913_v31 = vmul.f32 128.0, %v4212_v24  ;;  %vm2917_vm9 = vweird.f32 %v4212_v24 }
 0x47b   :  { %v2553_v41 = vpop.f32.mrf.mxu1  ;;  %v2914_v15 = vsub.f32 1.0, %v2913_v31 }
 0x47c   :  { %v2734_v43 = vpack.c.bf16 %v2553_v41, %v2553_v41 }
 0x47d   :  { %v2915_v29 = vmul.f32 %v4212_v24, %v2914_v15 }
 0x47e   :  { %2789 = vrot.lane.b32.xlu0 %v2784_v21, %s4423_s7  ;;  %2662 = vrot.lane.b32.xlu2 %v2658_v14, %s4427_s3 }
 0x47f   :  { %2739 = vrot.lane.b32.xlu1 %v2734_v43, %s4425_s21  ;;  %v2916_v26 = vadd.f32 %v4212_v24, %v2915_v29  ;;  %v3817_v29 = vld [vmem:[#allocation14] sm:$0xf] }
 0x481   :  { %v5688_v57 = vsel %vm2917_vm9, %v4212_v24, %v2916_v26  ;;  %v4026_v26 = vld [vmem:[#allocation14 + $0x4] sm:$0xf0] }
 0x486   :  { %2776 = vrot.lane.b32.xlu2 %v2771_v47, %s4423_s7 }
 0x487   :  { %2664 = vrot.lane.b32.xlu1 %v2659_v39, %s4427_s3 }
 0x48a   :  { %v2675_v19 = vpop.permute.xlu2 %2674 }
 0x48b   :  { %2681 = vst.msk [vmem:[#allocation5] sm:$0xf] %vm2680_vm4, %v2675_v19 }
 0x48c   :  { %2706 = vst.msk [vmem:[#allocation5] sm:$0xf] %vm2705_vm5, %v5633_v12 }
 0x48d   :  { %2731 = vst.msk [vmem:[#allocation5] sm:$0xf] %vm2730_vm6, %v2725_v17 }
 0x48e   :  { %2689 = vrot.lane.b32.xlu2 %v2684_v46, %s4428_s25 }
 0x48f   :  { %2787 = vrot.lane.b32.xlu1 %v2783_v22, %s4423_s7 }
 0x492   :  { %v2750_v33 = vpop.permute.xlu2 %2749 }
 0x493   :  { %2756 = vst.msk [vmem:[#allocation5] sm:$0xf] %vm2755_vm7, %v2750_v33 }
 0x496   :  { %2764 = vrot.lane.b32.xlu2 %v2759_v7, %s4424_s9 }
 0x4c0   :  { %v2713_v54 = vpop.permute.xlu1 %2712 }
 0x4c8   :  { %v2715_v55 = vpop.permute.xlu0 %2714  ;;  %v2638_v63 = vpop.permute.xlu1 %2637 }
 0x4c9   :  { %2643 = vst.msk [vmem:[#allocation5 + $0x8] sm:$0xf] %vm2630_vm0, %v2638_v63  ;;  %v3865_v63 = vld [vmem:[#allocation14 + $0x60] sm:$0xf] }
 0x4d0   :  { %v2640_v8 = vpop.permute.xlu0 %2639  ;;  %v2677_v62 = vpop.permute.xlu1 %2676 }
 0x4d1   :  { %2644 = vst.msk [vmem:[#allocation5 + $0xc] sm:$0xf] %vm2630_vm0, %v2640_v8  ;;  %v2738_v60 = vpop.permute.xlu2 %2737  ;;  %v4038_v8 = vld [vmem:[#allocation14 + $0x64] sm:$0xf0] }
 0x4d2   :  { %2682 = vst.msk [vmem:[#allocation5 + $0x4] sm:$0xf] %vm2680_vm4, %v2677_v62  ;;  %v4037_v62 = vld [vmem:[#allocation14 + $0x64] sm:$0xf] }
 0x4d3   :  { %2707 = vst.msk [vmem:[#allocation5 + $0x4] sm:$0xf] %vm2705_vm5, %v5628_v44 }
 0x4d4   :  { %2732 = vst.msk [vmem:[#allocation5 + $0x4] sm:$0xf] %vm2730_vm6, %v5644_v3 }
 0x4d8   :  { %v2775_v45 = vpop.permute.xlu0 %2774  ;;  %v2752_v37 = vpop.permute.xlu1 %2751 }
 0x4d9   :  { %2781 = vst.msk [vmem:[#allocation5] sm:$0xf] %vm2780_vm8, %v2775_v45  ;;  %v2663_v20 = vpop.permute.xlu2 %2662  ;;  %v3867_v45 = vld [vmem:[#allocation14 + $0x68] sm:$0xf0] }
 0x4da   :  { %2668 = vst.msk [vmem:[#allocation5 + $0x8] sm:$0xf] %vm2655_vm1, %v2663_v20  ;;  %v3857_v20 = vld [vmem:[#allocation14 + $0x50] sm:$0xf] }
 0x4db   :  { %2757 = vst.msk [vmem:[#allocation5 + $0x4] sm:$0xf] %vm2755_vm7, %v2752_v37  ;;  %v3870_v37 = vor.u32 %v4037_v62, %v3867_v45  ;;  %v4078_v62 = vld [vmem:[%s5781_s5] ss:$0 sm:$0xff] }
 0x4e0   :  { %v2688_v0 = vpop.permute.xlu0 %2687 }
 0x4e1   :  { %2693 = vst.msk [vmem:[#allocation5 + $0x8] sm:$0xf] %vm2680_vm4, %v2688_v0  ;;  %v2777_v23 = vpop.permute.xlu2 %2776  ;;  %v4036_v0 = vld [vmem:[#allocation14 + $0x54] sm:$0xf0] }
 0x4e2   :  { %2718 = vst.msk [vmem:[#allocation5 + $0x8] sm:$0xf] %vm2705_vm5, %v2713_v54  ;;  %v4039_v54 = vld [vmem:[#allocation14 + $0x74] sm:$0xf] }
 0x4e3   :  { %2743 = vst.msk [vmem:[#allocation5 + $0x8] sm:$0xf] %vm2730_vm6, %v2738_v60  ;;  %v3866_v60 = vor.u32 %v4038_v8, %v3865_v63 }
 0x4e4   :  { %2782 = vst.msk [vmem:[#allocation5 + $0x4] sm:$0xf] %vm2780_vm8, %v2777_v23  ;;  %v4035_v23 = vld [vmem:[#allocation14 + $0x54] sm:$0xf] }
 0x4e5   :  { %3110 = vmatpush.bf16.msrb.mxu1 %v3866_v60 }
 0x4e8   :  { %v2763_v44 = vpop.permute.xlu0 %2762 }
 0x4e9   :  { %2768 = vst.msk [vmem:[#allocation5 + $0x8] sm:$0xf] %vm2755_vm7, %v2763_v44  ;;  %v2690_v34 = vpop.permute.xlu2 %2689  ;;  %v3858_v44 = vor.u32 %v4036_v0, %v3857_v20 }
 0x4eb   :  { %v4015_v12 = vld [vmem:[#allocation5] sm:$0xff]  ;;  %3111 = vmatpush.bf16.msrb.mxu1 %v3858_v44 }
 0x4ec   :  { %2887 = vmatmul.bf16.vlgmr.msrb.gmra.mxu0 %v4015_v12  ;;  %v3859_v12 = vld [vmem:[#allocation14 + $0x58] sm:$0xf0]  ;;  %v4079_v44 = vld [vmem:[%s5782_s6] ss:$0 sm:$0xff] }
 0x4f0   :  { %v2790_v30 = vpop.permute.xlu0 %2789 }
 0x4f1   :  { %v2740_v16 = vpop.permute.xlu1 %2739  ;;  %v2765_v4 = vpop.permute.xlu2 %2764 }
 0x4f9   :  { %v2665_v32 = vpop.permute.xlu1 %2664 }
 0x4fa   :  { %2669 = vst.msk [vmem:[#allocation5 + $0xc] sm:$0xf] %vm2655_vm1, %v2665_v32  ;;  %v4034_v32 = vld [vmem:[#allocation14 + $0x44] sm:$0xf0] }
 0x4fb   :  { %2694 = vst.msk [vmem:[#allocation5 + $0xc] sm:$0xf] %vm2680_vm4, %v2690_v34  ;;  %v3849_v34 = vld [vmem:[#allocation14 + $0x40] sm:$0xf] }
 0x4fc   :  { %2719 = vst.msk [vmem:[#allocation5 + $0xc] sm:$0xf] %vm2705_vm5, %v2715_v55  ;;  %v3878_v55 = vor.u32 %v4039_v54, %v3875_v61 }
 0x4fd   :  { %2744 = vst.msk [vmem:[#allocation5 + $0xc] sm:$0xf] %vm2730_vm6, %v2740_v16  ;;  %v3862_v16 = vor.u32 %v4035_v23, %v3859_v12 }
 0x4fe   :  { %2769 = vst.msk [vmem:[#allocation5 + $0xc] sm:$0xf] %vm2755_vm7, %v2765_v4  ;;  %3128 = vmatpush.bf16.msra.mxu2 %v3878_v55  ;;  %v4033_v4 = vld [vmem:[#allocation14 + $0x44] sm:$0xf] }
 0x4ff   :  { %2794 = vst.msk [vmem:[#allocation5 + $0xc] sm:$0xf] %vm2780_vm8, %v2790_v30  ;;  %v3850_v30 = vor.u32 %v4034_v32, %v3849_v34 }
 0x501   :  { %v2788_v11 = vpop.permute.xlu1 %2787  ;;  %3112 = vmatpush.bf16.msrb.mxu1 %v3850_v30  ;;  %v4056_v30 = vld [vmem:[#allocation15 + $0x78] sm:$0xff] }
 0x502   :  { %2793 = vst.msk [vmem:[#allocation5 + $0x8] sm:$0xf] %vm2780_vm8, %v2788_v11  ;;  %3129 = vmatpush.bf16.msra.mxu2 %v3870_v37  ;;  %v3851_v11 = vld [vmem:[#allocation14 + $0x48] sm:$0xf0]  ;;  %3310 = vmatpush.bf16.msra.mxu0 %v4056_v30 }
 0x506   :  { %3130 = vmatpush.bf16.msra.mxu2 %v3862_v16 }
 0x509   :  { %v4016_v36 = vld [vmem:[#allocation5 + $0x8] sm:$0xff] }
 0x50a   :  { %2892 = vmatmul.bf16.gmra.mxu0 %v4016_v36  ;;  %v3854_v36 = vor.u32 %v4033_v4, %v3851_v11  ;;  %v4048_v4 = vld [vmem:[#allocation15 + $0x38] sm:$0xff] }
 0x50b   :  { %3291 = vmatpush.bf16.msrb.mxu3 %v4048_v4 }
 0x50c   :  { %3131 = vmatpush.bf16.msra.mxu2 %v3854_v36  ;;  %v4047_v36 = vld [vmem:[#allocation15 + $0x30] sm:$0xff] }
 0x50f   :  { %3292 = vmatpush.bf16.msrb.mxu3 %v4047_v36 }
 0x569   :  { %v2888_v35 = vpop.f32.mrf.mxu0 }
 0x56a   :  { %v2889_v18 = vadd.f32 %v4077_v9, %v2888_v35  ;;  %v4032_v35 = vld [vmem:[#allocation14 + $0x34] sm:$0xf0] }
 0x56c   :  { %v2898_v5 = vadd.f32 %v4229_v25, %v2889_v18  ;;  %v4031_v18 = vld [vmem:[#allocation14 + $0x34] sm:$0xf] }
 0x56e   :  { %2904 = vadd.xlane.f32.xlu2 %v2898_v5 }
 0x571   :  { %v2890_v42 = vpop.f32.mrf.mxu0 }
 0x572   :  { %v2891_v59 = vadd.f32 %v4077_v9, %v2890_v42 }
 0x574   :  { %v2899_v53 = vadd.f32 %v4230_v27, %v2891_v59  ;;  %v3833_v59 = vld [vmem:[#allocation14 + $0x20] sm:$0xf]  ;;  %v4030_v27 = vld [vmem:[#allocation14 + $0x24] sm:$0xf0] }
 0x576   :  { %2906 = vadd.xlane.f32.xlu1 %v2899_v53 }
 0x587   :  { %v2893_v13 = vpop.f32.mrf.mxu0 }
 0x588   :  { %v2894_v48 = vadd.f32 %v4077_v9, %v2893_v13  ;;  %v3834_v13 = vor.u32 %v4030_v27, %v3833_v59  ;;  %v4054_v59 = vld [vmem:[#allocation15 + $0x68] sm:$0xff] }
 0x58a   :  { %v2900_v56 = vadd.f32 %v4231_v51, %v2894_v48  ;;  %v3835_v48 = vld [vmem:[#allocation14 + $0x28] sm:$0xf0] }
 0x58c   :  { %2908 = vadd.xlane.f32.xlu0 %v2900_v56 }
 0x58f   :  { %v2895_v17 = vpop.f32.mrf.mxu0 }
 0x590   :  { %v2896_v38 = vadd.f32 %v4077_v9, %v2895_v17  ;;  %v3841_v9 = vld [vmem:[#allocation14 + $0x30] sm:$0xf]  ;;  %v4028_v17 = vld [vmem:[#allocation14 + $0x14] sm:$0xf0] }
 0x591   :  { %v3842_v25 = vor.u32 %v4032_v35, %v3841_v9  ;;  %v4055_v9 = vld [vmem:[#allocation15 + $0x70] sm:$0xff] }
 0x592   :  { %v2901_v3 = vadd.f32 %v4232_v1, %v2896_v38  ;;  %v4027_v38 = vld [vmem:[#allocation14 + $0x14] sm:$0xf]  ;;  %3311 = vmatpush.bf16.msra.mxu0 %v4055_v9 }
 0x593   :  { %3113 = vmatpush.bf16.msrb.mxu1 %v3842_v25  ;;  %v3830_v31 = vor.u32 %v4027_v38, %v3827_v40 }
 0x594   :  { %2910 = vadd.xlane.f32.xlu2 %v2901_v3 }
 0x596   :  { %3312 = vmatpush.bf16.msra.mxu0 %v4054_v59 }
 0x597   :  { %3114 = vmatpush.bf16.msrb.mxu1 %v3834_v13  ;;  %v4045_v13 = vld [vmem:[#allocation15 + $0x20] sm:$0xff] }
 0x5e1   :  { %v2905_v21 = vpop.xlane.xlu2 %2904 }
 0x5e2   :  { %v2919_v41 = vmul.f32 %v5688_v57, %v2905_v21  ;;  %v4025_v21 = vld [vmem:[#allocation14 + $0x4] sm:$0xf] }
 0x5e4   :  { %v5691_v14 = vsub.f32 %v2898_v5, %v2919_v41  ;;  %v3843_v5 = vld [vmem:[#allocation14 + $0x38] sm:$0xf0]  ;;  %v3818_v41 = vor.u32 %v4026_v26, %v3817_v29 }
 0x5e5   :  { %v3846_v42 = vor.u32 %v4031_v18, %v3843_v5 }
 0x5e6   :  { %v2927_v43 = vmul.f32 %v5691_v14, %v5691_v14 }
 0x5e7   :  { %3132 = vmatpush.bf16.msra.mxu2 %v3846_v42  ;;  %v4046_v42 = vld [vmem:[#allocation15 + $0x28] sm:$0xff] }
 0x5e8   :  { %2931 = vadd.xlane.f32.xlu1 %v2927_v43  ;;  %v3819_v43 = vld [vmem:[#allocation14 + $0x8] sm:$0xf0]  ;;  %3293 = vmatpush.bf16.msrb.mxu3 %v4046_v42 }
 0x5e9   :  { %v2907_v39 = vpop.xlane.xlu1 %2906  ;;  %v4080_v42 = vld [vmem:[%s5786_s10] ss:$0 sm:$0xff] }
 0x5ea   :  { %v2920_v47 = vmul.f32 %v5688_v57, %v2907_v39  ;;  %v3822_v39 = vor.u32 %v4025_v21, %v3819_v43 }
 0x5ec   :  { %v5696_v19 = vsub.f32 %v2899_v53, %v2920_v47  ;;  %v4029_v53 = vld [vmem:[#allocation14 + $0x24] sm:$0xf]  ;;  %3294 = vmatpush.bf16.msrb.mxu3 %v4045_v13 }
 0x5ed   :  { %v3838_v51 = vor.u32 %v4029_v53, %v3835_v48 }
 0x5ee   :  { %v2928_v46 = vmul.f32 %v5696_v19, %v5696_v19 }
 0x5ef   :  { %3133 = vmatpush.bf16.msra.mxu2 %v3838_v51 }
 0x5f0   :  { %2933 = vadd.xlane.f32.xlu0 %v2928_v46 }
 0x5f3   :  { %3134 = vmatpush.bf16.msra.mxu2 %v3830_v31 }
 0x5f7   :  { %3135 = vmatpush.bf16.msra.mxu2 %v3822_v39  ;;  %v4044_v39 = vld [vmem:[#allocation15 + $0x18] sm:$0xff] }
 0x5f8   :  { %3295 = vmatpush.bf16.msrb.mxu3 %v4044_v39 }
 0x5ff   :  { %v2909_v22 = vpop.xlane.xlu0 %2908 }
 0x600   :  { %v2921_v49 = vmul.f32 %v5688_v57, %v2909_v22 }
 0x602   :  { %v5701_v33 = vsub.f32 %v2900_v56, %v2921_v49  ;;  %v3825_v56 = vld [vmem:[#allocation14 + $0x10] sm:$0xf] }
 0x604   :  { %v2929_v7 = vmul.f32 %v5701_v33, %v5701_v33 }
 0x606   :  { %2935 = vadd.xlane.f32.xlu2 %v2929_v7 }
 0x607   :  { %v2911_v2 = vpop.xlane.xlu2 %2910 }
 0x608   :  { %v2922_v28 = vmul.f32 %v5688_v57, %v2911_v2 }
 0x60a   :  { %v5706_v50 = vsub.f32 %v2901_v3, %v2922_v28  ;;  %v3826_v3 = vor.u32 %v4028_v17, %v3825_v56 }
 0x60c   :  { %v2930_v6 = vmul.f32 %v5706_v50, %v5706_v50  ;;  %3115 = vmatpush.bf16.msrb.mxu1 %v3826_v3 }
 0x60e   :  { %2937 = vadd.xlane.f32.xlu1 %v2930_v6 }
 0x610   :  { %3116 = vmatpush.bf16.msrb.mxu1 %v3818_v41 }
 0x65b   :  { %v2932_v1 = vpop.xlane.xlu1 %2931 }
 0x65c   :  { %v2939_v24 = vmul.f32 %v2932_v1, %v5688_v57 }
 0x65e   :  { %v2943_v15 = vadd.f32 1e-05, %v2939_v24 }
 0x660   :  { %4213 = vrsqrt.f32 %v2943_v15  ;;  %vm2953_vm11 = vweird.f32 %v2943_v15 }
 0x663   :  { %v2934_v47 = vpop.xlane.xlu0 %2933 }
 0x664   :  { %v2940_v46 = vmul.f32 %v2934_v47, %v5688_v57  ;;  %v4043_v47 = vld [vmem:[#allocation15 + $0x10] sm:$0xff] }
 0x665   :  { %3296 = vmatpush.bf16.msrb.mxu3 %v4043_v47 }
 0x666   :  { %v4214_v22 = vpop.eup %4213  ;;  %v2944_v49 = vadd.f32 1e-05, %v2940_v46  ;;  %v4052_v46 = vld [vmem:[#allocation15 + $0x58] sm:$0xff] }
 0x667   :  { %v2948_v7 = vmul.f32 %v4214_v22, %v2943_v15  ;;  %vm2954_vm10 = vweird.f32 %v4214_v22 }
 0x668   :  { %4215 = vrsqrt.f32 %v2944_v49  ;;  %vm2955_vm12 = vmor %vm2953_vm11, %vm2954_vm10  ;;  %vm2963_vm14 = vweird.f32 %v2944_v49 }
 0x669   :  { %v2949_v2 = vmul.f32 %v4214_v22, %v2948_v7  ;;  %v4050_v7 = vld [vmem:[#allocation15 + $0x48] sm:$0xff] }
 0x66b   :  { %v2950_v28 = vmul.f32 0.5, %v2949_v2  ;;  %v4049_v2 = vld [vmem:[#allocation15 + $0x40] sm:$0xff] }
 0x66d   :  { %v2951_v6 = vsub.f32 1.5, %v2950_v28  ;;  %v3023_v28 = vld [vmem:[%s5784_s8] sm:$0x3] }
 0x66e   :  { %v4216_v58 = vpop.eup %4215 }
 0x66f   :  { %v2952_v10 = vmul.f32 %v4214_v22, %v2951_v6  ;;  %v2958_v54 = vmul.f32 %v4216_v58, %v2944_v49  ;;  %vm2964_vm13 = vweird.f32 %v4216_v58  ;;  %v4041_v49 = vld [vmem:[#allocation15] sm:$0xff] }
 0x670   :  { %vm2965_vm15 = vmor %vm2963_vm14, %vm2964_vm13 }
 0x671   :  { %v2959_v52 = vmul.f32 %v4216_v58, %v2958_v54  ;;  %v2956_v61 = vsel %vm2955_vm12, %v4214_v22, %v2952_v10  ;;  %v4051_v22 = vld [vmem:[#allocation15 + $0x50] sm:$0xff] }
 0x672   :  { %v2987_v8 = vmul.f32 %v2956_v61, %v5691_v14  ;;  %v3026_v61 = vperm.slane %v3023_v28, 1 }
 0x673   :  { %v2960_v55 = vmul.f32 0.5, %v2959_v52 }
 0x674   :  { %v2994_v23 = vmul.f32 %v4078_v62, %v2987_v8 }
 0x675   :  { %v2961_v63 = vsub.f32 1.5, %v2960_v55 }
 0x676   :  { %v5721_v16 = vadd.f32 %v4079_v44, %v2994_v23 }
 0x677   :  { %v2962_v60 = vmul.f32 %v4216_v58, %v2961_v63 }
 0x679   :  { %v2966_v45 = vsel %vm2965_vm15, %v4216_v58, %v2962_v60  ;;  %v2936_v37 = vpop.xlane.xlu2 %2935  ;;  %v3025_v58 = vperm.slane %v3023_v28, 0 }
 0x67a   :  { %v2988_v20 = vmul.f32 %v2966_v45, %v5696_v19  ;;  %v2941_v0 = vmul.f32 %v2936_v37, %v5688_v57 }
 0x67c   :  { %v2945_v12 = vadd.f32 1e-05, %v2941_v0  ;;  %v2995_v14 = vmul.f32 %v4078_v62, %v2988_v20 }
 0x67e   :  { %4217 = vrsqrt.f32 %v2945_v12  ;;  %v5723_v34 = vadd.f32 %v4079_v44, %v2995_v14  ;;  %vm2973_vm3 = vweird.f32 %v2945_v12 }
 0x680   :  { %v3005_v32 = vpack.c.bf16 %v5723_v34, %v5721_v16 }
 0x681   :  { %v2938_v19 = vpop.xlane.xlu1 %2937 }
 0x682   :  { %3117 = vmatmul.bf16.vlgmr.msrb.gmra.mxu1 %v3005_v32  ;;  %3136 = vmatmul.bf16.vlgmr.msra.gmra.mxu2 %v3005_v32  ;;  %v2942_v11 = vmul.f32 %v2938_v19, %v5688_v57 }
 0x684   :  { %v4218_v35 = vpop.eup %4217  ;;  %v2946_v18 = vadd.f32 1e-05, %v2942_v11 }
 0x685   :  { %v2968_v25 = vmul.f32 %v4218_v35, %v2945_v12  ;;  %vm2974_vm2 = vweird.f32 %v4218_v35 }
 0x686   :  { %4219 = vrsqrt.f32 %v2946_v18  ;;  %vm2975_vm0 = vmor %vm2973_vm3, %vm2974_vm2  ;;  %vm2983_vm4 = vweird.f32 %v2946_v18 }
 0x687   :  { %v2969_v5 = vmul.f32 %v4218_v35, %v2968_v25 }
 0x689   :  { %v2970_v27 = vmul.f32 0.5, %v2969_v5 }
 0x68b   :  { %v2971_v53 = vsub.f32 1.5, %v2970_v27 }
 0x68c   :  { %v4220_v48 = vpop.eup %4219 }
 0x68d   :  { %v2972_v51 = vmul.f32 %v4218_v35, %v2971_v53  ;;  %v2978_v56 = vmul.f32 %v4220_v48, %v2946_v18  ;;  %vm2984_vm1 = vweird.f32 %v4220_v48 }
 0x68e   :  { %vm2985_vm5 = vmor %vm2983_vm4, %vm2984_vm1 }
 0x68f   :  { %v2979_v17 = vmul.f32 %v4220_v48, %v2978_v56  ;;  %v2976_v1 = vsel %vm2975_vm0, %v4218_v35, %v2972_v51 }
 0x690   :  { %v2989_v40 = vmul.f32 %v2976_v1, %v5701_v33  ;;  %v4053_v33 = vld [vmem:[#allocation15 + $0x60] sm:$0xff] }
 0x691   :  { %v2980_v38 = vmul.f32 0.5, %v2979_v17  ;;  %3313 = vmatpush.bf16.msra.mxu0 %v4053_v33 }
 0x692   :  { %v2996_v29 = vmul.f32 %v4078_v62, %v2989_v40 }
 0x693   :  { %v2981_v3 = vsub.f32 1.5, %v2980_v38 }
 0x694   :  { %v5730_v21 = vadd.f32 %v4079_v44, %v2996_v29 }
 0x695   :  { %v2982_v24 = vmul.f32 %v4220_v48, %v2981_v3  ;;  %3314 = vmatpush.bf16.msra.mxu0 %v4052_v46 }
 0x697   :  { %v2986_v31 = vsel %vm2985_vm5, %v4220_v48, %v2982_v24 }
 0x698   :  { %v2990_v15 = vmul.f32 %v2986_v31, %v5706_v50  ;;  %v4042_v50 = vld [vmem:[#allocation15 + $0x8] sm:$0xff] }
 0x699   :  { %3297 = vmatpush.bf16.msrb.mxu3 %v4042_v50  ;;  %3315 = vmatpush.bf16.msra.mxu0 %v4051_v22 }
 0x69a   :  { %v2997_v26 = vmul.f32 %v4078_v62, %v2990_v15 }
 0x69c   :  { %v5732_v41 = vadd.f32 %v4079_v44, %v2997_v26 }
 0x69d   :  { %3298 = vmatpush.bf16.msrb.mxu3 %v4041_v49  ;;  %3316 = vmatpush.bf16.msra.mxu0 %v4050_v7 }
 0x69e   :  { %v3006_v43 = vpack.c.bf16 %v5732_v41, %v5730_v21 }
 0x6a0   :  { %3122 = vmatmul.bf16.gmra.mxu1 %v3006_v43  ;;  %3141 = vmatmul.bf16.gmra.mxu2 %v3006_v43 }
 0x6a1   :  { %3317 = vmatpush.bf16.msra.mxu0 %v4049_v2 }
 0x6ff   :  { %v3118_v6 = vpop.f32.mrf.mxu1 }
 0x700   :  { %v3119_v54 = vadd.f32 %v3118_v6, %v3025_v58 }
 0x702   :  { %v3147_v63 = vmax.f32 %v3119_v54, 0.0 }
 0x705   :  { %v3137_v10 = vpop.f32.mrf.mxu2 }
 0x706   :  { %v3138_v62 = vadd.f32 %v3137_v10, %v3026_v61 }
 0x707   :  { %v3120_v52 = vpop.f32.mrf.mxu1 }
 0x708   :  { %v3121_v55 = vadd.f32 %v3120_v52, %v3025_v58  ;;  %v3148_v20 = vmax.f32 %v3138_v62, 0.0 }
 0x70a   :  { %v3149_v8 = vmax.f32 %v3121_v55, 0.0 }
 0x70c   :  { %v3155_v60 = vpack.c.bf16 %v3149_v8, %v3147_v63 }
 0x70d   :  { %v3139_v45 = vpop.f32.mrf.mxu2 }
 0x70e   :  { %v3140_v37 = vadd.f32 %v3139_v45, %v3026_v61  ;;  %3299 = vmatmul.bf16.vlgmr.msrb.gmra.mxu3 %v3155_v60 }
 0x710   :  { %v3150_v0 = vmax.f32 %v3140_v37, 0.0 }
 0x712   :  { %v3156_v23 = vpack.c.bf16 %v3150_v0, %v3148_v20 }
 0x714   :  { %3318 = vmatmul.bf16.vlgmr.msra.gmra.mxu0 %v3156_v23 }
 0x71d   :  { %v3123_v44 = vpop.f32.mrf.mxu1 }
 0x71e   :  { %v3124_v14 = vadd.f32 %v3123_v44, %v3025_v58 }
 0x720   :  { %v3151_v30 = vmax.f32 %v3124_v14, 0.0  ;;  %v4081_v14 = vld [vmem:[%s5787_s11] ss:$0 sm:$0xff]  ;;  %s4430_s11 = smov [#allocation17]  }
 0x723   :  { %v3142_v12 = vpop.f32.mrf.mxu2 }
 0x724   :  { %v3143_v11 = vadd.f32 %v3142_v12, %v3026_v61 }
 0x725   :  { %v3125_v32 = vpop.f32.mrf.mxu1 }
 0x726   :  { %v3126_v4 = vadd.f32 %v3125_v32, %v3025_v58  ;;  %v3152_v18 = vmax.f32 %v3143_v11, 0.0 }
 0x728   :  { %v3153_v19 = vmax.f32 %v3126_v4, 0.0 }
 0x72a   :  { %v3157_v36 = vpack.c.bf16 %v3153_v19, %v3151_v30  ;;  %v4082_v19 = vld [vmem:[%s5788_s12] ss:$0 sm:$0xff]  ;;  %s3437_s12 = sshll.u32 %s4430_s11, 4  ;;  %s3438_s12 = int_to_ptr.vmem [resolvable:$true] %s3437_s12 }
 0x72b   :  { %v3144_v9 = vpop.f32.mrf.mxu2 }
 0x72c   :  { %v3145_v35 = vadd.f32 %v3144_v9, %v3026_v61  ;;  %3304 = vmatmul.bf16.gmra.mxu3 %v3157_v36 }
 0x72e   :  { %v3154_v25 = vmax.f32 %v3145_v35, 0.0 }
 0x730   :  { %v3158_v5 = vpack.c.bf16 %v3154_v25, %v3152_v18 }
 0x732   :  { %3323 = vmatmul.bf16.gmra.mxu0 %v3158_v5 }
 0x791   :  { %v3300_v59 = vpop.f32.mrf.mxu3  ;;  %v3319_v27 = vpop.f32.mrf.mxu0 }
 0x792   :  { %v3301_v53 = vadd.f32 %v4080_v42, %v3300_v59 }
 0x794   :  { %v3320_v13 = vadd.f32 %v3319_v27, %v3301_v53 }
 0x796   :  { %v3329_v48 = vadd.f32 %v3320_v13, %v5721_v16 }
 0x798   :  { %3335 = vadd.xlane.f32.xlu0 %v3329_v48 }
 0x799   :  { %v3302_v51 = vpop.f32.mrf.mxu3  ;;  %v3321_v17 = vpop.f32.mrf.mxu0 }
 0x79a   :  { %v3303_v56 = vadd.f32 %v4080_v42, %v3302_v51 }
 0x79c   :  { %v3322_v38 = vadd.f32 %v3321_v17, %v3303_v56 }
 0x79e   :  { %v3330_v1 = vadd.f32 %v3322_v38, %v5723_v34 }
 0x7a0   :  { %3337 = vadd.xlane.f32.xlu2 %v3330_v1 }
 0x7af   :  { %v3305_v3 = vpop.f32.mrf.mxu3  ;;  %v3324_v40 = vpop.f32.mrf.mxu0 }
 0x7b0   :  { %v3306_v24 = vadd.f32 %v4080_v42, %v3305_v3 }
 0x7b2   :  { %v3325_v31 = vadd.f32 %v3324_v40, %v3306_v24 }
 0x7b4   :  { %v3331_v15 = vadd.f32 %v3325_v31, %v5730_v21 }
 0x7b6   :  { %3339 = vadd.xlane.f32.xlu1 %v3331_v15 }
 0x7b7   :  { %v3307_v29 = vpop.f32.mrf.mxu3  ;;  %v3326_v43 = vpop.f32.mrf.mxu0 }
 0x7b8   :  { %v3308_v26 = vadd.f32 %v4080_v42, %v3307_v29 }
 0x7ba   :  { %v3327_v39 = vadd.f32 %v3326_v43, %v3308_v26 }
 0x7bc   :  { %v3332_v16 = vadd.f32 %v3327_v39, %v5732_v41 }
 0x7be   :  { %3341 = vadd.xlane.f32.xlu0 %v3332_v16 }
 0x80b   :  { %v3336_v33 = vpop.xlane.xlu0 %3335 }
 0x80c   :  { %v3343_v47 = vmul.f32 %v3336_v33, %v5688_v57 }
 0x80e   :  { %v3347_v46 = vsub.f32 %v3329_v48, %v3343_v47 }
 0x810   :  { %v3351_v34 = vmul.f32 %v3347_v46, %v3347_v46 }
 0x812   :  { %3355 = vadd.xlane.f32.xlu2 %v3351_v34 }
 0x813   :  { %v3338_v50 = vpop.xlane.xlu2 %3337 }
 0x814   :  { %v3344_v22 = vmul.f32 %v3338_v50, %v5688_v57 }
 0x816   :  { %v3348_v49 = vsub.f32 %v3330_v1, %v3344_v22 }
 0x818   :  { %v3352_v7 = vmul.f32 %v3348_v49, %v3348_v49 }
 0x81a   :  { %3357 = vadd.xlane.f32.xlu1 %v3352_v7 }
 0x829   :  { %v3340_v21 = vpop.xlane.xlu1 %3339 }
 0x82a   :  { %v3345_v2 = vmul.f32 %v3340_v21, %v5688_v57 }
 0x82c   :  { %v5749_v28 = vsub.f32 %v3331_v15, %v3345_v2 }
 0x82e   :  { %v3353_v41 = vmul.f32 %v5749_v28, %v5749_v28 }
 0x830   :  { %3359 = vadd.xlane.f32.xlu0 %v3353_v41 }
 0x831   :  { %v3342_v6 = vpop.xlane.xlu0 %3341 }
 0x832   :  { %v3346_v58 = vmul.f32 %v3342_v6, %v5688_v57 }
 0x834   :  { %v5754_v10 = vsub.f32 %v3332_v16, %v3346_v58 }
 0x836   :  { %v3354_v54 = vmul.f32 %v5754_v10, %v5754_v10 }
 0x838   :  { %3361 = vadd.xlane.f32.xlu2 %v3354_v54 }
 0x885   :  { %v3356_v52 = vpop.xlane.xlu2 %3355 }
 0x886   :  { %v3363_v61 = vmul.f32 %v3356_v52, %v5688_v57 }
 0x888   :  { %v3367_v55 = vadd.f32 1e-05, %v3363_v61 }
 0x88a   :  { %4221 = vrsqrt.f32 %v3367_v55  ;;  %vm3377_vm7 = vweird.f32 %v3367_v55 }
 0x88d   :  { %v3358_v63 = vpop.xlane.xlu1 %3357 }
 0x88e   :  { %v3364_v8 = vmul.f32 %v3358_v63, %v5688_v57 }
 0x890   :  { %v4222_v62 = vpop.eup %4221  ;;  %v3368_v60 = vadd.f32 1e-05, %v3364_v8 }
 0x891   :  { %v3372_v45 = vmul.f32 %v4222_v62, %v3367_v55  ;;  %vm3378_vm6 = vweird.f32 %v4222_v62 }
 0x892   :  { %4223 = vrsqrt.f32 %v3368_v60  ;;  %vm3379_vm8 = vmor %vm3377_vm7, %vm3378_vm6  ;;  %vm3387_vm10 = vweird.f32 %v3368_v60 }
 0x893   :  { %v3373_v37 = vmul.f32 %v4222_v62, %v3372_v45 }
 0x895   :  { %v3374_v20 = vmul.f32 0.5, %v3373_v37 }
 0x897   :  { %v3375_v0 = vsub.f32 1.5, %v3374_v20 }
 0x898   :  { %v4224_v23 = vpop.eup %4223 }
 0x899   :  { %v3376_v44 = vmul.f32 %v4222_v62, %v3375_v0  ;;  %v3382_v12 = vmul.f32 %v4224_v23, %v3368_v60  ;;  %vm3388_vm9 = vweird.f32 %v4224_v23 }
 0x89a   :  { %vm3389_vm11 = vmor %vm3387_vm10, %vm3388_vm9 }
 0x89b   :  { %v3380_v32 = vsel %vm3379_vm8, %v4222_v62, %v3376_v44  ;;  %v3383_v4 = vmul.f32 %v4224_v23, %v3382_v12 }
 0x89c   :  { %v3411_v30 = vmul.f32 %v3380_v32, %v3347_v46 }
 0x89d   :  { %v3384_v11 = vmul.f32 0.5, %v3383_v4 }
 0x89e   :  { %v3418_v36 = vmul.f32 %v4081_v14, %v3411_v30 }
 0x89f   :  { %v3385_v9 = vsub.f32 1.5, %v3384_v11 }
 0x8a0   :  { %v3425_v35 = vadd.f32 %v4082_v19, %v3418_v36 }
 0x8a1   :  { %v3386_v18 = vmul.f32 %v4224_v23, %v3385_v9 }
 0x8a2   :  { %3429 = vst [vmem:[#allocation17] sm:$0xff] %v3425_v35 }
 0x8a3   :  { %v3390_v25 = vsel %vm3389_vm11, %v4224_v23, %v3386_v18  ;;  %v3360_v5 = vpop.xlane.xlu0 %3359 }
 0x8a4   :  { %v3412_v42 = vmul.f32 %v3390_v25, %v3348_v49  ;;  %v3365_v59 = vmul.f32 %v3360_v5, %v5688_v57 }
 0x8a6   :  { %v3419_v27 = vmul.f32 %v4081_v14, %v3412_v42  ;;  %v3369_v53 = vadd.f32 1e-05, %v3365_v59 }
 0x8a8   :  { %4225 = vrsqrt.f32 %v3369_v53  ;;  %v3426_v13 = vadd.f32 %v4082_v19, %v3419_v27  ;;  %vm3397_vm13 = vweird.f32 %v3369_v53 }
 0x8aa   :  { %3430 = vst [vmem:[#allocation17 + $0x8] sm:$0xff] %v3426_v13 }
 0x8ab   :  { %v3362_v48 = vpop.xlane.xlu2 %3361 }
 0x8ac   :  { %v3366_v51 = vmul.f32 %v3362_v48, %v5688_v57 }
 0x8ae   :  { %v4226_v56 = vpop.eup %4225  ;;  %v3370_v17 = vadd.f32 1e-05, %v3366_v51 }
 0x8af   :  { %v3392_v38 = vmul.f32 %v4226_v56, %v3369_v53  ;;  %vm3398_vm12 = vweird.f32 %v4226_v56 }
 0x8b0   :  { %4227 = vrsqrt.f32 %v3370_v17  ;;  %vm3399_vm14 = vmor %vm3397_vm13, %vm3398_vm12  ;;  %vm3407_vm2 = vweird.f32 %v3370_v17 }
 0x8b1   :  { %v3393_v1 = vmul.f32 %v4226_v56, %v3392_v38 }
 0x8b3   :  { %v3394_v3 = vmul.f32 0.5, %v3393_v1 }
 0x8b5   :  { %v3395_v40 = vsub.f32 1.5, %v3394_v3 }
 0x8b6   :  { %v4228_v24 = vpop.eup %4227 }
 0x8b7   :  { %v3396_v31 = vmul.f32 %v4226_v56, %v3395_v40  ;;  %v3402_v15 = vmul.f32 %v4228_v24, %v3370_v17  ;;  %vm3408_vm15 = vweird.f32 %v4228_v24 }
 0x8b8   :  { %vm3409_vm3 = vmor %vm3407_vm2, %vm3408_vm15 }
 0x8b9   :  { %v3400_v29 = vsel %vm3399_vm14, %v4226_v56, %v3396_v31  ;;  %v3403_v26 = vmul.f32 %v4228_v24, %v3402_v15 }
 0x8ba   :  { %v3413_v43 = vmul.f32 %v3400_v29, %v5749_v28 }
 0x8bb   :  { %v3404_v39 = vmul.f32 0.5, %v3403_v26 }
 0x8bc   :  { %v3420_v16 = vmul.f32 %v4081_v14, %v3413_v43 }
 0x8bd   :  { %v3405_v57 = vsub.f32 1.5, %v3404_v39 }
 0x8be   :  { %v3427_v33 = vadd.f32 %v4082_v19, %v3420_v16 }
 0x8bf   :  { %v3406_v47 = vmul.f32 %v4228_v24, %v3405_v57 }
 0x8c0   :  { %3431 = vst [vmem:[#allocation17 + $0x10] sm:$0xff] %v3427_v33 }
 0x8c1   :  { %v3410_v46 = vsel %vm3409_vm3, %v4228_v24, %v3406_v47 }
 0x8c2   :  { %v3414_v34 = vmul.f32 %v3410_v46, %v5754_v10 }
 0x8c4   :  { %v3421_v50 = vmul.f32 %v4081_v14, %v3414_v34 }
 0x8c6   :  { %v3428_v22 = vadd.f32 %v4082_v19, %v3421_v50 }
 0x8c8   :  { %3432 = vst [vmem:[#allocation17 + $0x18] sm:$0xff] %v3428_v22 }
 0x8c9   :  { %3445 = dma.vmem_to_hbm [thread:$0]  %s3438_s12, 512, %s3440_s19, [#allocation8], %s4418_s28, %s4418_s28, %s4419_s29  }
 0x8ca   :  { %4409 = dma.done.wait [#allocation8], 512  }
 0x8cb   :  { %4410 = vsyncadd [#allocation8], 4294966784 }
 0x8cc   :  { %3450 = vsyncpa [#allocation7], 1 }
 0x8cd   :  { %3451 = vsyncpa [#allocation10], 1 }
 0x8ce   :  { %3452 = vsyncpa [#allocation13], 1 }
 0x8cf   :  { %3453 = vsyncpa [#allocation16], 1 }
 0x8d0   :  { %3454 = vsyncpa [#allocation8], 1 }

</bundles_post_ra>
